<compile_context>
chip_gen: v7x
topology: tpu7x:2x2x1
jax: 0.10.0
libtpu: 0.0.40
codegen_flags: <defaults>
</compile_context>

<pallas_src>
import numpy as np
import jax
import jax.numpy as jnp
from jax.experimental import pallas as pl
from jax.experimental.pallas import tpu as pltpu


# ----------------------------------------------------------------------------
# small helpers
# ----------------------------------------------------------------------------

def _nbytes(shape, dtype):
    n = 1
    for s in shape:
        n *= int(s)
    return n * np.dtype(dtype).itemsize


_VMEM_CAP_CACHE = [None]


def _vmem_cap():
    """Physical VMEM capacity (64 MiB on v7x, 128 MiB on v5e/v6e)."""
    if _VMEM_CAP_CACHE[0] is None:
        try:
            _VMEM_CAP_CACHE[0] = int(pltpu.get_tpu_info().vmem_capacity_bytes)
        except Exception:
            _VMEM_CAP_CACHE[0] = 64 << 20   # conservative (v7x-sized) fallback
    return _VMEM_CAP_CACHE[0]


def _vmem_limit(block_bytes, resident_bytes=0):
    """Double-buffered block bytes + resident bytes + margin, clamped to a
    generation-aware ceiling (capacity - 16 MiB compiler headroom)."""
    ceiling = max(_vmem_cap() - (16 << 20), 32 << 20)
    need = 2 * int(block_bytes) + int(resident_bytes) + (2 << 20)
    return int(min(max(need, 8 << 20), ceiling))


def _row_tiling(m, target):
    """Row tile (multiple of 8, <= target) and padded row count.

    Never falls back to one giant block: awkward m is padded up to the tile.
    """
    m8 = m + (-m) % 8
    tm = min(int(target), m8)
    tm = max(8, (tm // 8) * 8)
    m_pad = m + (-m) % tm
    return tm, m_pad


def _batch_tile(b, n, target_rows, mxu_rows=256):
    """Divisor bb of b with bb*n <= target_rows, preferring MXU-row alignment."""
    cands = [d for d in range(1, b + 1) if b % d == 0 and d * n <= target_rows] or [1]
    for align in (mxu_rows, mxu_rows // 2, 8):
        aligned = [d for d in cands if (d * n) % align == 0]
        if aligned:
            return max(aligned)
    return max(cands)


def _time_tile(t, target):
    """Divisor of t that is a multiple of 8 and <= target; else the full t."""
    for tt in range(min(int(target), t), 7, -1):
        if t % tt == 0 and tt % 8 == 0:
            return tt
    return t


def _gru_batch_block(b):
    """Halve the batch only when the half stays 8-row aligned (v7x megacore)."""
    if b % 2 == 0 and (b // 2) % 8 == 0:
        return b // 2
    return b


# ----------------------------------------------------------------------------
# Kernels
# ----------------------------------------------------------------------------

def fc_l2norm_kernel(x_ref, w_ref, b_ref, o_ref):
    """Row tile of Linear(img_dim -> embed) + l2norm over the feature axis."""
    x = x_ref[...].astype(w_ref.dtype)
    y = jnp.dot(x, w_ref[...], preferred_element_type=jnp.float32) + b_ref[...]
    inv = jax.lax.rsqrt(jnp.sum(y * y, axis=-1, keepdims=True))
    o_ref[...] = (y * inv).astype(o_ref.dtype)


def linear_kernel(x_ref, w_ref, b_ref, o_ref):
    """Row tile of a plain Linear (the hoisted GRU input projection)."""
    x = x_ref[...].astype(w_ref.dtype)
    y = jnp.dot(x, w_ref[...], preferred_element_type=jnp.float32) + b_ref[...]
    o_ref[...] = y.astype(o_ref.dtype)


def gcn_stack_kernel(v_ref, w3_ref, b3_ref, ww_ref, bw_ref, bns_ref, bnb_ref, o_ref):
    """Fused stack of Rs_GCN layers + final l2norm.

    grid = (batch_blocks, n_layers); the activation lives in the resident
    output block o_ref across the layer axis (its block index is constant
    along l), per-layer weights are streamed.  w3 packs [g | theta/N | phi].
    """
    l = pl.program_id(1)

    @pl.when(l == 0)
    def _():
        o_ref[...] = v_ref[...]

    bb, n_nodes, e = o_ref.shape
    v = o_ref[...]                                      # (bb, N, E) f32
    v2 = v.reshape(bb * n_nodes, e)
    cdt = w3_ref.dtype

    # fused g / theta / phi projections: one (bb*N, E) @ (E, 3E) matmul
    proj = jnp.dot(v2.astype(cdt), w3_ref[0],
                   preferred_element_type=jnp.float32) + b3_ref[0]
    g = proj[:, :e].reshape(bb, n_nodes, e)
    th = proj[:, e:2 * e].reshape(bb, n_nodes, e)       # theta pre-scaled by 1/N
    ph = proj[:, 2 * e:].reshape(bb, n_nodes, e)

    # R = theta @ phi^T   (1/N already folded into the theta weights/bias)
    R = jnp.einsum('bne,bme->bnm', th.astype(cdt), ph.astype(cdt),
                   preferred_element_type=jnp.float32)
    y = jnp.einsum('bnm,bme->bne', R.astype(cdt), g.astype(cdt),
                   preferred_element_type=jnp.float32)

    # W conv (1x1) + eval-mode BatchNorm1d folded to a per-channel affine
    y2 = y.reshape(bb * n_nodes, e)
    wy = jnp.dot(y2.astype(cdt), ww_ref[0], preferred_element_type=jnp.float32) + bw_ref[0]
    wy = wy * bns_ref[0] + bnb_ref[0]

    v_new = wy.reshape(bb, n_nodes, e) + v              # residual
    o_ref[...] = v_new

    @pl.when(l == pl.num_programs(1) - 1)
    def _():
        inv = jax.lax.rsqrt(jnp.sum(v_new * v_new, axis=-1, keepdims=True))
        o_ref[...] = v_new * inv


def gru_block_kernel(xp_ref, whh_ref, bhh_ref, o_ref, h_scr):
    """TB GRU timesteps per grid iteration (sequential 'arbitrary' time axis,
    'parallel' batch-block axis).

    xp_ref holds TB precomputed input-gate pre-activations x_t @ W_ih + b_ih
    (gate order r, z, n) for this batch block.  Only the recurrent
    (bb, E) @ (E, 3E) matmul and the gate nonlinearities run per step.  The
    final hidden state is l2-normalized.
    """
    s = pl.program_id(1)

    @pl.when(s == 0)
    def _():
        h_scr[...] = jnp.zeros_like(h_scr)

    e = h_scr.shape[-1]
    tb = xp_ref.shape[1]
    h = h_scr[...]                                      # (bb, E) f32

    # statically unrolled TB-step recurrence (TB is small, e.g. 8)
    for j in range(tb):
        gi = xp_ref[:, j, :].astype(jnp.float32)        # (bb, 3E)
        gh = jnp.dot(h.astype(whh_ref.dtype), whh_ref[...],
                     preferred_element_type=jnp.float32) + bhh_ref[...]
        r = jax.nn.sigmoid(gi[:, :e] + gh[:, :e])
        z = jax.nn.sigmoid(gi[:, e:2 * e] + gh[:, e:2 * e])
        n = jnp.tanh(gi[:, 2 * e:] + r * gh[:, 2 * e:])
        h = (1.0 - z) * n + z * h

    h_scr[...] = h

    @pl.when(s == pl.num_programs(1) - 1)
    def _():
        inv = jax.lax.rsqrt(jnp.sum(h * h, axis=-1, keepdims=True))
        o_ref[...] = h * inv


# ----------------------------------------------------------------------------
# Wrappers (pallas_call plumbing)
# ----------------------------------------------------------------------------

def fc_l2norm(x2d, w, b, *, row_tile=512):
    m, d = x2d.shape
    e = w.shape[1]
    tm, m_pad = _row_tiling(m, row_tile)
    x_p = x2d if m_pad == m else jnp.pad(x2d, ((0, m_pad - m), (0, 0)))
    vmem = _vmem_limit(_nbytes((tm, d), x2d.dtype) + _nbytes((d, e), w.dtype)
                       + _nbytes((1, e), b.dtype) + _nbytes((tm, e), jnp.float32),
                       _nbytes((tm, e), jnp.float32))
    out = pl.pallas_call(
        fc_l2norm_kernel,
        out_shape=jax.ShapeDtypeStruct((m_pad, e), jnp.float32),
        grid=(m_pad // tm,),
        in_specs=[pl.BlockSpec((tm, d), lambda i: (i, 0)),
                  pl.BlockSpec((d, e), lambda i: (0, 0)),
                  pl.BlockSpec((1, e), lambda i: (0, 0))],
        out_specs=pl.BlockSpec((tm, e), lambda i: (i, 0)),
        compiler_params=pltpu.CompilerParams(
            dimension_semantics=("parallel",), vmem_limit_bytes=vmem),
        cost_estimate=pl.CostEstimate(
            flops=int(2 * m_pad * d * e + 4 * m_pad * e), transcendentals=int(m_pad),
            bytes_accessed=int(_nbytes((m_pad, d), x2d.dtype) + _nbytes((d, e), w.dtype)
                               + _nbytes((m_pad, e), jnp.float32))),
    )(x_p, w, b)
    return out if m_pad == m else out[:m]


def linear(x2d, w, b, *, row_tile=512, out_dtype=jnp.float32):
    m, k = x2d.shape
    n = w.shape[1]
    tm, m_pad = _row_tiling(m, row_tile)
    x_p = x2d if m_pad == m else jnp.pad(x2d, ((0, m_pad - m), (0, 0)))
    vmem = _vmem_limit(_nbytes((tm, k), x2d.dtype) + _nbytes((k, n), w.dtype)
                       + _nbytes((1, n), b.dtype) + _nbytes((tm, n), out_dtype),
                       _nbytes((tm, n), jnp.float32))
    out = pl.pallas_call(
        linear_kernel,
        out_shape=jax.ShapeDtypeStruct((m_pad, n), out_dtype),
        grid=(m_pad // tm,),
        in_specs=[pl.BlockSpec((tm, k), lambda i: (i, 0)),
                  pl.BlockSpec((k, n), lambda i: (0, 0)),
                  pl.BlockSpec((1, n), lambda i: (0, 0))],
        out_specs=pl.BlockSpec((tm, n), lambda i: (i, 0)),
        compiler_params=pltpu.CompilerParams(
            dimension_semantics=("parallel",), vmem_limit_bytes=vmem),
        cost_estimate=pl.CostEstimate(
            flops=int(2 * m_pad * k * n), transcendentals=0,
            bytes_accessed=int(_nbytes((m_pad, k), x2d.dtype) + _nbytes((k, n), w.dtype)
                               + _nbytes((m_pad, n), out_dtype))),
    )(x_p, w, b)
    return out if m_pad == m else out[:m]


def gcn_stack(v, w3, b3, ww, bw, bns, bnb, *, batch_rows=512):
    b, n, e = v.shape
    n_layers = w3.shape[0]
    bb = _batch_tile(b, n, batch_rows)

    block_bytes = (2 * _nbytes((bb, n, e), jnp.float32)              # v in + out
                   + _nbytes((1, e, 3 * e), w3.dtype) + _nbytes((1, e, e), ww.dtype)
                   + 4 * _nbytes((1, 1, 3 * e), jnp.float32))
    interm_bytes = (_nbytes((bb * n, 3 * e), jnp.float32)            # proj
                    + 3 * _nbytes((bb, n, e), jnp.float32)           # g / th / ph
                    + _nbytes((bb, n, n), jnp.float32)               # R
                    + 2 * _nbytes((bb, n, e), jnp.float32))          # y, wy
    vmem = _vmem_limit(block_bytes, interm_bytes)

    flops = int(b * n_layers * (8 * n * e * e + 4 * n * n * e))
    bytes_accessed = int(2 * _nbytes((b, n, e), jnp.float32)
                         + n_layers * (_nbytes((e, 3 * e), w3.dtype)
                                       + _nbytes((e, e), ww.dtype) + 6 * e * 4))
    return pl.pallas_call(
        gcn_stack_kernel,
        out_shape=jax.ShapeDtypeStruct((b, n, e), jnp.float32),
        grid=(b // bb, n_layers),
        in_specs=[pl.BlockSpec((bb, n, e), lambda i, l: (i, 0, 0)),
                  pl.BlockSpec((1, e, 3 * e), lambda i, l: (l, 0, 0)),
                  pl.BlockSpec((1, 1, 3 * e), lambda i, l: (l, 0, 0)),
                  pl.BlockSpec((1, e, e), lambda i, l: (l, 0, 0)),
                  pl.BlockSpec((1, 1, e), lambda i, l: (l, 0, 0)),
                  pl.BlockSpec((1, 1, e), lambda i, l: (l, 0, 0)),
                  pl.BlockSpec((1, 1, e), lambda i, l: (l, 0, 0))],
        out_specs=pl.BlockSpec((bb, n, e), lambda i, l: (i, 0, 0)),
        compiler_params=pltpu.CompilerParams(
            dimension_semantics=("parallel", "arbitrary"), vmem_limit_bytes=vmem),
        cost_estimate=pl.CostEstimate(flops=flops, transcendentals=int(b * n),
                                      bytes_accessed=bytes_accessed),
    )(v, w3, b3, ww, bw, bns, bnb)


def gru_recurrence(xp, whh3, bhh3, *, time_tile=8, batch_block=None):
    b, t, e3 = xp.shape
    e = e3 // 3
    tb = _time_tile(t, time_tile)
    bb = batch_block if batch_block is not None else _gru_batch_block(b)
    vmem = _vmem_limit(_nbytes((bb, tb, e3), xp.dtype) + _nbytes((e, e3), whh3.dtype)
                       + _nbytes((1, e3), bhh3.dtype) + _nbytes((bb, e), jnp.float32),
                       _nbytes((bb, e), jnp.float32) + _nbytes((bb, e3), jnp.float32))
    return pl.pallas_call(
        gru_block_kernel,
        out_shape=jax.ShapeDtypeStruct((b, e), jnp.float32),
        grid=(b // bb, t // tb),
        in_specs=[pl.BlockSpec((bb, tb, e3), lambda i, s: (i, s, 0)),
                  pl.BlockSpec((e, e3), lambda i, s: (0, 0)),
                  pl.BlockSpec((1, e3), lambda i, s: (0, 0))],
        out_specs=pl.BlockSpec((bb, e), lambda i, s: (i, 0)),
        scratch_shapes=[pltpu.VMEM((bb, e), jnp.float32)],
        compiler_params=pltpu.CompilerParams(
            dimension_semantics=("parallel", "arbitrary"), vmem_limit_bytes=vmem),
        cost_estimate=pl.CostEstimate(
            flops=int(t * (2 * b * e * 3 * e + 12 * b * e)),
            transcendentals=int(3 * t * b * e),
            bytes_accessed=int(_nbytes((b, t, e3), xp.dtype)
                               + _nbytes((e, e3), whh3.dtype)
                               + _nbytes((b, e), jnp.float32))),
    )(xp, whh3, bhh3)


def gcn_visual_reasoning_forward(images, p, *, row_tile=None, gcn_batch_rows=None,
                                 gru_time_tile=8):
    """Pallas implementation of GCNVisualReasoning.forward.

    Returns (features (B, E), GCN_img_emd (B, N, E)).
    """
    b, n, d = images.shape
    e = p['fc_w'].shape[1]

    # generation-aware defaults: larger tiles when 128 MiB VMEM is available
    big_vmem = _vmem_cap() >= (100 << 20)
    if row_tile is None:
        row_tile = 1024 if big_vmem else 512
    if gcn_batch_rows is None:
        gcn_batch_rows = 512 if big_vmem else 256

    # fc + l2norm (data_name != 'f30k_precomp' path)
    fc_emb = fc_l2norm(images.reshape(b * n, d), p['fc_w'], p['fc_b'],
                       row_tile=row_tile).reshape(b, n, e)

    # 4 stacked Rs_GCN layers + final l2norm, fused (activation resident in VMEM)
    gcn_emb = gcn_stack(fc_emb, p['w3'], p['b3'], p['ww'], p['bw'],
                        p['bns'], p['bnb'], batch_rows=gcn_batch_rows)

    # GRU: input projection for all timesteps as one tiled GEMM (batch-major,
    # no transpose; stored in the compute dtype), then a time-blocked
    # recurrence kernel streaming (bb, TB, 3E) blocks.
    xp = linear(gcn_emb.reshape(b * n, e), p['wih3'], p['bih3'],
                row_tile=row_tile, out_dtype=p['wih3'].dtype).reshape(b, n, 3 * e)
    features = gru_recurrence(xp, p['whh3'], p['bhh3'], time_tile=gru_time_tile)
    return features, gcn_emb


# ----------------------------------------------------------------------------
# Parameter init, packing, and pure-JAX reference
# ----------------------------------------------------------------------------

def init_params(key, img_dim, embed_size):
    e = embed_size
    keys = iter(jax.random.split(key, 64))

    def u(shape, scale):
        return scale * jax.random.uniform(next(keys), shape, jnp.float32, -1.0, 1.0)

    r = (6.0 / (img_dim + e)) ** 0.5                   # Xavier range of the torch init
    params = {'fc_w': u((img_dim, e), r),              # == torch fc.weight.T
              'fc_b': jnp.zeros((1, e), jnp.float32)}  # torch init fills bias with 0

    gcn_layers = []
    for _ in range(4):
        gcn_layers.append({
            'wg': u((e, e), 0.2), 'bg': u((1, e), 0.1),
            'wth': u((e, e), 0.2), 'bth': u((1, e), 0.1),
            'wph': u((e, e), 0.2), 'bph': u((1, e), 0.1),
            'ww': u((e, e), 0.2), 'bw': u((1, e), 0.1),
            # eval-mode BatchNorm1d folded: scale = gamma/sqrt(var+eps), shift = beta - mean*scale
            'bn_scale': 1.0 + u((1, e), 0.1),
            'bn_shift': u((1, e), 0.1),
        })
    params['gcn'] = gcn_layers

    s = 1.0 / (e ** 0.5)                               # torch GRU default init range
    params['gru_wih'] = u((3, e, e), s)                # gate order (r, z, n)
    params['gru_whh'] = u((3, e, e), s)
    params['gru_bih'] = u((3, 1, e), s)
    params['gru_bhh'] = u((3, 1, e), s)
    return params


def prepare_params(params, n_nodes, compute_dtype=jnp.bfloat16):
    """Pack weights for the fused kernels.

    * g/theta/phi 1x1 convs are concatenated into one (E, 3E) matrix per layer;
      the 1/N scaling of R is folded into the theta columns.
    * GRU gate weights are concatenated to (E, 3E), gate order (r, z, n).
    * Matmul weights are cast to `compute_dtype` (bf16 default: MXU throughput
      and halved HBM/VMEM traffic on every generation); biases / BN affines
      stay f32 and so do all elementwise epilogues.
    """
    cd = compute_dtype
    inv_n = 1.0 / float(n_nodes)
    w3, b3, ww, bw, bns, bnb = [], [], [], [], [], []
    for p in params['gcn']:
        w3.append(jnp.concatenate([p['wg'], p['wth'] * inv_n, p['wph']], axis=1))
        b3.append(jnp.concatenate([p['bg'], p['bth'] * inv_n, p['bph']], axis=1))
        ww.append(p['ww']); bw.append(p['bw'])
        bns.append(p['bn_scale']); bnb.append(p['bn_shift'])
    return {
        'fc_w': params['fc_w'].astype(cd),
        'fc_b': params['fc_b'],
        'w3': jnp.stack(w3).astype(cd),                # (L, E, 3E) [g | theta/N | phi]
        'b3': jnp.stack(b3),                           # (L, 1, 3E)
        'ww': jnp.stack(ww).astype(cd),                # (L, E, E)
        'bw': jnp.stack(bw),                           # (L, 1, E)
        'bns': jnp.stack(bns), 'bnb': jnp.stack(bnb),  # (L, 1, E)
        'wih3': jnp.concatenate([params['gru_wih'][0], params['gru_wih'][1],
                                 params['gru_wih'][2]], axis=1).astype(cd),   # (E, 3E)
        'bih3': jnp.concatenate([params['gru_bih'][0], params['gru_bih'][1],
                                 params['gru_bih'][2]], axis=1),              # (1, 3E)
        'whh3': jnp.concatenate([params['gru_whh'][0], params['gru_whh'][1],
                                 params['gru_whh'][2]], axis=1).astype(cd),   # (E, 3E)
        'bhh3': jnp.concatenate([params['gru_bhh'][0], params['gru_bhh'][1],
                                 params['gru_bhh'][2]], axis=1),              # (1, 3E)
    }


def reference_forward(images, params):
    b, n_nodes, _ = images.shape

    def l2n(x):
        return x / jnp.sqrt(jnp.sum(x * x, axis=-1, keepdims=True))

    x = l2n(images @ params['fc_w'] + params['fc_b'][0])
    for p in params['gcn']:
        g = x @ p['wg'] + p['bg'][0]
        th = x @ p['wth'] + p['bth'][0]
        ph = x @ p['wph'] + p['bph'][0]
        R = jnp.einsum('bne,bme->bnm', th, ph) / n_nodes
        y = jnp.einsum('bnm,bme->bne', R, g)
        wy = (y @ p['ww'] + p['bw'][0]) * p['bn_scale'][0] + p['bn_shift'][0]
        x = wy + x
    gcn_emb = l2n(x)

    e = params['fc_w'].shape[1]
    h = jnp.zeros((b, e), jnp.float32)
    for t in range(n_nodes):
        xt = gcn_emb[:, t, :]
        r = jax.nn.sigmoid(xt @ params['gru_wih'][0] + params['gru_bih'][0]
                           + h @ params['gru_whh'][0] + params['gru_bhh'][0])
        z = jax.nn.sigmoid(xt @ params['gru_wih'][1] + params['gru_bih'][1]
                           + h @ params['gru_whh'][1] + params['gru_bhh'][1])
        nn_ = jnp.tanh(xt @ params['gru_wih'][2] + params['gru_bih'][2]
                       + r * (h @ params['gru_whh'][2] + params['gru_bhh'][2]))
        h = (1.0 - z) * nn_ + z * h
    return l2n(h), gcn_emb


# ----------------------------------------------------------------------------

if __name__ == "__main__":
    B, N, D, E = 4, 32, 256, 128     # batch, regions (img_len), img_dim, embed_size
    key = jax.random.PRNGKey(0)
    kx, kp = jax.random.split(key)
    images = jax.random.normal(kx, (B, N, D), jnp.float32)
    params = init_params(kp, D, E)

    ref_f, ref_g = reference_forward(images, params)

    # --- f32 path (checked tightly against the pure-JAX reference) ---
    # Small tiles exercise the multi-block grids at this toy size; at
    # production sizes the generation-aware defaults (512-1024 rows) apply.
    prepped32 = prepare_params(params, N, jnp.float32)
    fwd32 = jax.jit(lambda x, p: gcn_visual_reasoning_forward(
        x, p, row_tile=64, gcn_batch_rows=64, gru_time_tile=8))
    features, gcn_emb = fwd32(images, prepped32)
    features = jax.block_until_ready(features)
    gcn_emb = jax.block_until_ready(gcn_emb)
    assert features.shape == (B, E) and gcn_emb.shape == (B, N, E)
    assert bool(jnp.all(jnp.isfinite(features))) and bool(jnp.all(jnp.isfinite(gcn_emb)))
    assert jnp.allclose(features, ref_f, atol=1e-2, rtol=1e-2)
    assert jnp.allclose(gcn_emb, ref_g, atol=1e-2, rtol=1e-2)

    # --- bf16 matmul-operand path (f32 accumulation) — the default prepped
    # form; halves weight/xp HBM+VMEM traffic and feeds the MXU at full rate. ---
    prepped16 = prepare_params(params, N)            # bf16 default
    fwd16 = jax.jit(lambda x, p: gcn_visual_reasoning_forward(
        x, p, row_tile=64, gcn_batch_rows=64, gru_time_tile=8))
    f16, g16 = fwd16(images, prepped16)
    f16 = jax.block_until_ready(f16)
    g16 = jax.block_until_ready(g16)
    assert bool(jnp.all(jnp.isfinite(f16))) and bool(jnp.all(jnp.isfinite(g16)))
    assert jnp.allclose(f16, ref_f, atol=1e-1, rtol=1e-1)
    assert jnp.allclose(g16, ref_g, atol=1e-1, rtol=1e-1)

    print("KERNEL_OK")
</pallas_src>

<mosaic_0001>
module attributes {stable_mosaic.version = 11 : i64} {
  func.func @fc_l2norm_kernel(%arg0: i32, %arg1: memref<64x256xf32, #tpu.memory_space<vmem>>, %arg2: memref<256x128xf32, #tpu.memory_space<vmem>>, %arg3: memref<1x128xf32, #tpu.memory_space<vmem>>, %arg4: memref<64x128xf32, #tpu.memory_space<vmem>>) attributes {dimension_semantics = [#tpu.dimension_semantics<parallel>], iteration_bounds = array<i64: 2>, scalar_prefetch = 0 : i64, scratch_operands = 0 : i64, tpu.core_type = #tpu.core_type<tc>, window_params = [{transform_indices = @transform_0, window_bounds = array<i64: 64, 256>}, {pipeline_mode = #tpu.pipeline_mode<synchronous>, transform_indices = @transform_1, window_bounds = array<i64: 256, 128>}, {pipeline_mode = #tpu.pipeline_mode<synchronous>, transform_indices = @transform_2, window_bounds = array<i64: 1, 128>}, {transform_indices = @transform_3, window_bounds = array<i64: 64, 128>}]} {
    %c0 = arith.constant 0 : index
    %c0_0 = arith.constant 0 : index
    %0 = vector.load %arg1[%c0, %c0_0] : memref<64x256xf32, #tpu.memory_space<vmem>>, vector<64x256xf32>
    %c0_1 = arith.constant 0 : index
    %c0_2 = arith.constant 0 : index
    %1 = vector.load %arg2[%c0_1, %c0_2] : memref<256x128xf32, #tpu.memory_space<vmem>>, vector<256x128xf32>
    %cst = arith.constant dense<0.000000e+00> : vector<64x128xf32>
    %2 = tpu.matmul %0, %1, %cst {dimension_numbers = #tpu.dot_dimension_numbers<[1], [0], [0], [1], [0, 0, 1, 1], [], []>} : vector<64x256xf32>, vector<256x128xf32>, vector<64x128xf32> -> vector<64x128xf32>
    %c0_3 = arith.constant 0 : index
    %c0_4 = arith.constant 0 : index
    %3 = vector.load %arg3[%c0_3, %c0_4] : memref<1x128xf32, #tpu.memory_space<vmem>>, vector<1x128xf32>
    %4 = vector.broadcast %3 : vector<1x128xf32> to vector<64x128xf32>
    %5 = arith.addf %2, %4 : vector<64x128xf32>
    %6 = arith.mulf %5, %5 : vector<64x128xf32>
    %cst_5 = arith.constant dense<0.000000e+00> : vector<64xf32>
    %7 = vector.multi_reduction <add>, %6, %cst_5 [1] : vector<64x128xf32> to vector<64xf32>
    %8 = vector.shape_cast %7 : vector<64xf32> to vector<64x1xf32>
    %9 = math.rsqrt %8 : vector<64x1xf32>
    %10 = vector.broadcast %9 : vector<64x1xf32> to vector<64x128xf32>
    %11 = arith.mulf %5, %10 : vector<64x128xf32>
    %c0_6 = arith.constant 0 : index
    %c0_7 = arith.constant 0 : index
    %12 = vector.load %arg4[%c0_6, %c0_7] : memref<64x128xf32, #tpu.memory_space<vmem>>, vector<64x128xf32>
    tpu.vector_store %arg4[%c0_6, %c0_7], %11 {strides = array<i32>} : memref<64x128xf32, #tpu.memory_space<vmem>>, vector<64x128xf32>,
    return
  }
  func.func @transform_0(%arg0: i32) -> (i32, i32) {
    %c0_i32 = arith.constant 0 : i32
    %c0_i32_0 = arith.constant 0 : i32
    return %arg0, %c0_i32 : i32, i32
  }
  func.func @transform_1(%arg0: i32) -> (i32, i32) {
    %c0_i32 = arith.constant 0 : i32
    %c0_i32_0 = arith.constant 0 : i32
    %c0_i32_1 = arith.constant 0 : i32
    return %c0_i32, %c0_i32_0 : i32, i32
  }
  func.func @transform_2(%arg0: i32) -> (i32, i32) {
    %c0_i32 = arith.constant 0 : i32
    %c0_i32_0 = arith.constant 0 : i32
    %c0_i32_1 = arith.constant 0 : i32
    return %c0_i32, %c0_i32_0 : i32, i32
  }
  func.func @transform_3(%arg0: i32) -> (i32, i32) {
    %c0_i32 = arith.constant 0 : i32
    %c0_i32_0 = arith.constant 0 : i32
    return %arg0, %c0_i32 : i32, i32
  }
}

module attributes {stable_mosaic.version = 11 : i64} {
  func.func @linear_kernel(%arg0: i32, %arg1: memref<64x128xf32, #tpu.memory_space<vmem>>, %arg2: memref<128x384xf32, #tpu.memory_space<vmem>>, %arg3: memref<1x384xf32, #tpu.memory_space<vmem>>, %arg4: memref<64x384xf32, #tpu.memory_space<vmem>>) attributes {dimension_semantics = [#tpu.dimension_semantics<parallel>], iteration_bounds = array<i64: 2>, scalar_prefetch = 0 : i64, scratch_operands = 0 : i64, tpu.core_type = #tpu.core_type<tc>, window_params = [{transform_indices = @transform_0, window_bounds = array<i64: 64, 128>}, {pipeline_mode = #tpu.pipeline_mode<synchronous>, transform_indices = @transform_1, window_bounds = array<i64: 128, 384>}, {pipeline_mode = #tpu.pipeline_mode<synchronous>, transform_indices = @transform_2, window_bounds = array<i64: 1, 384>}, {transform_indices = @transform_3, window_bounds = array<i64: 64, 384>}]} {
    %c0 = arith.constant 0 : index
    %c0_0 = arith.constant 0 : index
    %0 = vector.load %arg1[%c0, %c0_0] : memref<64x128xf32, #tpu.memory_space<vmem>>, vector<64x128xf32>
    %c0_1 = arith.constant 0 : index
    %c0_2 = arith.constant 0 : index
    %1 = vector.load %arg2[%c0_1, %c0_2] : memref<128x384xf32, #tpu.memory_space<vmem>>, vector<128x384xf32>
    %cst = arith.constant dense<0.000000e+00> : vector<64x384xf32>
    %2 = tpu.matmul %0, %1, %cst {dimension_numbers = #tpu.dot_dimension_numbers<[1], [0], [0], [1], [0, 0, 1, 1], [], []>} : vector<64x128xf32>, vector<128x384xf32>, vector<64x384xf32> -> vector<64x384xf32>
    %c0_3 = arith.constant 0 : index
    %c0_4 = arith.constant 0 : index
    %3 = vector.load %arg3[%c0_3, %c0_4] : memref<1x384xf32, #tpu.memory_space<vmem>>, vector<1x384xf32>
    %4 = vector.broadcast %3 : vector<1x384xf32> to vector<64x384xf32>
    %5 = arith.addf %2, %4 : vector<64x384xf32>
    %c0_5 = arith.constant 0 : index
    %c0_6 = arith.constant 0 : index
    %6 = vector.load %arg4[%c0_5, %c0_6] : memref<64x384xf32, #tpu.memory_space<vmem>>, vector<64x384xf32>
    tpu.vector_store %arg4[%c0_5, %c0_6], %5 {strides = array<i32>} : memref<64x384xf32, #tpu.memory_space<vmem>>, vector<64x384xf32>,
    return
  }
  func.func @transform_0(%arg0: i32) -> (i32, i32) {
    %c0_i32 = arith.constant 0 : i32
    %c0_i32_0 = arith.constant 0 : i32
    return %arg0, %c0_i32 : i32, i32
  }
  func.func @transform_1(%arg0: i32) -> (i32, i32) {
    %c0_i32 = arith.constant 0 : i32
    %c0_i32_0 = arith.constant 0 : i32
    %c0_i32_1 = arith.constant 0 : i32
    return %c0_i32, %c0_i32_0 : i32, i32
  }
  func.func @transform_2(%arg0: i32) -> (i32, i32) {
    %c0_i32 = arith.constant 0 : i32
    %c0_i32_0 = arith.constant 0 : i32
    %c0_i32_1 = arith.constant 0 : i32
    return %c0_i32, %c0_i32_0 : i32, i32
  }
  func.func @transform_3(%arg0: i32) -> (i32, i32) {
    %c0_i32 = arith.constant 0 : i32
    %c0_i32_0 = arith.constant 0 : i32
    return %arg0, %c0_i32 : i32, i32
  }
}

module attributes {stable_mosaic.version = 11 : i64} {
  func.func @gcn_stack_kernel(%arg0: i32, %arg1: i32, %arg2: memref<2x32x128xf32, #tpu.memory_space<vmem>>, %arg3: memref<1x128x384xf32, #tpu.memory_space<vmem>>, %arg4: memref<1x1x384xf32, #tpu.memory_space<vmem>>, %arg5: memref<1x128x128xf32, #tpu.memory_space<vmem>>, %arg6: memref<1x1x128xf32, #tpu.memory_space<vmem>>, %arg7: memref<1x1x128xf32, #tpu.memory_space<vmem>>, %arg8: memref<1x1x128xf32, #tpu.memory_space<vmem>>, %arg9: memref<2x32x128xf32, #tpu.memory_space<vmem>>) attributes {dimension_semantics = [#tpu.dimension_semantics<parallel>, #tpu.dimension_semantics<arbitrary>], iteration_bounds = array<i64: 2, 4>, scalar_prefetch = 0 : i64, scratch_operands = 0 : i64, tpu.core_type = #tpu.core_type<tc>, window_params = [{transform_indices = @transform_0, window_bounds = array<i64: 2, 32, 128>}, {transform_indices = @transform_1, window_bounds = array<i64: 1, 128, 384>}, {transform_indices = @transform_2, window_bounds = array<i64: 1, 1, 384>}, {transform_indices = @transform_3, window_bounds = array<i64: 1, 128, 128>}, {transform_indices = @transform_4, window_bounds = array<i64: 1, 1, 128>}, {transform_indices = @transform_5, window_bounds = array<i64: 1, 1, 128>}, {transform_indices = @transform_6, window_bounds = array<i64: 1, 1, 128>}, {transform_indices = @transform_7, window_bounds = array<i64: 2, 32, 128>}]} {
    %c0_i32 = arith.constant 0 : i32
    %0 = arith.cmpi eq, %arg1, %c0_i32 : i32
    %1 = arith.extui %0 : i1 to i32
    %c0_i32_0 = arith.constant 0 : i32
    %2 = arith.cmpi ne, %1, %c0_i32_0 : i32
    scf.if %2 {
      %c0_28 = arith.constant 0 : index
      %c0_29 = arith.constant 0 : index
      %c0_30 = arith.constant 0 : index
      %42 = vector.load %arg2[%c0_28, %c0_29, %c0_30] : memref<2x32x128xf32, #tpu.memory_space<vmem>>, vector<2x32x128xf32>
      %c0_31 = arith.constant 0 : index
      %c0_32 = arith.constant 0 : index
      %c0_33 = arith.constant 0 : index
      %43 = vector.load %arg9[%c0_31, %c0_32, %c0_33] : memref<2x32x128xf32, #tpu.memory_space<vmem>>, vector<2x32x128xf32>
      tpu.vector_store %arg9[%c0_31, %c0_32, %c0_33], %42 {strides = array<i32>} : memref<2x32x128xf32, #tpu.memory_space<vmem>>, vector<2x32x128xf32>,
    } else {
    }
    %c0 = arith.constant 0 : index
    %c0_1 = arith.constant 0 : index
    %c0_2 = arith.constant 0 : index
    %3 = vector.load %arg9[%c0, %c0_1, %c0_2] : memref<2x32x128xf32, #tpu.memory_space<vmem>>, vector<2x32x128xf32>
    %4 = vector.shape_cast %3 : vector<2x32x128xf32> to vector<64x128xf32>
    %c0_3 = arith.constant 0 : index
    %c0_4 = arith.constant 0 : index
    %c0_5 = arith.constant 0 : index
    %5 = vector.load %arg3[%c0_3, %c0_4, %c0_5] : memref<1x128x384xf32, #tpu.memory_space<vmem>>, vector<1x128x384xf32>
    %6 = vector.shape_cast %5 : vector<1x128x384xf32> to vector<128x384xf32>
    %cst = arith.constant dense<0.000000e+00> : vector<64x384xf32>
    %7 = tpu.matmul %4, %6, %cst {dimension_numbers = #tpu.dot_dimension_numbers<[1], [0], [0], [1], [0, 0, 1, 1], [], []>} : vector<64x128xf32>, vector<128x384xf32>, vector<64x384xf32> -> vector<64x384xf32>
    %c0_6 = arith.constant 0 : index
    %c0_7 = arith.constant 0 : index
    %c0_8 = arith.constant 0 : index
    %8 = vector.load %arg4[%c0_6, %c0_7, %c0_8] : memref<1x1x384xf32, #tpu.memory_space<vmem>>, vector<1x1x384xf32>
    %9 = vector.shape_cast %8 : vector<1x1x384xf32> to vector<1x384xf32>
    %10 = vector.broadcast %9 : vector<1x384xf32> to vector<64x384xf32>
    %11 = arith.addf %7, %10 : vector<64x384xf32>
    %12 = vector.extract_strided_slice %11 {offsets = [0, 0], sizes = [64, 128], strides = [1, 1]} : vector<64x384xf32> to vector<64x128xf32>
    %13 = vector.shape_cast %12 : vector<64x128xf32> to vector<2x32x128xf32>
    %14 = vector.extract_strided_slice %11 {offsets = [0, 128], sizes = [64, 128], strides = [1, 1]} : vector<64x384xf32> to vector<64x128xf32>
    %15 = vector.shape_cast %14 : vector<64x128xf32> to vector<2x32x128xf32>
    %16 = vector.extract_strided_slice %11 {offsets = [0, 256], sizes = [64, 128], strides = [1, 1]} : vector<64x384xf32> to vector<64x128xf32>
    %17 = vector.shape_cast %16 : vector<64x128xf32> to vector<2x32x128xf32>
    "tpu.trace_start"() <{level = 10 : i32, message = "bne,bme->bnm"}> : () -> ()
    %cst_9 = arith.constant dense<0.000000e+00> : vector<2x32x32xf32>
    %18 = tpu.matmul %15, %17, %cst_9 {dimension_numbers = #tpu.dot_dimension_numbers<[2], [2], [1], [1], [0, 0, 0, 1, 1, 1], [0], [0]>} : vector<2x32x128xf32>, vector<2x32x128xf32>, vector<2x32x32xf32> -> vector<2x32x32xf32>
    "tpu.trace_stop"() : () -> ()
    "tpu.trace_start"() <{level = 10 : i32, message = "bnm,bme->bne"}> : () -> ()
    %cst_10 = arith.constant dense<0.000000e+00> : vector<2x32x128xf32>
    %19 = tpu.matmul %18, %13, %cst_10 {dimension_numbers = #tpu.dot_dimension_numbers<[2], [1], [1], [2], [0, 0, 0, 1, 1, 2], [0], [0]>} : vector<2x32x32xf32>, vector<2x32x128xf32>, vector<2x32x128xf32> -> vector<2x32x128xf32>
    "tpu.trace_stop"() : () -> ()
    %20 = vector.shape_cast %19 : vector<2x32x128xf32> to vector<64x128xf32>
    %c0_11 = arith.constant 0 : index
    %c0_12 = arith.constant 0 : index
    %c0_13 = arith.constant 0 : index
    %21 = vector.load %arg5[%c0_11, %c0_12, %c0_13] : memref<1x128x128xf32, #tpu.memory_space<vmem>>, vector<1x128x128xf32>
    %22 = vector.shape_cast %21 : vector<1x128x128xf32> to vector<128x128xf32>
    %cst_14 = arith.constant dense<0.000000e+00> : vector<64x128xf32>
    %23 = tpu.matmul %20, %22, %cst_14 {dimension_numbers = #tpu.dot_dimension_numbers<[1], [0], [0], [1], [0, 0, 1, 1], [], []>} : vector<64x128xf32>, vector<128x128xf32>, vector<64x128xf32> -> vector<64x128xf32>
    %c0_15 = arith.constant 0 : index
    %c0_16 = arith.constant 0 : index
    %c0_17 = arith.constant 0 : index
    %24 = vector.load %arg6[%c0_15, %c0_16, %c0_17] : memref<1x1x128xf32, #tpu.memory_space<vmem>>, vector<1x1x128xf32>
    %25 = vector.shape_cast %24 : vector<1x1x128xf32> to vector<1x128xf32>
    %26 = vector.broadcast %25 : vector<1x128xf32> to vector<64x128xf32>
    %27 = arith.addf %23, %26 : vector<64x128xf32>
    %c0_18 = arith.constant 0 : index
    %c0_19 = arith.constant 0 : index
    %c0_20 = arith.constant 0 : index
    %28 = vector.load %arg7[%c0_18, %c0_19, %c0_20] : memref<1x1x128xf32, #tpu.memory_space<vmem>>, vector<1x1x128xf32>
    %29 = vector.shape_cast %28 : vector<1x1x128xf32> to vector<1x128xf32>
    %30 = vector.broadcast %29 : vector<1x128xf32> to vector<64x128xf32>
    %31 = arith.mulf %27, %30 : vector<64x128xf32>
    %c0_21 = arith.constant 0 : index
    %c0_22 = arith.constant 0 : index
    %c0_23 = arith.constant 0 : index
    %32 = vector.load %arg8[%c0_21, %c0_22, %c0_23] : memref<1x1x128xf32, #tpu.memory_space<vmem>>, vector<1x1x128xf32>
    %33 = vector.shape_cast %32 : vector<1x1x128xf32> to vector<1x128xf32>
    %34 = vector.broadcast %33 : vector<1x128xf32> to vector<64x128xf32>
    %35 = arith.addf %31, %34 : vector<64x128xf32>
    %36 = vector.shape_cast %35 : vector<64x128xf32> to vector<2x32x128xf32>
    %37 = arith.addf %36, %3 : vector<2x32x128xf32>
    %c0_24 = arith.constant 0 : index
    %c0_25 = arith.constant 0 : index
    %c0_26 = arith.constant 0 : index
    %38 = vector.load %arg9[%c0_24, %c0_25, %c0_26] : memref<2x32x128xf32, #tpu.memory_space<vmem>>, vector<2x32x128xf32>
    tpu.vector_store %arg9[%c0_24, %c0_25, %c0_26], %37 {strides = array<i32>} : memref<2x32x128xf32, #tpu.memory_space<vmem>>, vector<2x32x128xf32>,
    %c3_i32 = arith.constant 3 : i32
    %39 = arith.cmpi eq, %arg1, %c3_i32 : i32
    %40 = arith.extui %39 : i1 to i32
    %c0_i32_27 = arith.constant 0 : i32
    %41 = arith.cmpi ne, %40, %c0_i32_27 : i32
    scf.if %41 {
      %42 = arith.mulf %37, %37 : vector<2x32x128xf32>
      %cst_28 = arith.constant dense<0.000000e+00> : vector<2x32xf32>
      %43 = vector.multi_reduction <add>, %42, %cst_28 [2] : vector<2x32x128xf32> to vector<2x32xf32>
      %44 = vector.shape_cast %43 : vector<2x32xf32> to vector<2x32x1xf32>
      %45 = math.rsqrt %44 : vector<2x32x1xf32>
      %46 = vector.broadcast %45 : vector<2x32x1xf32> to vector<2x32x128xf32>
      %47 = arith.mulf %37, %46 : vector<2x32x128xf32>
      %c0_29 = arith.constant 0 : index
      %c0_30 = arith.constant 0 : index
      %c0_31 = arith.constant 0 : index
      %48 = vector.load %arg9[%c0_29, %c0_30, %c0_31] : memref<2x32x128xf32, #tpu.memory_space<vmem>>, vector<2x32x128xf32>
      tpu.vector_store %arg9[%c0_29, %c0_30, %c0_31], %47 {strides = array<i32>} : memref<2x32x128xf32, #tpu.memory_space<vmem>>, vector<2x32x128xf32>,
    } else {
    }
    return
  }
  func.func @transform_0(%arg0: i32, %arg1: i32) -> (i32, i32, i32) {
    %c0_i32 = arith.constant 0 : i32
    %c0_i32_0 = arith.constant 0 : i32
    %c0_i32_1 = arith.constant 0 : i32
    return %arg0, %c0_i32, %c0_i32_0 : i32, i32, i32
  }
  func.func @transform_1(%arg0: i32, %arg1: i32) -> (i32, i32, i32) {
    %c0_i32 = arith.constant 0 : i32
    %c0_i32_0 = arith.constant 0 : i32
    %c0_i32_1 = arith.constant 0 : i32
    return %arg1, %c0_i32, %c0_i32_0 : i32, i32, i32
  }
  func.func @transform_2(%arg0: i32, %arg1: i32) -> (i32, i32, i32) {
    %c0_i32 = arith.constant 0 : i32
    %c0_i32_0 = arith.constant 0 : i32
    %c0_i32_1 = arith.constant 0 : i32
    return %arg1, %c0_i32, %c0_i32_0 : i32, i32, i32
  }
  func.func @transform_3(%arg0: i32, %arg1: i32) -> (i32, i32, i32) {
    %c0_i32 = arith.constant 0 : i32
    %c0_i32_0 = arith.constant 0 : i32
    %c0_i32_1 = arith.constant 0 : i32
    return %arg1, %c0_i32, %c0_i32_0 : i32, i32, i32
  }
  func.func @transform_4(%arg0: i32, %arg1: i32) -> (i32, i32, i32) {
    %c0_i32 = arith.constant 0 : i32
    %c0_i32_0 = arith.constant 0 : i32
    %c0_i32_1 = arith.constant 0 : i32
    return %arg1, %c0_i32, %c0_i32_0 : i32, i32, i32
  }
  func.func @transform_5(%arg0: i32, %arg1: i32) -> (i32, i32, i32) {
    %c0_i32 = arith.constant 0 : i32
    %c0_i32_0 = arith.constant 0 : i32
    %c0_i32_1 = arith.constant 0 : i32
    return %arg1, %c0_i32, %c0_i32_0 : i32, i32, i32
  }
  func.func @transform_6(%arg0: i32, %arg1: i32) -> (i32, i32, i32) {
    %c0_i32 = arith.constant 0 : i32
    %c0_i32_0 = arith.constant 0 : i32
    %c0_i32_1 = arith.constant 0 : i32
    return %arg1, %c0_i32, %c0_i32_0 : i32, i32, i32
  }
  func.func @transform_7(%arg0: i32, %arg1: i32) -> (i32, i32, i32) {
    %c0_i32 = arith.constant 0 : i32
    %c0_i32_0 = arith.constant 0 : i32
    %c0_i32_1 = arith.constant 0 : i32
    return %arg0, %c0_i32, %c0_i32_0 : i32, i32, i32
  }
}

module attributes {stable_mosaic.version = 11 : i64} {
  func.func @gru_block_kernel(%arg0: i32, %arg1: i32, %arg2: memref<4x8x384xf32, #tpu.memory_space<vmem>>, %arg3: memref<128x384xf32, #tpu.memory_space<vmem>>, %arg4: memref<1x384xf32, #tpu.memory_space<vmem>>, %arg5: memref<4x128xf32, #tpu.memory_space<vmem>>, %arg6: memref<4x128xf32, #tpu.memory_space<vmem>>) attributes {dimension_semantics = [#tpu.dimension_semantics<parallel>, #tpu.dimension_semantics<arbitrary>], iteration_bounds = array<i64: 1, 4>, scalar_prefetch = 0 : i64, scratch_operands = 1 : i64, tpu.core_type = #tpu.core_type<tc>, window_params = [{transform_indices = @transform_0, window_bounds = array<i64: 4, 8, 384>}, {pipeline_mode = #tpu.pipeline_mode<synchronous>, transform_indices = @transform_1, window_bounds = array<i64: 128, 384>}, {pipeline_mode = #tpu.pipeline_mode<synchronous>, transform_indices = @transform_2, window_bounds = array<i64: 1, 384>}, {transform_indices = @transform_3, window_bounds = array<i64: 4, 128>}]} {
    %c0_i32 = arith.constant 0 : i32
    %0 = arith.cmpi eq, %arg1, %c0_i32 : i32
    %1 = arith.extui %0 : i1 to i32
    %c0_i32_0 = arith.constant 0 : i32
    %2 = arith.cmpi ne, %1, %c0_i32_0 : i32
    scf.if %2 {
      %cst_85 = arith.constant 0.000000e+00 : f32
      %272 = vector.broadcast %cst_85 : f32 to vector<4x128xf32>
      %c0_86 = arith.constant 0 : index
      %c0_87 = arith.constant 0 : index
      %273 = vector.load %arg6[%c0_86, %c0_87] : memref<4x128xf32, #tpu.memory_space<vmem>>, vector<4x128xf32>
      tpu.vector_store %arg6[%c0_86, %c0_87], %272 {strides = array<i32>} : memref<4x128xf32, #tpu.memory_space<vmem>>, vector<4x128xf32>,
    } else {
    }
    %c0 = arith.constant 0 : index
    %c0_1 = arith.constant 0 : index
    %3 = vector.load %arg6[%c0, %c0_1] : memref<4x128xf32, #tpu.memory_space<vmem>>, vector<4x128xf32>
    %c0_2 = arith.constant 0 : index
    %c0_3 = arith.constant 0 : index
    %c0_4 = arith.constant 0 : index
    %4 = vector.load %arg2[%c0_2, %c0_3, %c0_4] : memref<4x8x384xf32, #tpu.memory_space<vmem>>, vector<4x1x384xf32>
    %5 = vector.shape_cast %4 : vector<4x1x384xf32> to vector<4x384xf32>
    %c0_5 = arith.constant 0 : index
    %c0_6 = arith.constant 0 : index
    %6 = vector.load %arg3[%c0_5, %c0_6] : memref<128x384xf32, #tpu.memory_space<vmem>>, vector<128x384xf32>
    %cst = arith.constant dense<0.000000e+00> : vector<4x384xf32>
    %7 = tpu.matmul %3, %6, %cst {dimension_numbers = #tpu.dot_dimension_numbers<[1], [0], [0], [1], [0, 0, 1, 1], [], []>} : vector<4x128xf32>, vector<128x384xf32>, vector<4x384xf32> -> vector<4x384xf32>
    %c0_7 = arith.constant 0 : index
    %c0_8 = arith.constant 0 : index
    %8 = vector.load %arg4[%c0_7, %c0_8] : memref<1x384xf32, #tpu.memory_space<vmem>>, vector<1x384xf32>
    %9 = vector.broadcast %8 : vector<1x384xf32> to vector<4x384xf32>
    %10 = arith.addf %7, %9 : vector<4x384xf32>
    %11 = vector.extract_strided_slice %5 {offsets = [0, 0], sizes = [4, 128], strides = [1, 1]} : vector<4x384xf32> to vector<4x128xf32>
    %12 = vector.extract_strided_slice %10 {offsets = [0, 0], sizes = [4, 128], strides = [1, 1]} : vector<4x384xf32> to vector<4x128xf32>
    %13 = arith.addf %11, %12 : vector<4x128xf32>
    %14 = arith.negf %13 : vector<4x128xf32>
    %15 = math.exp %14 : vector<4x128xf32>
    %cst_9 = arith.constant 1.000000e+00 : f32
    %16 = vector.broadcast %cst_9 : f32 to vector<4x128xf32>
    %17 = arith.addf %16, %15 : vector<4x128xf32>
    %18 = arith.divf %16, %17 : vector<4x128xf32>
    %19 = vector.extract_strided_slice %5 {offsets = [0, 128], sizes = [4, 128], strides = [1, 1]} : vector<4x384xf32> to vector<4x128xf32>
    %20 = vector.extract_strided_slice %10 {offsets = [0, 128], sizes = [4, 128], strides = [1, 1]} : vector<4x384xf32> to vector<4x128xf32>
    %21 = arith.addf %19, %20 : vector<4x128xf32>
    %22 = arith.negf %21 : vector<4x128xf32>
    %23 = math.exp %22 : vector<4x128xf32>
    %cst_10 = arith.constant 1.000000e+00 : f32
    %24 = vector.broadcast %cst_10 : f32 to vector<4x128xf32>
    %25 = arith.addf %24, %23 : vector<4x128xf32>
    %26 = arith.divf %24, %25 : vector<4x128xf32>
    %27 = vector.extract_strided_slice %5 {offsets = [0, 256], sizes = [4, 128], strides = [1, 1]} : vector<4x384xf32> to vector<4x128xf32>
    %28 = vector.extract_strided_slice %10 {offsets = [0, 256], sizes = [4, 128], strides = [1, 1]} : vector<4x384xf32> to vector<4x128xf32>
    %29 = arith.mulf %18, %28 : vector<4x128xf32>
    %30 = arith.addf %27, %29 : vector<4x128xf32>
    %31 = math.tanh %30 : vector<4x128xf32>
    %cst_11 = arith.constant 1.000000e+00 : f32
    %32 = vector.broadcast %cst_11 : f32 to vector<4x128xf32>
    %33 = arith.subf %32, %26 : vector<4x128xf32>
    %34 = arith.mulf %33, %31 : vector<4x128xf32>
    %35 = arith.mulf %26, %3 : vector<4x128xf32>
    %36 = arith.addf %34, %35 : vector<4x128xf32>
    %c0_12 = arith.constant 0 : index
    %c1 = arith.constant 1 : index
    %c0_13 = arith.constant 0 : index
    %37 = vector.load %arg2[%c0_12, %c1, %c0_13] : memref<4x8x384xf32, #tpu.memory_space<vmem>>, vector<4x1x384xf32>
    %38 = vector.shape_cast %37 : vector<4x1x384xf32> to vector<4x384xf32>
    %c0_14 = arith.constant 0 : index
    %c0_15 = arith.constant 0 : index
    %39 = vector.load %arg3[%c0_14, %c0_15] : memref<128x384xf32, #tpu.memory_space<vmem>>, vector<128x384xf32>
    %cst_16 = arith.constant dense<0.000000e+00> : vector<4x384xf32>
    %40 = tpu.matmul %36, %39, %cst_16 {dimension_numbers = #tpu.dot_dimension_numbers<[1], [0], [0], [1], [0, 0, 1, 1], [], []>} : vector<4x128xf32>, vector<128x384xf32>, vector<4x384xf32> -> vector<4x384xf32>
    %c0_17 = arith.constant 0 : index
    %c0_18 = arith.constant 0 : index
    %41 = vector.load %arg4[%c0_17, %c0_18] : memref<1x384xf32, #tpu.memory_space<vmem>>, vector<1x384xf32>
    %42 = vector.broadcast %41 : vector<1x384xf32> to vector<4x384xf32>
    %43 = arith.addf %40, %42 : vector<4x384xf32>
    %44 = vector.extract_strided_slice %38 {offsets = [0, 0], sizes = [4, 128], strides = [1, 1]} : vector<4x384xf32> to vector<4x128xf32>
    %45 = vector.extract_strided_slice %43 {offsets = [0, 0], sizes = [4, 128], strides = [1, 1]} : vector<4x384xf32> to vector<4x128xf32>
    %46 = arith.addf %44, %45 : vector<4x128xf32>
    %47 = arith.negf %46 : vector<4x128xf32>
    %48 = math.exp %47 : vector<4x128xf32>
    %cst_19 = arith.constant 1.000000e+00 : f32
    %49 = vector.broadcast %cst_19 : f32 to vector<4x128xf32>
    %50 = arith.addf %49, %48 : vector<4x128xf32>
    %51 = arith.divf %49, %50 : vector<4x128xf32>
    %52 = vector.extract_strided_slice %38 {offsets = [0, 128], sizes = [4, 128], strides = [1, 1]} : vector<4x384xf32> to vector<4x128xf32>
    %53 = vector.extract_strided_slice %43 {offsets = [0, 128], sizes = [4, 128], strides = [1, 1]} : vector<4x384xf32> to vector<4x128xf32>
    %54 = arith.addf %52, %53 : vector<4x128xf32>
    %55 = arith.negf %54 : vector<4x128xf32>
    %56 = math.exp %55 : vector<4x128xf32>
    %cst_20 = arith.constant 1.000000e+00 : f32
    %57 = vector.broadcast %cst_20 : f32 to vector<4x128xf32>
    %58 = arith.addf %57, %56 : vector<4x128xf32>
    %59 = arith.divf %57, %58 : vector<4x128xf32>
    %60 = vector.extract_strided_slice %38 {offsets = [0, 256], sizes = [4, 128], strides = [1, 1]} : vector<4x384xf32> to vector<4x128xf32>
    %61 = vector.extract_strided_slice %43 {offsets = [0, 256], sizes = [4, 128], strides = [1, 1]} : vector<4x384xf32> to vector<4x128xf32>
    %62 = arith.mulf %51, %61 : vector<4x128xf32>
    %63 = arith.addf %60, %62 : vector<4x128xf32>
    %64 = math.tanh %63 : vector<4x128xf32>
    %cst_21 = arith.constant 1.000000e+00 : f32
    %65 = vector.broadcast %cst_21 : f32 to vector<4x128xf32>
    %66 = arith.subf %65, %59 : vector<4x128xf32>
    %67 = arith.mulf %66, %64 : vector<4x128xf32>
    %68 = arith.mulf %59, %36 : vector<4x128xf32>
    %69 = arith.addf %67, %68 : vector<4x128xf32>
    %c0_22 = arith.constant 0 : index
    %c2 = arith.constant 2 : index
    %c0_23 = arith.constant 0 : index
    %70 = vector.load %arg2[%c0_22, %c2, %c0_23] : memref<4x8x384xf32, #tpu.memory_space<vmem>>, vector<4x1x384xf32>
    %71 = vector.shape_cast %70 : vector<4x1x384xf32> to vector<4x384xf32>
    %c0_24 = arith.constant 0 : index
    %c0_25 = arith.constant 0 : index
    %72 = vector.load %arg3[%c0_24, %c0_25] : memref<128x384xf32, #tpu.memory_space<vmem>>, vector<128x384xf32>
    %cst_26 = arith.constant dense<0.000000e+00> : vector<4x384xf32>
    %73 = tpu.matmul %69, %72, %cst_26 {dimension_numbers = #tpu.dot_dimension_numbers<[1], [0], [0], [1], [0, 0, 1, 1], [], []>} : vector<4x128xf32>, vector<128x384xf32>, vector<4x384xf32> -> vector<4x384xf32>
    %c0_27 = arith.constant 0 : index
    %c0_28 = arith.constant 0 : index
    %74 = vector.load %arg4[%c0_27, %c0_28] : memref<1x384xf32, #tpu.memory_space<vmem>>, vector<1x384xf32>
    %75 = vector.broadcast %74 : vector<1x384xf32> to vector<4x384xf32>
    %76 = arith.addf %73, %75 : vector<4x384xf32>
    %77 = vector.extract_strided_slice %71 {offsets = [0, 0], sizes = [4, 128], strides = [1, 1]} : vector<4x384xf32> to vector<4x128xf32>
    %78 = vector.extract_strided_slice %76 {offsets = [0, 0], sizes = [4, 128], strides = [1, 1]} : vector<4x384xf32> to vector<4x128xf32>
    %79 = arith.addf %77, %78 : vector<4x128xf32>
    %80 = arith.negf %79 : vector<4x128xf32>
    %81 = math.exp %80 : vector<4x128xf32>
    %cst_29 = arith.constant 1.000000e+00 : f32
    %82 = vector.broadcast %cst_29 : f32 to vector<4x128xf32>
    %83 = arith.addf %82, %81 : vector<4x128xf32>
    %84 = arith.divf %82, %83 : vector<4x128xf32>
    %85 = vector.extract_strided_slice %71 {offsets = [0, 128], sizes = [4, 128], strides = [1, 1]} : vector<4x384xf32> to vector<4x128xf32>
    %86 = vector.extract_strided_slice %76 {offsets = [0, 128], sizes = [4, 128], strides = [1, 1]} : vector<4x384xf32> to vector<4x128xf32>
    %87 = arith.addf %85, %86 : vector<4x128xf32>
    %88 = arith.negf %87 : vector<4x128xf32>
    %89 = math.exp %88 : vector<4x128xf32>
    %cst_30 = arith.constant 1.000000e+00 : f32
    %90 = vector.broadcast %cst_30 : f32 to vector<4x128xf32>
    %91 = arith.addf %90, %89 : vector<4x128xf32>
    %92 = arith.divf %90, %91 : vector<4x128xf32>
    %93 = vector.extract_strided_slice %71 {offsets = [0, 256], sizes = [4, 128], strides = [1, 1]} : vector<4x384xf32> to vector<4x128xf32>
    %94 = vector.extract_strided_slice %76 {offsets = [0, 256], sizes = [4, 128], strides = [1, 1]} : vector<4x384xf32> to vector<4x128xf32>
    %95 = arith.mulf %84, %94 : vector<4x128xf32>
    %96 = arith.addf %93, %95 : vector<4x128xf32>
    %97 = math.tanh %96 : vector<4x128xf32>
    %cst_31 = arith.constant 1.000000e+00 : f32
    %98 = vector.broadcast %cst_31 : f32 to vector<4x128xf32>
    %99 = arith.subf %98, %92 : vector<4x128xf32>
    %100 = arith.mulf %99, %97 : vector<4x128xf32>
    %101 = arith.mulf %92, %69 : vector<4x128xf32>
    %102 = arith.addf %100, %101 : vector<4x128xf32>
    %c0_32 = arith.constant 0 : index
    %c3 = arith.constant 3 : index
    %c0_33 = arith.constant 0 : index
    %103 = vector.load %arg2[%c0_32, %c3, %c0_33] : memref<4x8x384xf32, #tpu.memory_space<vmem>>, vector<4x1x384xf32>
    %104 = vector.shape_cast %103 : vector<4x1x384xf32> to vector<4x384xf32>
    %c0_34 = arith.constant 0 : index
    %c0_35 = arith.constant 0 : index
    %105 = vector.load %arg3[%c0_34, %c0_35] : memref<128x384xf32, #tpu.memory_space<vmem>>, vector<128x384xf32>
    %cst_36 = arith.constant dense<0.000000e+00> : vector<4x384xf32>
    %106 = tpu.matmul %102, %105, %cst_36 {dimension_numbers = #tpu.dot_dimension_numbers<[1], [0], [0], [1], [0, 0, 1, 1], [], []>} : vector<4x128xf32>, vector<128x384xf32>, vector<4x384xf32> -> vector<4x384xf32>
    %c0_37 = arith.constant 0 : index
    %c0_38 = arith.constant 0 : index
    %107 = vector.load %arg4[%c0_37, %c0_38] : memref<1x384xf32, #tpu.memory_space<vmem>>, vector<1x384xf32>
    %108 = vector.broadcast %107 : vector<1x384xf32> to vector<4x384xf32>
    %109 = arith.addf %106, %108 : vector<4x384xf32>
    %110 = vector.extract_strided_slice %104 {offsets = [0, 0], sizes = [4, 128], strides = [1, 1]} : vector<4x384xf32> to vector<4x128xf32>
    %111 = vector.extract_strided_slice %109 {offsets = [0, 0], sizes = [4, 128], strides = [1, 1]} : vector<4x384xf32> to vector<4x128xf32>
    %112 = arith.addf %110, %111 : vector<4x128xf32>
    %113 = arith.negf %112 : vector<4x128xf32>
    %114 = math.exp %113 : vector<4x128xf32>
    %cst_39 = arith.constant 1.000000e+00 : f32
    %115 = vector.broadcast %cst_39 : f32 to vector<4x128xf32>
    %116 = arith.addf %115, %114 : vector<4x128xf32>
    %117 = arith.divf %115, %116 : vector<4x128xf32>
    %118 = vector.extract_strided_slice %104 {offsets = [0, 128], sizes = [4, 128], strides = [1, 1]} : vector<4x384xf32> to vector<4x128xf32>
    %119 = vector.extract_strided_slice %109 {offsets = [0, 128], sizes = [4, 128], strides = [1, 1]} : vector<4x384xf32> to vector<4x128xf32>
    %120 = arith.addf %118, %119 : vector<4x128xf32>
    %121 = arith.negf %120 : vector<4x128xf32>
    %122 = math.exp %121 : vector<4x128xf32>
    %cst_40 = arith.constant 1.000000e+00 : f32
    %123 = vector.broadcast %cst_40 : f32 to vector<4x128xf32>
    %124 = arith.addf %123, %122 : vector<4x128xf32>
    %125 = arith.divf %123, %124 : vector<4x128xf32>
    %126 = vector.extract_strided_slice %104 {offsets = [0, 256], sizes = [4, 128], strides = [1, 1]} : vector<4x384xf32> to vector<4x128xf32>
    %127 = vector.extract_strided_slice %109 {offsets = [0, 256], sizes = [4, 128], strides = [1, 1]} : vector<4x384xf32> to vector<4x128xf32>
    %128 = arith.mulf %117, %127 : vector<4x128xf32>
    %129 = arith.addf %126, %128 : vector<4x128xf32>
    %130 = math.tanh %129 : vector<4x128xf32>
    %cst_41 = arith.constant 1.000000e+00 : f32
    %131 = vector.broadcast %cst_41 : f32 to vector<4x128xf32>
    %132 = arith.subf %131, %125 : vector<4x128xf32>
    %133 = arith.mulf %132, %130 : vector<4x128xf32>
    %134 = arith.mulf %125, %102 : vector<4x128xf32>
    %135 = arith.addf %133, %134 : vector<4x128xf32>
    %c0_42 = arith.constant 0 : index
    %c4 = arith.constant 4 : index
    %c0_43 = arith.constant 0 : index
    %136 = vector.load %arg2[%c0_42, %c4, %c0_43] : memref<4x8x384xf32, #tpu.memory_space<vmem>>, vector<4x1x384xf32>
    %137 = vector.shape_cast %136 : vector<4x1x384xf32> to vector<4x384xf32>
    %c0_44 = arith.constant 0 : index
    %c0_45 = arith.constant 0 : index
    %138 = vector.load %arg3[%c0_44, %c0_45] : memref<128x384xf32, #tpu.memory_space<vmem>>, vector<128x384xf32>
    %cst_46 = arith.constant dense<0.000000e+00> : vector<4x384xf32>
    %139 = tpu.matmul %135, %138, %cst_46 {dimension_numbers = #tpu.dot_dimension_numbers<[1], [0], [0], [1], [0, 0, 1, 1], [], []>} : vector<4x128xf32>, vector<128x384xf32>, vector<4x384xf32> -> vector<4x384xf32>
    %c0_47 = arith.constant 0 : index
    %c0_48 = arith.constant 0 : index
    %140 = vector.load %arg4[%c0_47, %c0_48] : memref<1x384xf32, #tpu.memory_space<vmem>>, vector<1x384xf32>
    %141 = vector.broadcast %140 : vector<1x384xf32> to vector<4x384xf32>
    %142 = arith.addf %139, %141 : vector<4x384xf32>
    %143 = vector.extract_strided_slice %137 {offsets = [0, 0], sizes = [4, 128], strides = [1, 1]} : vector<4x384xf32> to vector<4x128xf32>
    %144 = vector.extract_strided_slice %142 {offsets = [0, 0], sizes = [4, 128], strides = [1, 1]} : vector<4x384xf32> to vector<4x128xf32>
    %145 = arith.addf %143, %144 : vector<4x128xf32>
    %146 = arith.negf %145 : vector<4x128xf32>
    %147 = math.exp %146 : vector<4x128xf32>
    %cst_49 = arith.constant 1.000000e+00 : f32
    %148 = vector.broadcast %cst_49 : f32 to vector<4x128xf32>
    %149 = arith.addf %148, %147 : vector<4x128xf32>
    %150 = arith.divf %148, %149 : vector<4x128xf32>
    %151 = vector.extract_strided_slice %137 {offsets = [0, 128], sizes = [4, 128], strides = [1, 1]} : vector<4x384xf32> to vector<4x128xf32>
    %152 = vector.extract_strided_slice %142 {offsets = [0, 128], sizes = [4, 128], strides = [1, 1]} : vector<4x384xf32> to vector<4x128xf32>
    %153 = arith.addf %151, %152 : vector<4x128xf32>
    %154 = arith.negf %153 : vector<4x128xf32>
    %155 = math.exp %154 : vector<4x128xf32>
    %cst_50 = arith.constant 1.000000e+00 : f32
    %156 = vector.broadcast %cst_50 : f32 to vector<4x128xf32>
    %157 = arith.addf %156, %155 : vector<4x128xf32>
    %158 = arith.divf %156, %157 : vector<4x128xf32>
    %159 = vector.extract_strided_slice %137 {offsets = [0, 256], sizes = [4, 128], strides = [1, 1]} : vector<4x384xf32> to vector<4x128xf32>
    %160 = vector.extract_strided_slice %142 {offsets = [0, 256], sizes = [4, 128], strides = [1, 1]} : vector<4x384xf32> to vector<4x128xf32>
    %161 = arith.mulf %150, %160 : vector<4x128xf32>
    %162 = arith.addf %159, %161 : vector<4x128xf32>
    %163 = math.tanh %162 : vector<4x128xf32>
    %cst_51 = arith.constant 1.000000e+00 : f32
    %164 = vector.broadcast %cst_51 : f32 to vector<4x128xf32>
    %165 = arith.subf %164, %158 : vector<4x128xf32>
    %166 = arith.mulf %165, %163 : vector<4x128xf32>
    %167 = arith.mulf %158, %135 : vector<4x128xf32>
    %168 = arith.addf %166, %167 : vector<4x128xf32>
    %c0_52 = arith.constant 0 : index
    %c5 = arith.constant 5 : index
    %c0_53 = arith.constant 0 : index
    %169 = vector.load %arg2[%c0_52, %c5, %c0_53] : memref<4x8x384xf32, #tpu.memory_space<vmem>>, vector<4x1x384xf32>
    %170 = vector.shape_cast %169 : vector<4x1x384xf32> to vector<4x384xf32>
    %c0_54 = arith.constant 0 : index
    %c0_55 = arith.constant 0 : index
    %171 = vector.load %arg3[%c0_54, %c0_55] : memref<128x384xf32, #tpu.memory_space<vmem>>, vector<128x384xf32>
    %cst_56 = arith.constant dense<0.000000e+00> : vector<4x384xf32>
    %172 = tpu.matmul %168, %171, %cst_56 {dimension_numbers = #tpu.dot_dimension_numbers<[1], [0], [0], [1], [0, 0, 1, 1], [], []>} : vector<4x128xf32>, vector<128x384xf32>, vector<4x384xf32> -> vector<4x384xf32>
    %c0_57 = arith.constant 0 : index
    %c0_58 = arith.constant 0 : index
    %173 = vector.load %arg4[%c0_57, %c0_58] : memref<1x384xf32, #tpu.memory_space<vmem>>, vector<1x384xf32>
    %174 = vector.broadcast %173 : vector<1x384xf32> to vector<4x384xf32>
    %175 = arith.addf %172, %174 : vector<4x384xf32>
    %176 = vector.extract_strided_slice %170 {offsets = [0, 0], sizes = [4, 128], strides = [1, 1]} : vector<4x384xf32> to vector<4x128xf32>
    %177 = vector.extract_strided_slice %175 {offsets = [0, 0], sizes = [4, 128], strides = [1, 1]} : vector<4x384xf32> to vector<4x128xf32>
    %178 = arith.addf %176, %177 : vector<4x128xf32>
    %179 = arith.negf %178 : vector<4x128xf32>
    %180 = math.exp %179 : vector<4x128xf32>
    %cst_59 = arith.constant 1.000000e+00 : f32
    %181 = vector.broadcast %cst_59 : f32 to vector<4x128xf32>
    %182 = arith.addf %181, %180 : vector<4x128xf32>
    %183 = arith.divf %181, %182 : vector<4x128xf32>
    %184 = vector.extract_strided_slice %170 {offsets = [0, 128], sizes = [4, 128], strides = [1, 1]} : vector<4x384xf32> to vector<4x128xf32>
    %185 = vector.extract_strided_slice %175 {offsets = [0, 128], sizes = [4, 128], strides = [1, 1]} : vector<4x384xf32> to vector<4x128xf32>
    %186 = arith.addf %184, %185 : vector<4x128xf32>
    %187 = arith.negf %186 : vector<4x128xf32>
    %188 = math.exp %187 : vector<4x128xf32>
    %cst_60 = arith.constant 1.000000e+00 : f32
    %189 = vector.broadcast %cst_60 : f32 to vector<4x128xf32>
    %190 = arith.addf %189, %188 : vector<4x128xf32>
    %191 = arith.divf %189, %190 : vector<4x128xf32>
    %192 = vector.extract_strided_slice %170 {offsets = [0, 256], sizes = [4, 128], strides = [1, 1]} : vector<4x384xf32> to vector<4x128xf32>
    %193 = vector.extract_strided_slice %175 {offsets = [0, 256], sizes = [4, 128], strides = [1, 1]} : vector<4x384xf32> to vector<4x128xf32>
    %194 = arith.mulf %183, %193 : vector<4x128xf32>
    %195 = arith.addf %192, %194 : vector<4x128xf32>
    %196 = math.tanh %195 : vector<4x128xf32>
    %cst_61 = arith.constant 1.000000e+00 : f32
    %197 = vector.broadcast %cst_61 : f32 to vector<4x128xf32>
    %198 = arith.subf %197, %191 : vector<4x128xf32>
    %199 = arith.mulf %198, %196 : vector<4x128xf32>
    %200 = arith.mulf %191, %168 : vector<4x128xf32>
    %201 = arith.addf %199, %200 : vector<4x128xf32>
    %c0_62 = arith.constant 0 : index
    %c6 = arith.constant 6 : index
    %c0_63 = arith.constant 0 : index
    %202 = vector.load %arg2[%c0_62, %c6, %c0_63] : memref<4x8x384xf32, #tpu.memory_space<vmem>>, vector<4x1x384xf32>
    %203 = vector.shape_cast %202 : vector<4x1x384xf32> to vector<4x384xf32>
    %c0_64 = arith.constant 0 : index
    %c0_65 = arith.constant 0 : index
    %204 = vector.load %arg3[%c0_64, %c0_65] : memref<128x384xf32, #tpu.memory_space<vmem>>, vector<128x384xf32>
    %cst_66 = arith.constant dense<0.000000e+00> : vector<4x384xf32>
    %205 = tpu.matmul %201, %204, %cst_66 {dimension_numbers = #tpu.dot_dimension_numbers<[1], [0], [0], [1], [0, 0, 1, 1], [], []>} : vector<4x128xf32>, vector<128x384xf32>, vector<4x384xf32> -> vector<4x384xf32>
    %c0_67 = arith.constant 0 : index
    %c0_68 = arith.constant 0 : index
    %206 = vector.load %arg4[%c0_67, %c0_68] : memref<1x384xf32, #tpu.memory_space<vmem>>, vector<1x384xf32>
    %207 = vector.broadcast %206 : vector<1x384xf32> to vector<4x384xf32>
    %208 = arith.addf %205, %207 : vector<4x384xf32>
    %209 = vector.extract_strided_slice %203 {offsets = [0, 0], sizes = [4, 128], strides = [1, 1]} : vector<4x384xf32> to vector<4x128xf32>
    %210 = vector.extract_strided_slice %208 {offsets = [0, 0], sizes = [4, 128], strides = [1, 1]} : vector<4x384xf32> to vector<4x128xf32>
    %211 = arith.addf %209, %210 : vector<4x128xf32>
    %212 = arith.negf %211 : vector<4x128xf32>
    %213 = math.exp %212 : vector<4x128xf32>
    %cst_69 = arith.constant 1.000000e+00 : f32
    %214 = vector.broadcast %cst_69 : f32 to vector<4x128xf32>
    %215 = arith.addf %214, %213 : vector<4x128xf32>
    %216 = arith.divf %214, %215 : vector<4x128xf32>
    %217 = vector.extract_strided_slice %203 {offsets = [0, 128], sizes = [4, 128], strides = [1, 1]} : vector<4x384xf32> to vector<4x128xf32>
    %218 = vector.extract_strided_slice %208 {offsets = [0, 128], sizes = [4, 128], strides = [1, 1]} : vector<4x384xf32> to vector<4x128xf32>
    %219 = arith.addf %217, %218 : vector<4x128xf32>
    %220 = arith.negf %219 : vector<4x128xf32>
    %221 = math.exp %220 : vector<4x128xf32>
    %cst_70 = arith.constant 1.000000e+00 : f32
    %222 = vector.broadcast %cst_70 : f32 to vector<4x128xf32>
    %223 = arith.addf %222, %221 : vector<4x128xf32>
    %224 = arith.divf %222, %223 : vector<4x128xf32>
    %225 = vector.extract_strided_slice %203 {offsets = [0, 256], sizes = [4, 128], strides = [1, 1]} : vector<4x384xf32> to vector<4x128xf32>
    %226 = vector.extract_strided_slice %208 {offsets = [0, 256], sizes = [4, 128], strides = [1, 1]} : vector<4x384xf32> to vector<4x128xf32>
    %227 = arith.mulf %216, %226 : vector<4x128xf32>
    %228 = arith.addf %225, %227 : vector<4x128xf32>
    %229 = math.tanh %228 : vector<4x128xf32>
    %cst_71 = arith.constant 1.000000e+00 : f32
    %230 = vector.broadcast %cst_71 : f32 to vector<4x128xf32>
    %231 = arith.subf %230, %224 : vector<4x128xf32>
    %232 = arith.mulf %231, %229 : vector<4x128xf32>
    %233 = arith.mulf %224, %201 : vector<4x128xf32>
    %234 = arith.addf %232, %233 : vector<4x128xf32>
    %c0_72 = arith.constant 0 : index
    %c7 = arith.constant 7 : index
    %c0_73 = arith.constant 0 : index
    %235 = vector.load %arg2[%c0_72, %c7, %c0_73] : memref<4x8x384xf32, #tpu.memory_space<vmem>>, vector<4x1x384xf32>
    %236 = vector.shape_cast %235 : vector<4x1x384xf32> to vector<4x384xf32>
    %c0_74 = arith.constant 0 : index
    %c0_75 = arith.constant 0 : index
    %237 = vector.load %arg3[%c0_74, %c0_75] : memref<128x384xf32, #tpu.memory_space<vmem>>, vector<128x384xf32>
    %cst_76 = arith.constant dense<0.000000e+00> : vector<4x384xf32>
    %238 = tpu.matmul %234, %237, %cst_76 {dimension_numbers = #tpu.dot_dimension_numbers<[1], [0], [0], [1], [0, 0, 1, 1], [], []>} : vector<4x128xf32>, vector<128x384xf32>, vector<4x384xf32> -> vector<4x384xf32>
    %c0_77 = arith.constant 0 : index
    %c0_78 = arith.constant 0 : index
    %239 = vector.load %arg4[%c0_77, %c0_78] : memref<1x384xf32, #tpu.memory_space<vmem>>, vector<1x384xf32>
    %240 = vector.broadcast %239 : vector<1x384xf32> to vector<4x384xf32>
    %241 = arith.addf %238, %240 : vector<4x384xf32>
    %242 = vector.extract_strided_slice %236 {offsets = [0, 0], sizes = [4, 128], strides = [1, 1]} : vector<4x384xf32> to vector<4x128xf32>
    %243 = vector.extract_strided_slice %241 {offsets = [0, 0], sizes = [4, 128], strides = [1, 1]} : vector<4x384xf32> to vector<4x128xf32>
    %244 = arith.addf %242, %243 : vector<4x128xf32>
    %245 = arith.negf %244 : vector<4x128xf32>
    %246 = math.exp %245 : vector<4x128xf32>
    %cst_79 = arith.constant 1.000000e+00 : f32
    %247 = vector.broadcast %cst_79 : f32 to vector<4x128xf32>
    %248 = arith.addf %247, %246 : vector<4x128xf32>
    %249 = arith.divf %247, %248 : vector<4x128xf32>
    %250 = vector.extract_strided_slice %236 {offsets = [0, 128], sizes = [4, 128], strides = [1, 1]} : vector<4x384xf32> to vector<4x128xf32>
    %251 = vector.extract_strided_slice %241 {offsets = [0, 128], sizes = [4, 128], strides = [1, 1]} : vector<4x384xf32> to vector<4x128xf32>
    %252 = arith.addf %250, %251 : vector<4x128xf32>
    %253 = arith.negf %252 : vector<4x128xf32>
    %254 = math.exp %253 : vector<4x128xf32>
    %cst_80 = arith.constant 1.000000e+00 : f32
    %255 = vector.broadcast %cst_80 : f32 to vector<4x128xf32>
    %256 = arith.addf %255, %254 : vector<4x128xf32>
    %257 = arith.divf %255, %256 : vector<4x128xf32>
    %258 = vector.extract_strided_slice %236 {offsets = [0, 256], sizes = [4, 128], strides = [1, 1]} : vector<4x384xf32> to vector<4x128xf32>
    %259 = vector.extract_strided_slice %241 {offsets = [0, 256], sizes = [4, 128], strides = [1, 1]} : vector<4x384xf32> to vector<4x128xf32>
    %260 = arith.mulf %249, %259 : vector<4x128xf32>
    %261 = arith.addf %258, %260 : vector<4x128xf32>
    %262 = math.tanh %261 : vector<4x128xf32>
    %cst_81 = arith.constant 1.000000e+00 : f32
    %263 = vector.broadcast %cst_81 : f32 to vector<4x128xf32>
    %264 = arith.subf %263, %257 : vector<4x128xf32>
    %265 = arith.mulf %264, %262 : vector<4x128xf32>
    %266 = arith.mulf %257, %234 : vector<4x128xf32>
    %267 = arith.addf %265, %266 : vector<4x128xf32>
    %c0_82 = arith.constant 0 : index
    %c0_83 = arith.constant 0 : index
    %268 = vector.load %arg6[%c0_82, %c0_83] : memref<4x128xf32, #tpu.memory_space<vmem>>, vector<4x128xf32>
    tpu.vector_store %arg6[%c0_82, %c0_83], %267 {strides = array<i32>} : memref<4x128xf32, #tpu.memory_space<vmem>>, vector<4x128xf32>,
    %c3_i32 = arith.constant 3 : i32
    %269 = arith.cmpi eq, %arg1, %c3_i32 : i32
    %270 = arith.extui %269 : i1 to i32
    %c0_i32_84 = arith.constant 0 : i32
    %271 = arith.cmpi ne, %270, %c0_i32_84 : i32
    scf.if %271 {
      %272 = arith.mulf %267, %267 : vector<4x128xf32>
      %cst_85 = arith.constant dense<0.000000e+00> : vector<4xf32>
      %273 = vector.multi_reduction <add>, %272, %cst_85 [1] : vector<4x128xf32> to vector<4xf32>
      %274 = vector.shape_cast %273 : vector<4xf32> to vector<4x1xf32>
      %275 = math.rsqrt %274 : vector<4x1xf32>
      %276 = vector.broadcast %275 : vector<4x1xf32> to vector<4x128xf32>
      %277 = arith.mulf %267, %276 : vector<4x128xf32>
      %c0_86 = arith.constant 0 : index
      %c0_87 = arith.constant 0 : index
      %278 = vector.load %arg5[%c0_86, %c0_87] : memref<4x128xf32, #tpu.memory_space<vmem>>, vector<4x128xf32>
      tpu.vector_store %arg5[%c0_86, %c0_87], %277 {strides = array<i32>} : memref<4x128xf32, #tpu.memory_space<vmem>>, vector<4x128xf32>,
    } else {
    }
    return
  }
  func.func @transform_0(%arg0: i32, %arg1: i32) -> (i32, i32, i32) {
    %c0_i32 = arith.constant 0 : i32
    %c0_i32_0 = arith.constant 0 : i32
    return %arg0, %arg1, %c0_i32 : i32, i32, i32
  }
  func.func @transform_1(%arg0: i32, %arg1: i32) -> (i32, i32) {
    %c0_i32 = arith.constant 0 : i32
    %c0_i32_0 = arith.constant 0 : i32
    %c0_i32_1 = arith.constant 0 : i32
    return %c0_i32, %c0_i32_0 : i32, i32
  }
  func.func @transform_2(%arg0: i32, %arg1: i32) -> (i32, i32) {
    %c0_i32 = arith.constant 0 : i32
    %c0_i32_0 = arith.constant 0 : i32
    %c0_i32_1 = arith.constant 0 : i32
    return %c0_i32, %c0_i32_0 : i32, i32
  }
  func.func @transform_3(%arg0: i32, %arg1: i32) -> (i32, i32) {
    %c0_i32 = arith.constant 0 : i32
    %c0_i32_0 = arith.constant 0 : i32
    return %arg0, %c0_i32 : i32, i32
  }
}

</mosaic_0001>

<bundles_post_ra>
// kernel: _lambda_.4
= control target key start
LH: loop header
LB: loop body
LE: loop exit
PB: predicated region body
PF: predicated region fallthrough
CT: control target
= control target key end

     0   :  { %8 = vsyncpa [#allocation3], 0  ;;  %s1075_s0 = inlined_call_operand.hbm [shape: f32[128,256], index: 0, kind: input, shape index: {}]   ;;  %s1076_s1 = inlined_call_operand.hbm [shape: f32[256,128], index: 1, kind: input, shape index: {}]   ;;  %s1077_s2 = inlined_call_operand.hbm [shape: f32[1,128], index: 2, kind: input, shape index: {}]   ;;  %s1078_s3 = inlined_call_operand.vmem [shape: f32[128,128], index: 3, kind: output, shape index: {}]  }
   0x1   :  { %10 = vsyncpa [#allocation3 + $0x1], 0 }
   0x2   :  { %11 = vsyncpa [#allocation5], 0  ;;  %s873_s12 = smov 0   ;;  %s875_s13 = smov 0  }
   0x3   :  { %s877_s14 = smov 0   ;;  %s879_s15 = smov 0  }
   0x4 LB: > { %s515_s16 = sadd.s32 4294967295, %s844_s15   ;;  %p37_p0 = scmp.ne.s32.totalorder %s836_s13, %s832_s12  ;;  %s844_s15 = sphi %s879_s15, %s1094_s15   ;;  %s840_s14 = sphi %s877_s14, %s1093_s14   ;;  %s836_s13 = sphi %s875_s13, %s1092_s13   ;;  %s832_s12 = sphi %s873_s12, %s1091_s12  }
   0x5   : > { %p895_p1 = scmp.eq.s32.totalorder %s515_s16, 0  ;;  %p517_p2 = scmp.ge.s32.totalorder %s844_s15, 1 }
   0x6   : > { %p116_p3 = scmp.lt.s32.totalorder %s844_s15, 3  ;;  %s846_s20 = smov [#allocation4]  }
   0x7   : > { %s1083_s17 = scalar_select %p895_p1, 1, 0 }
   0x8   : > { %p903_p4 = por %p895_p1, %p37_p0  ;;  %p907_p5 = pnand %p517_p2, %p116_p3 }
   0x9   : > { %s128_s21 = sshll.u32 %s846_s20, 4  ;;  %s847_s23 = smov [#allocation6]   ;;  %s129_s21 = int_to_ptr.vmem [resolvable:$true] %s128_s21 }
   0xa   : > { %s1084_s18 = scalar_select %p903_p4, 1, 0 }
   0xb   : > { %s1085_s19 = scalar_select %p907_p5, 1, 0 }
   0xc   : > { %p650_p6 = pneg %p907_p5  ;;  %s142_s24 = sshll.u32 %s847_s23, 4  ;;  %s919_s24 = int_to_ptr.vmem [resolvable:$true] %s142_s24 }
   0xd   : > { %s720_s27 = scalar_lea.hbm %s1076_s1, 4096 }
   0xe   : > { %p915_p7 = pnand %p650_p6, %p895_p1  ;;  %p721_p8 = scmp.ne.s32.totalorder %s1076_s1, %s720_s27 }
   0xf   : > { %p727_p12 = scmp.lt.u32.totalorder %s720_s27, %s1076_s1 }
  0x10   : > { %p722_p9 = pneg %p915_p7 }
  0x12   : > { %p723_p10 = pnand %p722_p9, %p721_p8 }
  0x14   : > { %p724_p11 = pneg %p723_p10 }
  0x16   : > { %p729_p13 = pnand %p727_p12, %p724_p11 }
  0x18   : > { %732 = shalt.err (!%p729_p13)
}
  0x19   : > { %s733_s5 = scalar_lea.vmem %s129_s21, 4096  ;;  %p741_p6 = scmp.lt.s32.totalorder %s129_s21, %s129_s21 }
  0x1a   : > { %p734_p0 = scmp.ne.s32.totalorder %s129_s21, %s733_s5  ;;  %p742_p1 = scmp.lt.s32.totalorder %s733_s5, %s733_s5 }
  0x1c   : > { %p736_p2 = pnand %p734_p0, %p722_p9  ;;  %p743_p4 = por %p742_p1, %p741_p6 }
  0x1e   : > { %p737_p3 = pneg %p736_p2 }
  0x20   : > { %p744_p5 = pnand %p743_p4, %p737_p3 }
  0x22   : > { %747 = shalt.err (!%p744_p5)
}
  0x23   : > { %s848_s6 = smov 128   ;;  %s849_s7 = smov 8  }
  0x24   : > { %653 = dma.hbm_to_vmem [thread:$0]  (!%p915_p7), %s1076_s1, 4096, %s129_s21, [#allocation5], %s848_s6, %s848_s6, %s849_s7  }
  0x25   : > { %s748_s12 = scalar_lea.hbm %s1077_s2, 16 }
  0x26   : > { %p749_p8 = scmp.ne.s32.totalorder %s1077_s2, %s748_s12  ;;  %p755_p5 = scmp.lt.u32.totalorder %s748_s12, %s1077_s2 }
  0x28   : > { %p751_p1 = pnand %p749_p8, %p722_p9 }
  0x2a   : > { %p752_p4 = pneg %p751_p1 }
  0x2c   : > { %p757_p10 = pnand %p755_p5, %p752_p4 }
  0x2e   : > { %760 = shalt.err (!%p757_p10)
}
  0x2f   : > { %s761_s21 = scalar_lea.vmem %s919_s24, 16  ;;  %s768_s27 = scalar_lea.vmem %s919_s24, 32 }
  0x30   : > { %p762_p11 = scmp.ne.s32.totalorder %s919_s24, %s761_s21  ;;  %p769_p0 = scmp.lt.s32.totalorder %s919_s24, %s919_s24 }
  0x31   : > { %p770_p2 = scmp.lt.s32.totalorder %s768_s27, %s761_s21 }
  0x32   : > { %p764_p12 = pnand %p762_p11, %p722_p9 }
  0x33   : > { %p771_p3 = por %p770_p2, %p769_p0 }
  0x34   : > { %p765_p13 = pneg %p764_p12 }
  0x36   : > { %p772_p6 = pnand %p771_p3, %p765_p13 }
  0x38   : > { %775 = shalt.err (!%p772_p6)
}
  0x39   : > { %656 = dma.hbm_to_vmem [thread:$0]  (!%p915_p7), %s1077_s2, 16, %s919_s24, [#allocation5]  }
  0x3a   : > { %s970_s30 = sadd.s32 1, %s844_s15   ;;  %s24_s4 = sadd.s32 1, %s840_s14 }
  0x3b   : > { %s21_s22 = ssub.s32 %s844_s15, %s970_s30  ;;  %p31_p9 = scmp.ne.s32.totalorder %s840_s14, %s836_s13 }
  0x3c   : > { %p22_p8 = scmp.eq.s32.totalorder %s21_s22, 0  ;;  %p32_p1 = scmp.eq.s32.totalorder %s844_s15, 0 }
  0x3d   : > { %p663_p4 = scmp.lt.s32.totalorder %s844_s15, 2  ;;  %s153_s5 = sand.u32 1, %s840_s14  }
  0x3e   : > { %s981_s6 = scalar_select %p22_p8, %s840_s14, %s24_s4  }
  0x3f   : > { %p33_p5 = por %p32_p1, %p31_p9  ;;  %s521_s7 = sshll.u32 %s153_s5, 7 }
  0x40   : > { %s535_s8 = sshll.u32 %s844_s15, 11  ;;  %s157_s24 = scalar_lea.vmem [#allocation2], %s521_s7 }
  0x41   : > { %s987_s11 = scalar_lea.hbm %s1075_s0, %s535_s8  ;;  %s165_s12 = sshll.u32 %s157_s24, 4  ;;  %s993_s12 = int_to_ptr.vmem [resolvable:$true] %s165_s12 }
  0x42   : > { %p989_p7 = pnand %p663_p4, %p33_p5  ;;  %s995_s23 = scalar_lea.sflag [#allocation3], %s153_s5 }
  0x43   : > { %s776_s25 = scalar_lea.hbm %s987_s11, 2048  ;;  %s781_s27 = scalar_lea.hbm %s1075_s0, 4096 }
  0x44   : > { %p777_p10 = scmp.ne.s32.totalorder %s987_s11, %s776_s25  ;;  %p778_p11 = pneg %p989_p7 }
  0x45   : > { %p782_p0 = scmp.lt.u32.totalorder %s987_s11, %s1075_s0  ;;  %p783_p2 = scmp.lt.u32.totalorder %s781_s27, %s776_s25 }
  0x46   : > { %p779_p12 = pnand %p778_p11, %p777_p10  ;;  %p785_p6 = scmp.lt.u32.totalorder %s776_s25, %s987_s11 }
  0x47   : > { %p784_p3 = por %p783_p2, %p782_p0 }
  0x48   : > { %p780_p13 = pneg %p779_p12 }
  0x49   : > { %p786_p9 = por %p785_p6, %p784_p3 }
  0x4b   : > { %p787_p8 = pnand %p786_p9, %p780_p13 }
  0x4d   : > { %790 = shalt.err (!%p787_p8)
}
  0x4e   : > { %s791_s4 = scalar_lea.vmem %s993_s12, 2048  ;;  %s850_s22 = smov [#allocation2]  }
  0x4f   : > { %p792_p1 = scmp.ne.s32.totalorder %s993_s12, %s791_s4  ;;  %s796_s5 = sshll.u32 %s850_s22, 4  ;;  %s797_s5 = int_to_ptr.vmem [resolvable:$false] %s796_s5 }
  0x50   : > { %s798_s7 = scalar_lea.vmem %s797_s5, 4096  ;;  %p799_p10 = scmp.lt.s32.totalorder %s993_s12, %s797_s5 }
  0x51   : > { %p794_p4 = pnand %p792_p1, %p778_p11  ;;  %p800_p12 = scmp.lt.s32.totalorder %s798_s7, %s791_s4 }
  0x53   : > { %p795_p5 = pneg %p794_p4  ;;  %p801_p0 = por %p800_p12, %p799_p10 }
  0x55   : > { %p802_p2 = pnand %p801_p0, %p795_p5 }
  0x57   : > { %805 = shalt.err (!%p802_p2)
}
  0x58   : > { %s851_s8 = smov 256   ;;  %s852_s9 = smov 16  }
  0x59   : > { %660 = dma.hbm_to_vmem [thread:$0]  (!%p989_p7), %s987_s11, 2048, %s993_s12, %s995_s23, %s851_s8, %s851_s8, %s852_s9  }
  0x5a   : > { %p1088_p11 = scmp.ne.s32.totalorder %s1085_s19, 0 }
  0x5b   : > { %s179_s10 = sand.u32 (!%p1088_p11), 1, %s836_s13   ;;  %p1089_p13 = scmp.ne.s32.totalorder (!%p1088_p11), %s1084_s18, 0 }
  0x5c   : > { %177 = sbr.rel (%p1088_p11) target bundleno = 529 (0x211), region = 32  ;;  %s526_s24 = sshll.u32 (!%p1088_p11), %s179_s10, 7 }
  0x5d   : > { %s180_s25 = scalar_lea.sflag (!%p1088_p11), [#allocation3], %s179_s10  ;;  %s1026_s26 = scalar_lea.vmem (!%p1088_p11), [#allocation2], %s526_s24 }
  0x63   : > { %823 = dma.done.wait (%p1089_p13), %s180_s25, 2048  }
  0x64   : > { %825 = vsyncadd (%p1089_p13), %s180_s25, 4294965248  ;;  %p1090_p3 = scmp.ne.s32.totalorder %s1083_s17, 0 }
  0x66   : > { %827 = dma.done.wait (%p1090_p3), [#allocation5], 4112  }
  0x67   : > { %829 = vsyncadd (%p1090_p3), [#allocation5], 4294963184  ;;  %v253_v0 = vld [vmem:[#allocation4 + $0x80] sm:$0xff]  ;;  %v254_v1 = vld [vmem:[#allocation4 + $0x88] sm:$0xff]  ;;  %s529_s17 = sshll.u32 %s515_s16, 3 }
  0x68   : > { %v237_v2 = vld [vmem:[#allocation4] sm:$0xff]  ;;  %v592_v3 = vpack.c.bf16 %v254_v1, %v253_v0  ;;  %v238_v4 = vld [vmem:[#allocation4 + $0x8] sm:$0xff]  ;;  %v255_v5 = vld [vmem:[#allocation4 + $0x90] sm:$0xff]  ;;  %p216_p7 = scmp.lt.s32.totalorder %s529_s17, 15 }
  0x69   : > { %v256_v6 = vld [vmem:[#allocation4 + $0x98] sm:$0xff]  ;;  %v594_v7 = vpack.c.bf16 %v238_v4, %v237_v2  ;;  %v239_v9 = vld [vmem:[#allocation4 + $0x10] sm:$0xff]  ;;  %v257_v11 = vld [vmem:[#allocation4 + $0xa0] sm:$0xff] }
  0x6a   : > { %v596_v8 = vpack.c.bf16 %v256_v6, %v255_v5  ;;  %v240_v10 = vld [vmem:[#allocation4 + $0x18] sm:$0xff]  ;;  %593 = vmatprep.subr.bf16.mxu0 %v592_v3  ;;  %624 = vmatprep.subr.bf16.mxu1 %v592_v3  ;;  %v258_v12 = vld [vmem:[#allocation4 + $0xa8] sm:$0xff]  ;;  %v241_v15 = vld [vmem:[#allocation4 + $0x20] sm:$0xff]  ;;  %s1096_s17 = smov (!%p216_p7, %s529_s17), 15 }
  0x6b   : > { %595 = vmatpush3.bf16.msra.mxu0 %v594_v7  ;;  %632 = vmatpush3.bf16.msra.mxu1 %v594_v7  ;;  %v598_v13 = vpack.c.bf16 %v240_v10, %v239_v9  ;;  %v600_v14 = vpack.c.bf16 %v258_v12, %v257_v11  ;;  %v242_v16 = vld [vmem:[#allocation4 + $0x28] sm:$0xff]  ;;  %v259_v17 = vld [vmem:[#allocation4 + $0xb0] sm:$0xff]  ;;  %v260_v18 = vld [vmem:[#allocation4 + $0xb8] sm:$0xff]  ;;  %s530_s18 = sshll.u32 %s1096_s17, 3 }
  0x6c   : > { %597 = vmatprep.subr.bf16.mxu0 %v596_v8  ;;  %625 = vmatprep.subr.bf16.mxu1 %v596_v8  ;;  %v602_v19 = vpack.c.bf16 %v242_v16, %v241_v15  ;;  %v604_v20 = vpack.c.bf16 %v260_v18, %v259_v17  ;;  %v243_v21 = vld [vmem:[#allocation4 + $0x30] sm:$0xff]  ;;  %v244_v22 = vld [vmem:[#allocation4 + $0x38] sm:$0xff]  ;;  %v261_v23 = vld [vmem:[#allocation4 + $0xc0] sm:$0xff]  ;;  %s219_s12 = scalar_lea.vmem %s1078_s3, %s530_s18 }
  0x6d   : > { %v262_v24 = vld [vmem:[#allocation4 + $0xc8] sm:$0xff]  ;;  %v606_v27 = vpack.c.bf16 %v244_v22, %v243_v21  ;;  %v245_v29 = vld [vmem:[#allocation4 + $0x40] sm:$0xff]  ;;  %v263_v31 = vld [vmem:[#allocation4 + $0xd0] sm:$0xff] }
  0x6e   : > { %v222_v25 = vld [vmem:[%s1026_s26 + $0x8] sm:$0xff]  ;;  %v608_v28 = vpack.c.bf16 %v262_v24, %v261_v23  ;;  %v264_v32 = vld [vmem:[#allocation4 + $0xd8] sm:$0xff]  ;;  %v247_v35 = vld [vmem:[#allocation4 + $0x50] sm:$0xff] }
  0x6f   : > { %599 = vmatpush3.bf16.msra.mxu0 %v598_v13  ;;  %633 = vmatpush3.bf16.msra.mxu1 %v598_v13  ;;  %v230_v26 = vld [vmem:[%s1026_s26 + $0x48] sm:$0xff]  ;;  %v612_v34 = vpack.c.bf16 %v264_v32, %v263_v31  ;;  %v248_v36 = vld [vmem:[#allocation4 + $0x58] sm:$0xff]  ;;  %v265_v37 = vld [vmem:[#allocation4 + $0xe0] sm:$0xff] }
  0x70   : > { %601 = vmatprep.subr.bf16.mxu0 %v600_v14  ;;  %626 = vmatprep.subr.bf16.mxu1 %v600_v14  ;;  %v246_v30 = vld [vmem:[#allocation4 + $0x48] sm:$0xff]  ;;  %v614_v39 = vpack.c.bf16 %v248_v36, %v247_v35  ;;  %v249_v41 = vld [vmem:[#allocation4 + $0x60] sm:$0xff]  ;;  %v267_v43 = vld [vmem:[#allocation4 + $0xf0] sm:$0xff] }
  0x71   : > { %340 = vmatprep.mubr.f32.mxu0 %v222_v25  ;;  %360 = vmatprep.mubr.f32.mxu1 %v230_v26  ;;  %v610_v33 = vpack.c.bf16 %v246_v30, %v245_v29  ;;  %v266_v38 = vld [vmem:[#allocation4 + $0xe8] sm:$0xff]  ;;  %v268_v44 = vld [vmem:[#allocation4 + $0xf8] sm:$0xff]  ;;  %v251_v47 = vld [vmem:[#allocation4 + $0x70] sm:$0xff] }
  0x72   : > { %v616_v40 = vpack.c.bf16 %v266_v38, %v265_v37  ;;  %v250_v42 = vld [vmem:[#allocation4 + $0x68] sm:$0xff]  ;;  %v620_v46 = vpack.c.bf16 %v268_v44, %v267_v43  ;;  %v252_v48 = vld [vmem:[#allocation4 + $0x78] sm:$0xff]  ;;  %v221_v50 = vld [vmem:[%s1026_s26] sm:$0xff] }
  0x73   : > { %603 = vmatpush3.bf16.msra.mxu0 %v602_v19  ;;  %634 = vmatpush3.bf16.msra.mxu1 %v602_v19  ;;  %v618_v45 = vpack.c.bf16 %v250_v42, %v249_v41  ;;  %v622_v49 = vpack.c.bf16 %v252_v48, %v251_v47  ;;  %v229_v51 = vld [vmem:[%s1026_s26 + $0x40] sm:$0xff]  ;;  %v224_v52 = vld [vmem:[%s1026_s26 + $0x18] sm:$0xff]  ;;  %v223_v54 = vld [vmem:[%s1026_s26 + $0x10] sm:$0xff] }
  0x74   : > { %605 = vmatprep.subr.bf16.mxu0 %v604_v20  ;;  %627 = vmatprep.subr.bf16.mxu1 %v604_v20  ;;  %v232_v53 = vld [vmem:[%s1026_s26 + $0x58] sm:$0xff]  ;;  %v231_v55 = vld [vmem:[%s1026_s26 + $0x50] sm:$0xff]  ;;  %v226_v56 = vld [vmem:[%s1026_s26 + $0x28] sm:$0xff] }
  0x75   : > { %v234_v57 = vld [vmem:[%s1026_s26 + $0x68] sm:$0xff]  ;;  %v225_v58 = vld [vmem:[%s1026_s26 + $0x20] sm:$0xff]  ;;  %v228_v60 = vld [vmem:[%s1026_s26 + $0x38] sm:$0xff] }
  0x76   : > { %v233_v59 = vld [vmem:[%s1026_s26 + $0x60] sm:$0xff]  ;;  %v236_v61 = vld [vmem:[%s1026_s26 + $0x78] sm:$0xff]  ;;  %v227_v62 = vld [vmem:[%s1026_s26 + $0x30] sm:$0xff] }
  0x77   : > { %607 = vmatpush3.bf16.msra.mxu0 %v606_v27  ;;  %635 = vmatpush3.bf16.msra.mxu1 %v606_v27  ;;  %v235_v63 = vld [vmem:[%s1026_s26 + $0x70] sm:$0xff]  ;;  %v531_v3 = vld [vmem:[#allocation6] ss:$0 sm:$0xff] }
  0x78   : > { %609 = vmatprep.subr.bf16.mxu0 %v608_v28  ;;  %628 = vmatprep.subr.bf16.mxu1 %v608_v28 }
  0x7b   : > { %611 = vmatpush3.bf16.msra.mxu0 %v610_v33  ;;  %636 = vmatpush3.bf16.msra.mxu1 %v610_v33 }
  0x7c   : > { %613 = vmatprep.subr.bf16.mxu0 %v612_v34  ;;  %629 = vmatprep.subr.bf16.mxu1 %v612_v34 }
  0x7f   : > { %615 = vmatpush3.bf16.msra.mxu0 %v614_v39  ;;  %637 = vmatpush3.bf16.msra.mxu1 %v614_v39 }
  0x80   : > { %617 = vmatprep.subr.bf16.mxu0 %v616_v40  ;;  %630 = vmatprep.subr.bf16.mxu1 %v616_v40 }
  0x83   : > { %619 = vmatpush3.bf16.msra.mxu0 %v618_v45  ;;  %638 = vmatpush3.bf16.msra.mxu1 %v618_v45 }
  0x84   : > { %621 = vmatprep.subr.bf16.mxu0 %v620_v46  ;;  %631 = vmatprep.subr.bf16.mxu1 %v620_v46 }
  0x87   : > { %623 = vmatpush3.bf16.msra.mxu0 %v622_v49  ;;  %639 = vmatpush3.bf16.msra.mxu1 %v622_v49 }
  0x8a   : > { %341 = vmatmul.mubr.f32.vlgmr.msra.gmra.mrb[0].mxu0 %v221_v50  ;;  %361 = vmatmul.mubr.f32.vlgmr.msra.gmra.mrb[0].mxu1 %v229_v51 }
  0x8b   : > { %345 = vmatprep.mubr.f32.mxu0 %v224_v52  ;;  %365 = vmatprep.mubr.f32.mxu1 %v232_v53 }
  0x8e   : > { %346 = vmatmul.mubr.f32.gmra.mrb[2].mxu0 %v223_v54  ;;  %366 = vmatmul.mubr.f32.gmra.mrb[2].mxu1 %v231_v55 }
  0x8f   : > { %350 = vmatprep.mubr.f32.mxu0 %v226_v56  ;;  %370 = vmatprep.mubr.f32.mxu1 %v234_v57 }
  0x92   : > { %351 = vmatmul.mubr.f32.gmra.mrb[4].mxu0 %v225_v58  ;;  %371 = vmatmul.mubr.f32.gmra.mrb[4].mxu1 %v233_v59 }
  0x93   : > { %355 = vmatprep.mubr.f32.mxu0 %v228_v60  ;;  %375 = vmatprep.mubr.f32.mxu1 %v236_v61 }
  0x96   : > { %356 = vmatmul.mubr.f32.gmra.mrb[6].mxu0 %v227_v62  ;;  %376 = vmatmul.mubr.f32.gmra.mrb[6].mxu1 %v235_v63 }
 0x15d   : > { %v568_v0 = vpop.f32.mrb[0].mxu0  ;;  %v580_v1 = vpop.f32.mrb[0].mxu1 }
 0x15e   : > { %v569_v2 = vpop.f32.mrb[1].mxu0  ;;  %v581_v4 = vpop.f32.mrb[1].mxu1 }
 0x15f   : > { %v570_v5 = vadd.f32 %v569_v2, %v568_v0  ;;  %v582_v6 = vadd.f32 %v581_v4, %v580_v1 }
 0x161   : > { %v571_v7 = vpop.f32.mrb[2].mxu0  ;;  %v583_v8 = vpop.f32.mrb[2].mxu1  ;;  %v343_v9 = vadd.f32 %v570_v5, %v531_v3  ;;  %v1052_v10 = vadd.f32 %v582_v6, %v531_v3 }
 0x162   : > { %v572_v11 = vpop.f32.mrb[3].mxu0  ;;  %v584_v12 = vpop.f32.mrb[3].mxu1 }
 0x163   : > { %v573_v13 = vadd.f32 %v572_v11, %v571_v7  ;;  %v585_v14 = vadd.f32 %v584_v12, %v583_v8  ;;  %v381_v15 = vmul.f32 %v343_v9, %v343_v9  ;;  %v385_v21 = vmul.f32 %v1052_v10, %v1052_v10 }
 0x165   : > { %v574_v16 = vpop.f32.mrb[4].mxu0  ;;  %389 = vadd.xlane.f32.xlu0 %v381_v15  ;;  %v586_v17 = vpop.f32.mrb[4].mxu1  ;;  %v368_v18 = vadd.f32 %v585_v14, %v531_v3  ;;  %v348_v22 = vadd.f32 %v573_v13, %v531_v3 }
 0x166   : > { %v575_v19 = vpop.f32.mrb[5].mxu0  ;;  %v587_v20 = vpop.f32.mrb[5].mxu1 }
 0x167   : > { %v576_v23 = vadd.f32 %v575_v19, %v574_v16  ;;  %v588_v24 = vadd.f32 %v587_v20, %v586_v17  ;;  %v386_v25 = vmul.f32 %v368_v18, %v368_v18  ;;  %v382_v35 = vmul.f32 %v348_v22, %v348_v22 }
 0x169   : > { %v353_v26 = vadd.f32 %v576_v23, %v531_v3  ;;  %v373_v27 = vadd.f32 %v588_v24, %v531_v3  ;;  %399 = vadd.xlane.f32.xlu1 %v386_v25  ;;  %v577_v28 = vpop.f32.mrb[6].mxu0  ;;  %397 = vadd.xlane.f32.xlu0 %v385_v21  ;;  %v589_v29 = vpop.f32.mrb[6].mxu1 }
 0x16a   : > { %v578_v30 = vpop.f32.mrb[7].mxu0  ;;  %v590_v31 = vpop.f32.mrb[7].mxu1 }
 0x16b   : > { %v579_v32 = vadd.f32 %v578_v30, %v577_v28  ;;  %v591_v33 = vadd.f32 %v590_v31, %v589_v29  ;;  %v383_v34 = vmul.f32 %v353_v26, %v353_v26  ;;  %v387_v38 = vmul.f32 %v373_v27, %v373_v27 }
 0x16d   : > { %v358_v36 = vadd.f32 %v579_v32, %v531_v3  ;;  %v378_v37 = vadd.f32 %v591_v33, %v531_v3  ;;  %393 = vadd.xlane.f32.xlu1 %v383_v34  ;;  %391 = vadd.xlane.f32.xlu0 %v382_v35 }
 0x16f   : > { %v384_v39 = vmul.f32 %v358_v36, %v358_v36  ;;  %v388_v40 = vmul.f32 %v378_v37, %v378_v37 }
 0x171   : > { %395 = vadd.xlane.f32.xlu1 %v384_v39  ;;  %401 = vadd.xlane.f32.xlu0 %v387_v38 }
 0x175   : > { %403 = vadd.xlane.f32.xlu1 %v388_v40 }
 0x1f2   : > { %v390_v41 = vpop.xlane.xlu0 %389 }
 0x1f3   : > { %704 = vrsqrt.f32 %v390_v41 }
 0x1f6   : > { %v400_v42 = vpop.xlane.xlu1 %399  ;;  %v398_v43 = vpop.xlane.xlu0 %397 }
 0x1f7   : > { %706 = vrsqrt.f32 %v400_v42 }
 0x1f8   : > { %708 = vrsqrt.f32 %v398_v43 }
 0x1fa   : > { %v394_v44 = vpop.xlane.xlu1 %393  ;;  %v392_v45 = vpop.xlane.xlu0 %391 }
 0x1fb   : > { %710 = vrsqrt.f32 %v394_v44 }
 0x1fc   : > { %712 = vrsqrt.f32 %v392_v45 }
 0x1fd   : > { %v705_v46 = vpop.eup %704 }
 0x1fe   : > { %v413_v47 = vmul.f32 %v705_v46, %v343_v9  ;;  %v396_v48 = vpop.xlane.xlu1 %395  ;;  %v402_v49 = vpop.xlane.xlu0 %401 }
 0x1ff   : > { %714 = vrsqrt.f32 %v396_v48 }
 0x200   : > { %421 = vst [vmem:[%s219_s12] sm:$0xff] %v413_v47  ;;  %716 = vrsqrt.f32 %v402_v49 }
 0x201   : > { %v707_v50 = vpop.eup %706 }
 0x202   : > { %v709_v51 = vpop.eup %708  ;;  %v418_v52 = vmul.f32 %v707_v50, %v368_v18  ;;  %v404_v53 = vpop.xlane.xlu1 %403 }
 0x203   : > { %v417_v54 = vmul.f32 %v709_v51, %v1052_v10  ;;  %718 = vrsqrt.f32 %v404_v53 }
 0x204   : > { %426 = vst [vmem:[%s219_s12 + $0x28] sm:$0xff] %v418_v52 }
 0x205   : > { %v711_v55 = vpop.eup %710  ;;  %425 = vst [vmem:[%s219_s12 + $0x20] sm:$0xff] %v417_v54 }
 0x206   : > { %v713_v56 = vpop.eup %712  ;;  %v415_v57 = vmul.f32 %v711_v55, %v353_v26 }
 0x207   : > { %v414_v58 = vmul.f32 %v713_v56, %v348_v22 }
 0x208   : > { %423 = vst [vmem:[%s219_s12 + $0x10] sm:$0xff] %v415_v57 }
 0x209   : > { %v715_v59 = vpop.eup %714  ;;  %422 = vst [vmem:[%s219_s12 + $0x8] sm:$0xff] %v414_v58 }
 0x20a   : > { %v717_v60 = vpop.eup %716  ;;  %v416_v61 = vmul.f32 %v715_v59, %v358_v36 }
 0x20b   : > { %v419_v62 = vmul.f32 %v717_v60, %v373_v27 }
 0x20c   : > { %424 = vst [vmem:[%s219_s12 + $0x18] sm:$0xff] %v416_v61 }
 0x20d   : > { %v719_v63 = vpop.eup %718  ;;  %427 = vst [vmem:[%s219_s12 + $0x30] sm:$0xff] %v419_v62 }
 0x20e   : > { %v420_v0 = vmul.f32 %v719_v63, %v378_v37 }
 0x210   : > { %428 = vst [vmem:[%s219_s12 + $0x38] sm:$0xff] %v420_v0 }
 0x211 PF: > { %p14_p6 = scmp.ge.s32.totalorder %s970_s30, 4   ;;  %s1091_s12 = smov %s836_s13 }
 0x212   : > { %s1092_s13 = smov %s840_s14  ;;  %s1093_s14 = smov %s981_s6 }
 0x213   : > { %s1094_s15 = smov %s970_s30  ;;  %16 = sbr.rel (!%p14_p6) target bundleno = 4 (0x4), region = 80 }
 0x21a   :  { %451 = vsyncpa [#allocation3], 1 }
 0x21b   :  { %453 = vsyncpa [#allocation3 + $0x1], 1 }
 0x21c   :  { %454 = vsyncpa [#allocation5], 1 }

// kernel: _lambda_.6
= control target key start
LH: loop header
LB: loop body
LE: loop exit
PB: predicated region body
PF: predicated region fallthrough
CT: control target
= control target key end

     0   :  { %s731_s12 = smov 0   ;;  %s963_s0 = inlined_call_operand.vmem [shape: f32[128,128], index: 0, kind: input, shape index: {}]   ;;  %s964_s1 = inlined_call_operand.vmem [shape: f32[128,384], index: 1, kind: input, shape index: {}]   ;;  %s965_s2 = inlined_call_operand.vmem [shape: f32[1,384], index: 2, kind: input, shape index: {}]   ;;  %s966_s3 = inlined_call_operand.vmem [shape: f32[128,384], index: 3, kind: output, shape index: {}]  }
   0x1 LB: > { %s549_s13 = sadd.s32 4294967295, %s708_s12   ;;  %p553_p0 = scmp.ge.s32.totalorder %s708_s12, 1  ;;  %s708_s12 = sphi %s731_s12, %s13_s12  }
   0x2   : > { %p138_p1 = scmp.lt.s32.totalorder %s708_s12, 3 }
   0x4   : > { %p139_p2 = pnand %p553_p0, %p138_p1 }
   0x5   : > { %v185_v0 = vld [vmem:[%s964_s1 + $0x8] sm:$0xff] (!%p139_p2)  ;;  %v188_v1 = vld [vmem:[%s964_s1 + $0x20] sm:$0xff] (!%p139_p2)  ;;  %s554_s20 = sshll.u32 (!%p139_p2), %s549_s13, 3  ;;  %v187_v4 = vld [vmem:[%s964_s1 + $0x18] sm:$0xff] (!%p139_p2)  ;;  %v710_v7 = vmov (!%p139_p2), 0.0  }
   0x6   : > { %142 = sbr.rel (%p139_p2) target bundleno = 284 (0x11c), region = 32  ;;  %v184_v2 = vld [vmem:[%s964_s1] sm:$0xff] (!%p139_p2)  ;;  %v628_v3 = vpack.c.bf16 (!%p139_p2), %v188_v1, %v185_v0  ;;  %v191_v5 = vld [vmem:[%s964_s1 + $0x38] sm:$0xff] (!%p139_p2)  ;;  %v194_v6 = vld [vmem:[%s964_s1 + $0x50] sm:$0xff] (!%p139_p2)  ;;  %313 = vmatprep.mubr.f32.mxu0 (!%p139_p2), %v710_v7  ;;  %p164_p3 = scmp.lt.s32.totalorder (!%p139_p2), %s554_s20, 15 }
   0x7   : > { %v630_v8 = vpack.c.bf16 (!%p139_p2), %v187_v4, %v184_v2  ;;  %v632_v9 = vpack.c.bf16 (!%p139_p2), %v194_v6, %v191_v5  ;;  %v190_v10 = vld [vmem:[%s964_s1 + $0x30] sm:$0xff] (!%p139_p2)  ;;  %v193_v11 = vld [vmem:[%s964_s1 + $0x48] sm:$0xff] (!%p139_p2)  ;;  %v200_v13 = vld [vmem:[%s964_s1 + $0x80] sm:$0xff] (!%p139_p2) }
   0x8   : > { %v197_v12 = vld [vmem:[%s964_s1 + $0x68] sm:$0xff] (!%p139_p2)  ;;  %629 = vmatprep.subr.bf16.mxu0 (!%p139_p2), %v628_v3  ;;  %v634_v14 = vpack.c.bf16 (!%p139_p2), %v193_v11, %v190_v10  ;;  %v196_v15 = vld [vmem:[%s964_s1 + $0x60] sm:$0xff] (!%p139_p2)  ;;  %v199_v17 = vld [vmem:[%s964_s1 + $0x78] sm:$0xff] (!%p139_p2) }
   0x9   : > { %631 = vmatpush1.bf16.msra.mxu0 (!%p139_p2), %v630_v8  ;;  %v636_v16 = vpack.c.bf16 (!%p139_p2), %v200_v13, %v197_v12  ;;  %v186_v18 = vld [vmem:[%s964_s1 + $0x10] sm:$0xff] (!%p139_p2)  ;;  %v189_v19 = vld [vmem:[%s964_s1 + $0x28] sm:$0xff] (!%p139_p2)  ;;  %v203_v20 = vld [vmem:[%s964_s1 + $0x98] sm:$0xff] (!%p139_p2)  ;;  %v638_v25 = vpack.c.bf16 (!%p139_p2), %v199_v17, %v196_v15 }
   0xa   : > { %633 = vmatprep.subr.bf16.mxu0 (!%p139_p2), %v632_v9  ;;  %v206_v21 = vld [vmem:[%s964_s1 + $0xb0] sm:$0xff] (!%p139_p2)  ;;  %v660_v22 = vpack.c.bf16 (!%p139_p2), %v189_v19, %v186_v18  ;;  %v192_v23 = vld [vmem:[%s964_s1 + $0x40] sm:$0xff] (!%p139_p2)  ;;  %v195_v24 = vld [vmem:[%s964_s1 + $0x58] sm:$0xff] (!%p139_p2)  ;;  %v234_v18 = vlaneseq (!%p139_p2) }
   0xb   : > { %v202_v26 = vld [vmem:[%s964_s1 + $0x90] sm:$0xff] (!%p139_p2)  ;;  %v664_v27 = vpack.c.bf16 (!%p139_p2), %v195_v24, %v192_v23  ;;  %v640_v28 = vpack.c.bf16 (!%p139_p2), %v206_v21, %v203_v20  ;;  %v205_v29 = vld [vmem:[%s964_s1 + $0xa8] sm:$0xff] (!%p139_p2)  ;;  %v212_v33 = vld [vmem:[%s964_s1 + $0xe0] sm:$0xff] (!%p139_p2) }
   0xc   : > { %661 = vmatprep.subr.bf16.mxu1 (!%p139_p2), %v660_v22  ;;  %v198_v30 = vld [vmem:[%s964_s1 + $0x70] sm:$0xff] (!%p139_p2)  ;;  %v201_v31 = vld [vmem:[%s964_s1 + $0x88] sm:$0xff] (!%p139_p2)  ;;  %v204_v35 = vld [vmem:[%s964_s1 + $0xa0] sm:$0xff] (!%p139_p2)  ;;  %v642_v37 = vpack.c.bf16 (!%p139_p2), %v205_v29, %v202_v26  ;;  %v235_v19 = vshrl.u32 (!%p139_p2), %v234_v18, 7 }
   0xd   : > { %s968_s20 = smov (!%p164_p3, %s554_s20), 15  ;;  %635 = vmatpush1.bf16.msra.mxu0 %v634_v14  ;;  %663 = vmatpush3.bf16.msra.mxu1 %v660_v22  ;;  %v209_v32 = vld [vmem:[%s964_s1 + $0xc8] sm:$0xff]  ;;  %v668_v34 = vpack.c.bf16 %v201_v31, %v198_v30  ;;  %v207_v36 = vld [vmem:[%s964_s1 + $0xb8] sm:$0xff]  ;;  %v208_v39 = vld [vmem:[%s964_s1 + $0xc0] sm:$0xff] }
   0xe   : > { %s555_s28 = sshll.u32 %s968_s20, 3  ;;  %637 = vmatprep.subr.bf16.mxu0 %v636_v16  ;;  %665 = vmatprep.subr.bf16.mxu1 %v664_v27  ;;  %v644_v38 = vpack.c.bf16 %v212_v33, %v209_v32  ;;  %v211_v40 = vld [vmem:[%s964_s1 + $0xd8] sm:$0xff]  ;;  %v218_v42 = vld [vmem:[%s964_s1 + $0x110] sm:$0xff]  ;;  %v672_v43 = vpack.c.bf16 %v207_v36, %v204_v35  ;;  %v213_v46 = vld [vmem:[%s964_s1 + $0xe8] sm:$0xff]  ;;  %v236_v20 = vsub.s32 0, %v235_v19  ;;  %v240_v22 = vsub.s32 1, %v235_v19 }
   0xf   : > { %s824_s19 = scalar_lea.vmem %s963_s0, %s555_s28  ;;  %v215_v41 = vld [vmem:[%s964_s1 + $0xf8] sm:$0xff]  ;;  %v210_v45 = vld [vmem:[%s964_s1 + $0xd0] sm:$0xff]  ;;  %v646_v47 = vpack.c.bf16 %v211_v40, %v208_v39  ;;  %v217_v50 = vld [vmem:[%s964_s1 + $0x108] sm:$0xff] }
  0x10   : > { %v176_v44 = vld [vmem:[%s824_s19] sm:$0xff]  ;;  %v648_v48 = vpack.c.bf16 %v218_v42, %v215_v41  ;;  %v214_v49 = vld [vmem:[%s964_s1 + $0xf0] sm:$0xff]  ;;  %v221_v51 = vld [vmem:[%s964_s1 + $0x128] sm:$0xff]  ;;  %v676_v53 = vpack.c.bf16 %v213_v46, %v210_v45 }
  0x11   : > { %639 = vmatpush1.bf16.msra.mxu0 %v638_v25  ;;  %667 = vmatpush3.bf16.msra.mxu1 %v664_v27  ;;  %v224_v52 = vld [vmem:[%s964_s1 + $0x140] sm:$0xff]  ;;  %v219_v55 = vld [vmem:[%s964_s1 + $0x118] sm:$0xff]  ;;  %v650_v56 = vpack.c.bf16 %v217_v50, %v214_v49  ;;  %v230_v61 = vld [vmem:[%s964_s1 + $0x170] sm:$0xff]  ;;  %v244_v25 = vsub.s32 2, %v235_v19 }
  0x12   : > { %641 = vmatprep.subr.bf16.mxu0 %v640_v28  ;;  %669 = vmatprep.subr.bf16.mxu1 %v668_v34  ;;  %v216_v54 = vld [vmem:[%s964_s1 + $0x100] sm:$0xff]  ;;  %v652_v57 = vpack.c.bf16 %v224_v52, %v221_v51  ;;  %v223_v59 = vld [vmem:[%s964_s1 + $0x138] sm:$0xff]  ;;  %v222_v63 = vld [vmem:[%s964_s1 + $0x130] sm:$0xff] }
  0x13   : > { %616 = vmatprep.mubr.f32.mxu1 %v176_v44  ;;  %v220_v58 = vld [vmem:[%s964_s1 + $0x120] sm:$0xff]  ;;  %v227_v60 = vld [vmem:[%s964_s1 + $0x158] sm:$0xff]  ;;  %v680_v62 = vpack.c.bf16 %v219_v55, %v216_v54  ;;  %v225_v0 = vld [vmem:[%s964_s1 + $0x148] sm:$0xff] }
  0x14   : > { %v654_v1 = vpack.c.bf16 %v223_v59, %v220_v58  ;;  %v656_v2 = vpack.c.bf16 %v230_v61, %v227_v60  ;;  %v226_v3 = vld [vmem:[%s964_s1 + $0x150] sm:$0xff]  ;;  %v229_v4 = vld [vmem:[%s964_s1 + $0x168] sm:$0xff]  ;;  %v684_v5 = vpack.c.bf16 %v225_v0, %v222_v63  ;;  %v228_v6 = vld [vmem:[%s964_s1 + $0x160] sm:$0xff] }
  0x15   : > { %643 = vmatpush1.bf16.msra.mxu0 %v642_v37  ;;  %671 = vmatpush3.bf16.msra.mxu1 %v668_v34  ;;  %v231_v8 = vld [vmem:[%s964_s1 + $0x178] sm:$0xff]  ;;  %v658_v9 = vpack.c.bf16 %v229_v4, %v226_v3  ;;  %v177_v11 = vld [vmem:[%s824_s19 + $0x8] sm:$0xff]  ;;  %v178_v12 = vld [vmem:[%s824_s19 + $0x10] sm:$0xff] }
  0x16   : > { %645 = vmatprep.subr.bf16.mxu0 %v644_v38  ;;  %673 = vmatprep.subr.bf16.mxu1 %v672_v43  ;;  %v688_v10 = vpack.c.bf16 %v231_v8, %v228_v6  ;;  %v179_v13 = vld [vmem:[%s824_s19 + $0x18] sm:$0xff]  ;;  %v180_v14 = vld [vmem:[%s824_s19 + $0x20] sm:$0xff]  ;;  %v181_v15 = vld [vmem:[%s824_s19 + $0x28] sm:$0xff] }
  0x17   : > { %v182_v16 = vld [vmem:[%s824_s19 + $0x30] sm:$0xff]  ;;  %v183_v17 = vld [vmem:[%s824_s19 + $0x38] sm:$0xff]  ;;  %v232_v21 = vld [vmem:[%s965_s2] sm:$0x7]  ;;  %s692_s19 = smul.u32 24, %s968_s20 }
  0x18   : > { %v911_v23 = vrot.slane %v232_v21, %v236_v20  ;;  %v913_v24 = vrot.slane %v232_v21, %v240_v22  ;;  %v245_v29 = vrot.slane %v232_v21, %v244_v25 }
  0x19   : > { %647 = vmatpush1.bf16.msra.mxu0 %v646_v47  ;;  %675 = vmatpush3.bf16.msra.mxu1 %v672_v43  ;;  %s918_s21 = scalar_lea.vmem %s966_s3, %s692_s19 }
  0x1a   : > { %649 = vmatprep.subr.bf16.mxu0 %v648_v48  ;;  %677 = vmatprep.subr.bf16.mxu1 %v676_v53 }
  0x1d   : > { %651 = vmatpush1.bf16.msra.mxu0 %v650_v56  ;;  %679 = vmatpush3.bf16.msra.mxu1 %v676_v53 }
  0x1e   : > { %653 = vmatprep.subr.bf16.mxu0 %v652_v57  ;;  %681 = vmatprep.subr.bf16.mxu1 %v680_v62 }
  0x21   : > { %655 = vmatpush1.bf16.msra.mxu0 %v654_v1  ;;  %683 = vmatpush3.bf16.msra.mxu1 %v680_v62 }
  0x22   : > { %657 = vmatprep.subr.bf16.mxu0 %v656_v2  ;;  %685 = vmatprep.subr.bf16.mxu1 %v684_v5 }
  0x25   : > { %659 = vmatpush1.bf16.msra.mxu0 %v658_v9  ;;  %687 = vmatpush3.bf16.msra.mxu1 %v684_v5 }
  0x26   : > { %689 = vmatprep.subr.bf16.mxu1 %v688_v10 }
  0x28   : > { %314 = vmatmul.mubr.f32.vlgmr.msra.gmra.mrb[0].mxu0 %v176_v44 }
  0x29   : > { %319 = vmatprep.mubr.f32.mxu0 %v710_v7  ;;  %691 = vmatpush3.bf16.msra.mxu1 %v688_v10 }
  0x2c   : > { %320 = vmatmul.mubr.f32.gmra.mrb[2].mxu0 %v177_v11  ;;  %617 = vmatmul.mubr.f32.vlgmr.msra.gmra.mrb[0].mxu1 %v177_v11 }
  0x2d   : > { %325 = vmatprep.mubr.f32.mxu0 %v710_v7  ;;  %619 = vmatprep.mubr.f32.mxu1 %v178_v12 }
  0x30   : > { %326 = vmatmul.mubr.f32.gmra.mrb[4].mxu0 %v178_v12  ;;  %620 = vmatmul.mubr.f32.gmra.mrb[2].mxu1 %v179_v13 }
  0x31   : > { %331 = vmatprep.mubr.f32.mxu0 %v710_v7  ;;  %622 = vmatprep.mubr.f32.mxu1 %v180_v14 }
  0x34   : > { %332 = vmatmul.mubr.f32.gmra.mrb[6].mxu0 %v179_v13  ;;  %623 = vmatmul.mubr.f32.gmra.mrb[4].mxu1 %v181_v15 }
  0x35   : > { %337 = vmatprep.mubr.f32.mxu0 %v710_v7  ;;  %625 = vmatprep.mubr.f32.mxu1 %v182_v16 }
  0x38   : > { %338 = vmatmul.mubr.f32.gmra.mrb[8].mxu0 %v180_v14  ;;  %626 = vmatmul.mubr.f32.gmra.mrb[6].mxu1 %v183_v17 }
  0x39   : > { %343 = vmatprep.mubr.f32.mxu0 %v710_v7 }
  0x3c   : > { %344 = vmatmul.mubr.f32.gmra.mrb[10].mxu0 %v181_v15 }
  0x3d   : > { %349 = vmatprep.mubr.f32.mxu0 %v710_v7 }
  0x40   : > { %350 = vmatmul.mubr.f32.gmra.mrb[12].mxu0 %v182_v16 }
  0x41   : > { %355 = vmatprep.mubr.f32.mxu0 %v710_v7 }
  0x44   : > { %356 = vmatmul.mubr.f32.gmra.mrb[14].mxu0 %v183_v17 }
  0xfb   : > { %v315_v7 = vpop.f32.mrb[0].mxu0 }
  0xfc   : > { %v316_v26 = vadd.f32 %v315_v7, %v911_v23  ;;  %v317_v27 = vpop.f32.mrb[1].mxu0 }
  0xfd   : > { %v318_v28 = vadd.f32 %v317_v27, %v913_v24 }
  0xfe   : > { %467 = vst [vmem:[%s918_s21] sm:$0xff] %v316_v26 }
  0xff   : > { %468 = vst [vmem:[%s918_s21 + $0x8] sm:$0xff] %v318_v28  ;;  %v321_v30 = vpop.f32.mrb[2].mxu0  ;;  %v618_v33 = vpop.f32.mrb[0].mxu1 }
 0x100   : > { %v322_v31 = vadd.f32 %v321_v30, %v911_v23  ;;  %v323_v32 = vpop.f32.mrb[3].mxu0  ;;  %v434_v35 = vadd.f32 %v618_v33, %v245_v29  ;;  %v428_v36 = vpop.f32.mrb[1].mxu1 }
 0x101   : > { %v324_v34 = vadd.f32 %v323_v32, %v913_v24  ;;  %v429_v37 = vadd.f32 %v428_v36, %v245_v29 }
 0x102   : > { %470 = vst [vmem:[%s918_s21 + $0x18] sm:$0xff] %v322_v31  ;;  %472 = vst [vmem:[%s918_s21 + $0x28] sm:$0xff] %v434_v35 }
 0x103   : > { %471 = vst [vmem:[%s918_s21 + $0x20] sm:$0xff] %v324_v34  ;;  %v327_v38 = vpop.f32.mrb[4].mxu0  ;;  %469 = vst [vmem:[%s918_s21 + $0x10] sm:$0xff] %v429_v37  ;;  %v621_v41 = vpop.f32.mrb[2].mxu1 }
 0x104   : > { %v328_v39 = vadd.f32 %v327_v38, %v911_v23  ;;  %v329_v40 = vpop.f32.mrb[5].mxu0  ;;  %v444_v43 = vadd.f32 %v621_v41, %v245_v29  ;;  %v438_v44 = vpop.f32.mrb[3].mxu1 }
 0x105   : > { %v330_v42 = vadd.f32 %v329_v40, %v913_v24  ;;  %v439_v45 = vadd.f32 %v438_v44, %v245_v29 }
 0x106   : > { %473 = vst [vmem:[%s918_s21 + $0x30] sm:$0xff] %v328_v39  ;;  %478 = vst [vmem:[%s918_s21 + $0x58] sm:$0xff] %v444_v43 }
 0x107   : > { %474 = vst [vmem:[%s918_s21 + $0x38] sm:$0xff] %v330_v42  ;;  %v333_v46 = vpop.f32.mrb[6].mxu0  ;;  %475 = vst [vmem:[%s918_s21 + $0x40] sm:$0xff] %v439_v45  ;;  %v624_v49 = vpop.f32.mrb[4].mxu1 }
 0x108   : > { %v334_v47 = vadd.f32 %v333_v46, %v911_v23  ;;  %v335_v48 = vpop.f32.mrb[7].mxu0  ;;  %v454_v51 = vadd.f32 %v624_v49, %v245_v29  ;;  %v448_v52 = vpop.f32.mrb[5].mxu1 }
 0x109   : > { %v336_v50 = vadd.f32 %v335_v48, %v913_v24  ;;  %v449_v53 = vadd.f32 %v448_v52, %v245_v29 }
 0x10a   : > { %476 = vst [vmem:[%s918_s21 + $0x48] sm:$0xff] %v334_v47  ;;  %484 = vst [vmem:[%s918_s21 + $0x88] sm:$0xff] %v454_v51 }
 0x10b   : > { %477 = vst [vmem:[%s918_s21 + $0x50] sm:$0xff] %v336_v50  ;;  %v339_v54 = vpop.f32.mrb[8].mxu0  ;;  %481 = vst [vmem:[%s918_s21 + $0x70] sm:$0xff] %v449_v53  ;;  %v627_v57 = vpop.f32.mrb[6].mxu1 }
 0x10c   : > { %v340_v55 = vadd.f32 %v339_v54, %v911_v23  ;;  %v341_v56 = vpop.f32.mrb[9].mxu0  ;;  %v464_v59 = vadd.f32 %v627_v57, %v245_v29  ;;  %v458_v60 = vpop.f32.mrb[7].mxu1 }
 0x10d   : > { %v342_v58 = vadd.f32 %v341_v56, %v913_v24  ;;  %v459_v61 = vadd.f32 %v458_v60, %v245_v29 }
 0x10e   : > { %479 = vst [vmem:[%s918_s21 + $0x60] sm:$0xff] %v340_v55  ;;  %490 = vst [vmem:[%s918_s21 + $0xb8] sm:$0xff] %v464_v59 }
 0x10f   : > { %480 = vst [vmem:[%s918_s21 + $0x68] sm:$0xff] %v342_v58  ;;  %v345_v62 = vpop.f32.mrb[10].mxu0  ;;  %487 = vst [vmem:[%s918_s21 + $0xa0] sm:$0xff] %v459_v61 }
 0x110   : > { %v346_v63 = vadd.f32 %v345_v62, %v911_v23  ;;  %v347_v0 = vpop.f32.mrb[11].mxu0 }
 0x111   : > { %v348_v1 = vadd.f32 %v347_v0, %v913_v24 }
 0x112   : > { %482 = vst [vmem:[%s918_s21 + $0x78] sm:$0xff] %v346_v63 }
 0x113   : > { %483 = vst [vmem:[%s918_s21 + $0x80] sm:$0xff] %v348_v1  ;;  %v351_v2 = vpop.f32.mrb[12].mxu0 }
 0x114   : > { %v352_v3 = vadd.f32 %v351_v2, %v911_v23  ;;  %v353_v4 = vpop.f32.mrb[13].mxu0 }
 0x115   : > { %v354_v5 = vadd.f32 %v353_v4, %v913_v24 }
 0x116   : > { %485 = vst [vmem:[%s918_s21 + $0x90] sm:$0xff] %v352_v3 }
 0x117   : > { %486 = vst [vmem:[%s918_s21 + $0x98] sm:$0xff] %v354_v5  ;;  %v357_v6 = vpop.f32.mrb[14].mxu0 }
 0x118   : > { %v358_v8 = vadd.f32 %v357_v6, %v911_v23  ;;  %v359_v9 = vpop.f32.mrb[15].mxu0 }
 0x119   : > { %v360_v10 = vadd.f32 %v359_v9, %v913_v24 }
 0x11a   : > { %488 = vst [vmem:[%s918_s21 + $0xa8] sm:$0xff] %v358_v8 }
 0x11b   : > { %489 = vst [vmem:[%s918_s21 + $0xb0] sm:$0xff] %v360_v10 }
 0x11c PF: > { %s13_s12 = sadd.s32 1, %s708_s12  }
 0x11d   : > { %p10_p4 = scmp.ge.s32.totalorder %s13_s12, 4  }
 0x11f   :  { %12 = sbr.rel (!%p10_p4) target bundleno = 1 (0x1), region = 62 }

// kernel: _lambda_.5
= control target key start
LH: loop header
LB: loop body
LE: loop exit
PB: predicated region body
PF: predicated region fallthrough
CT: control target
= control target key end

     0   :  { %s2458_s0 = inlined_call_operand.vmem [shape: f32[4,32,128], index: 0, kind: input, shape index: {}]   ;;  %s2459_s1 = inlined_call_operand.hbm [shape: f32[4,128,384], index: 1, kind: input, shape index: {}]   ;;  %s2460_s2 = inlined_call_operand.vmem [shape: f32[4,1,384], index: 2, kind: input, shape index: {}]   ;;  %s2461_s3 = inlined_call_operand.vmem [shape: f32[4,128,128], index: 3, kind: input, shape index: {}]   ;;  %s2462_s4 = inlined_call_operand.vmem [shape: f32[4,1,128], index: 4, kind: input, shape index: {}]   ;;  %s2463_s5 = inlined_call_operand.vmem [shape: f32[4,1,128], index: 5, kind: input, shape index: {}]   ;;  %s2464_s6 = inlined_call_operand.vmem [shape: f32[4,1,128], index: 6, kind: input, shape index: {}]   ;;  %s2465_s7 = inlined_call_operand.vmem [shape: f32[4,32,128], index: 7, kind: output, shape index: {}]  }
   0x1   :  { %2469 = sst [smem:[#allocation10_spill]] %s2459_s1 }
   0x2   :  { %2470 = sst [smem:[#allocation11_spill]] %s2461_s3 }
   0x3   :  { %12 = vsyncpa [#allocation3], 0 }
   0x4   :  { %14 = vsyncpa [#allocation3 + $0x1], 0  ;;  %s2084_s24 = smov 0   ;;  %s2086_s25 = smov 0  }
   0x5   :  { %s2088_s26 = smov 0   ;;  %s2090_s27 = smov 0  }
   0x6   :  { %s2092_s28 = smov 0   ;;  %s2094_s29 = smov 0  }
   0x7   :  { %s2096_s30 = smov 0   ;;  %s2098_s8 = smov 0  }
   0x8 LB: > { %2471 = sst [smem:[#allocation5_spill]] %s2030_s29  ;;  %s1464_s9 = sadd.s32 4294967295, %s2038_s8   ;;  %s2038_s8 = sphi %s2098_s8, %s20_s8   ;;  %s2034_s30 = sphi %s2096_s30, %s2489_s30   ;;  %s2030_s29 = sphi %s2094_s29, %s2483_s29   ;;  %s2026_s28 = sphi %s2092_s28, %s2482_s28   ;;  %s2022_s27 = sphi %s2090_s27, %s2488_s27   ;;  %s2018_s26 = sphi %s2088_s26, %s2487_s26   ;;  %s2014_s25 = sphi %s2086_s25, %s2486_s25   ;;  %s2010_s24 = sphi %s2084_s24, %s2485_s24  }
   0x9   : > { %2472 = sst [smem:[#allocation6_spill]] %s2034_s30  ;;  %s29_s10 = sadd.s32 1, %s2030_s29 }
   0xa   : > { %p30_p0 = scmp.ge.s32.totalorder %s29_s10, 4  ;;  %s32_s11 = sadd.s32 1, %s2034_s30 }
   0xb   : > { %s65_s12 = sadd.s32 1, %s2018_s26  ;;  %p72_p1 = scmp.ne.s32.totalorder %s2018_s26, %s2014_s25 }
   0xc   : > { %s2491_s10 = smov (%p30_p0, %s29_s10), 0  ;;  %s2493_s11 = smov (!%p30_p0, %s32_s11), %s2034_s30 }
   0xd   : > { %2473 = sst [smem:[#allocation7_spill]] %s2491_s10  ;;  %s62_s13 = ssub.s32 %s2030_s29, %s2491_s10 }
   0xe   : > { %p73_p2 = scmp.eq.s32.totalorder %s2038_s8, 0  ;;  %p34_p3 = scmp.ge.s32.totalorder %s2493_s11, 2 }
   0xf   : > { %p63_p4 = scmp.eq.s32.totalorder %s62_s13, 0  ;;  %p78_p6 = scmp.ne.s32.totalorder %s2014_s25, %s2010_s24 }
  0x10   : > { %p74_p5 = por %p73_p2, %p72_p1  ;;  %s2495_s11 = smov (%p34_p3, %s2493_s11), 0 }
  0x11   : > { %2474 = sst [smem:[#allocation8_spill]] %s2495_s11  ;;  %p79_p7 = scmp.eq.s32.totalorder %s1464_s9, 0 }
  0x12   : > { %s2138_s14 = scalar_select %p63_p4, %s2018_s26, %s65_s12  }
  0x13   : > { %p1858_p8 = scmp.lt.s32.totalorder %s2038_s8, 8  ;;  %s268_s15 = sand.u32 1, %s2018_s26  }
  0x14   : > { %2475 = sst [smem:[#allocation9_spill]] %s2138_s14  ;;  %p2142_p9 = por %p79_p7, %p78_p6 }
  0x15   : > { %s1848_s17 = smul.u32 384, %s268_s15  ;;  %p2146_p10 = pnand %p1858_p8, %p74_p5 }
  0x16   : > { %s1849_s19 = smul.u32 6144, %s2030_s29  ;;  %s2478_s1 = sld [smem:[#allocation10_spill]] }
  0x17   : > { %s272_s23 = scalar_lea.vmem [#allocation2], %s1848_s17  ;;  %s2158_s9 = scalar_lea.sflag [#allocation3], %s268_s15 }
  0x18   : > { %s279_s24 = sshll.u32 %s272_s23, 4  ;;  %p1944_p12 = pneg %p2146_p10  ;;  %s2156_s24 = int_to_ptr.vmem [resolvable:$true] %s279_s24 }
  0x1c   : > { %s2154_s22 = scalar_lea.hbm %s2478_s1, %s1849_s19  ;;  %s1947_s20 = scalar_lea.hbm %s2478_s1, 24576 }
  0x1d   : > { %s1942_s12 = scalar_lea.hbm %s2154_s22, 6144  ;;  %p1948_p1 = scmp.lt.u32.totalorder %s2154_s22, %s2478_s1 }
  0x1e   : > { %p1943_p11 = scmp.ne.s32.totalorder %s2154_s22, %s1942_s12  ;;  %p1949_p2 = scmp.lt.u32.totalorder %s1947_s20, %s1942_s12 }
  0x1f   : > { %p1951_p4 = scmp.lt.u32.totalorder %s1942_s12, %s2154_s22 }
  0x20   : > { %p1945_p13 = pnand %p1944_p12, %p1943_p11  ;;  %p1950_p3 = por %p1949_p2, %p1948_p1 }
  0x22   : > { %p1946_p0 = pneg %p1945_p13  ;;  %p1952_p5 = por %p1951_p4, %p1950_p3 }
  0x24   : > { %p1953_p6 = pnand %p1952_p5, %p1946_p0 }
  0x26   : > { %1956 = shalt.err (!%p1953_p6)
}
  0x27   : > { %s1957_s15 = scalar_lea.vmem %s2156_s24, 6144  ;;  %s2040_s17 = smov [#allocation2]  }
  0x28   : > { %p1958_p7 = scmp.ne.s32.totalorder %s2156_s24, %s1957_s15  ;;  %s1962_s23 = sshll.u32 %s2040_s17, 4  ;;  %s1963_s23 = int_to_ptr.vmem [resolvable:$false] %s1962_s23 }
  0x29   : > { %s1964_s11 = scalar_lea.vmem %s1963_s23, 12288  ;;  %p1965_p13 = scmp.lt.s32.totalorder %s2156_s24, %s1963_s23 }
  0x2a   : > { %p1960_p8 = pnand %p1958_p7, %p1944_p12  ;;  %p1966_p1 = scmp.lt.s32.totalorder %s1964_s11, %s1957_s15 }
  0x2c   : > { %p1961_p11 = pneg %p1960_p8  ;;  %p1967_p2 = por %p1966_p1, %p1965_p13 }
  0x2e   : > { %p1968_p3 = pnand %p1967_p2, %p1961_p11 }
  0x30   : > { %1971 = shalt.err (!%p1968_p3)
}
  0x31   : > { %s2041_s12 = smov 384   ;;  %s2042_s13 = smov 24  }
  0x32   : > { %1857 = dma.hbm_to_vmem [thread:$0]  (!%p2146_p10), %s2154_s22, 6144, %s2156_s24, %s2158_s9, %s2041_s12, %s2041_s12, %s2042_s13  }
  0x33   : > { %p1469_p12 = scmp.ge.s32.totalorder %s2038_s8, 1  ;;  %p320_p0 = scmp.lt.s32.totalorder %s2038_s8, 9 }
  0x35   : > { %p321_p4 = pnand %p1469_p12, %p320_p0 }
  0x36   : > { %s326_s19 = sand.u32 (!%p321_p4), 1, %s2014_s25  }
  0x37   : > { %324 = sbr.rel (%p321_p4) target bundleno = 1179 (0x49b), region = 48  ;;  %s327_s21 = scalar_lea.sflag (!%p321_p4), [#allocation3], %s326_s19 }
  0x38   : > { %s1850_s20 = smul.u32 (!%p321_p4), 384, %s326_s19 }
  0x3a   : > { %s2189_s15 = scalar_lea.vmem (!%p321_p4), [#allocation2], %s1850_s20 }
  0x3e   : > { %2005 = dma.done.wait (%p2142_p9), %s327_s21, 6144  }
  0x3f   : > { %2007 = vsyncadd (%p2142_p9), %s327_s21, 4294961152  ;;  %s1470_s18 = sshll.u32 %s2026_s28, 1  ;;  %p393_p10 = scmp.lt.s32.totalorder %s2022_s27, 3 }
  0x40   : > { %p387_p5 = scmp.lt.s32.totalorder %s1470_s18, 3  ;;  %s2479_s3 = sld [smem:[#allocation11_spill]] }
  0x41   : > { %s2198_s22 = scalar_select %p393_p10, %s2022_s27, 3 }
  0x42   : > { %s2497_s18 = smov (!%p387_p5, %s1470_s18), 3  ;;  %p1478_p9 = scmp.ne.s32.totalorder %s2022_s27, 0 }
  0x43   : > { %s1851_s24 = smul.u32 3, %s2198_s22  ;;  %s1494_s9 = sshll.u32 %s2198_s22, 7 }
  0x44   : > { %s1493_s17 = sshll.u32 %s2497_s18, 5  ;;  %s404_s30 = scalar_lea.vmem %s2462_s4, %s2198_s22 }
  0x45   : > { %s391_s13 = scalar_lea.vmem %s2458_s0, %s1493_s17  ;;  %s2213_s21 = scalar_lea.vmem %s2460_s2, %s1851_s24 }
  0x46   : > { %s2205_s11 = scalar_lea.vmem %s2479_s3, %s1494_s9  ;;  %s407_s14 = scalar_lea.vmem %s2463_s5, %s2198_s22  ;;  %v422_v0 = vld [vmem:[%s391_s13] sm:$0xff] (!%p1478_p9)  ;;  %v423_v1 = vld [vmem:[%s391_s13 + $0x8] sm:$0xff] (!%p1478_p9)  ;;  %v424_v2 = vld [vmem:[%s391_s13 + $0x10] sm:$0xff] (!%p1478_p9) }
  0x47   : > { %s410_s16 = scalar_lea.vmem %s2464_s6, %s2198_s22  ;;  %s2230_s28 = scalar_lea.vmem %s2465_s7, %s1493_s17  ;;  %v425_v3 = vld [vmem:[%s391_s13 + $0x18] sm:$0xff] (!%p1478_p9)  ;;  %v426_v4 = vld [vmem:[%s391_s13 + $0x20] sm:$0xff] (!%p1478_p9)  ;;  %v427_v5 = vld [vmem:[%s391_s13 + $0x28] sm:$0xff] (!%p1478_p9) }
  0x48   : > { %421 = sbr.rel (%p1478_p9) target bundleno = 79 (0x4f), region = 56  ;;  %430 = vst [vmem:[%s2230_s28] sm:$0xff] (!%p1478_p9), %v422_v0  ;;  %431 = vst [vmem:[%s2230_s28 + $0x8] sm:$0xff] (!%p1478_p9), %v423_v1  ;;  %v428_v6 = vld [vmem:[%s391_s13 + $0x30] sm:$0xff] (!%p1478_p9)  ;;  %v429_v7 = vld [vmem:[%s391_s13 + $0x38] sm:$0xff] (!%p1478_p9) }
  0x49   : > { %432 = vst [vmem:[%s2230_s28 + $0x10] sm:$0xff] (!%p1478_p9), %v424_v2  ;;  %433 = vst [vmem:[%s2230_s28 + $0x18] sm:$0xff] (!%p1478_p9), %v425_v3 }
  0x4a   : > { %434 = vst [vmem:[%s2230_s28 + $0x20] sm:$0xff] (!%p1478_p9), %v426_v4  ;;  %435 = vst [vmem:[%s2230_s28 + $0x28] sm:$0xff] (!%p1478_p9), %v427_v5 }
  0x4b   : > { %436 = vst [vmem:[%s2230_s28 + $0x30] sm:$0xff] (!%p1478_p9), %v428_v6  ;;  %437 = vst [vmem:[%s2230_s28 + $0x38] sm:$0xff] (!%p1478_p9), %v429_v7 }
  0x4f PF: > { %v448_v8 = vld [vmem:[%s2189_s15 + $0x10] sm:$0xff]  ;;  %v451_v9 = vld [vmem:[%s2189_s15 + $0x28] sm:$0xff]  ;;  %v454_v10 = vld [vmem:[%s2189_s15 + $0x40] sm:$0xff]  ;;  %v2043_v15 = vmov 0.0   ;;  %vm899_vm0 = vcmask 261120   ;;  %p1490_p6 = scmp.ne.s32.totalorder %s2022_s27, 3 }
  0x50   : > { %v1752_v11 = vpack.c.bf16 %v451_v9, %v448_v8  ;;  %v457_v12 = vld [vmem:[%s2189_s15 + $0x58] sm:$0xff]  ;;  %v447_v13 = vld [vmem:[%s2189_s15 + $0x8] sm:$0xff]  ;;  %v450_v14 = vld [vmem:[%s2189_s15 + $0x20] sm:$0xff]  ;;  %575 = vmatprep.mubr.f32.mxu0 %v2043_v15 }
  0x51   : > { %v1756_v16 = vpack.c.bf16 %v457_v12, %v454_v10  ;;  %v1720_v17 = vpack.c.bf16 %v450_v14, %v447_v13  ;;  %v446_v18 = vld [vmem:[%s2189_s15] sm:$0xff]  ;;  %v449_v19 = vld [vmem:[%s2189_s15 + $0x18] sm:$0xff]  ;;  %v460_v20 = vld [vmem:[%s2189_s15 + $0x70] sm:$0xff] }
  0x52   : > { %1753 = vmatprep.subr.bf16.mxu1 %v1752_v11  ;;  %v1722_v21 = vpack.c.bf16 %v449_v19, %v446_v18  ;;  %v463_v22 = vld [vmem:[%s2189_s15 + $0x88] sm:$0xff]  ;;  %v453_v23 = vld [vmem:[%s2189_s15 + $0x38] sm:$0xff]  ;;  %v456_v24 = vld [vmem:[%s2189_s15 + $0x50] sm:$0xff] }
  0x53   : > { %1755 = vmatpush3.bf16.msra.mxu1 %v1752_v11  ;;  %1721 = vmatprep.subr.bf16.mxu0 %v1720_v17  ;;  %v1724_v25 = vpack.c.bf16 %v456_v24, %v453_v23  ;;  %v452_v26 = vld [vmem:[%s2189_s15 + $0x30] sm:$0xff]  ;;  %v455_v27 = vld [vmem:[%s2189_s15 + $0x48] sm:$0xff]  ;;  %v1760_v28 = vpack.c.bf16 %v463_v22, %v460_v20  ;;  %v466_v30 = vld [vmem:[%s2189_s15 + $0xa0] sm:$0xff] }
  0x54   : > { %1757 = vmatprep.subr.bf16.mxu1 %v1756_v16  ;;  %1723 = vmatpush1.bf16.msra.mxu0 %v1722_v21  ;;  %v1726_v29 = vpack.c.bf16 %v455_v27, %v452_v26  ;;  %v459_v31 = vld [vmem:[%s2189_s15 + $0x68] sm:$0xff]  ;;  %v462_v32 = vld [vmem:[%s2189_s15 + $0x80] sm:$0xff]  ;;  %v469_v33 = vld [vmem:[%s2189_s15 + $0xb8] sm:$0xff]  ;;  %v496_v26 = vlaneseq }
  0x55   : > { %1725 = vmatprep.subr.bf16.mxu0 %v1724_v25  ;;  %v1728_v34 = vpack.c.bf16 %v462_v32, %v459_v31  ;;  %v458_v35 = vld [vmem:[%s2189_s15 + $0x60] sm:$0xff]  ;;  %v461_v36 = vld [vmem:[%s2189_s15 + $0x78] sm:$0xff]  ;;  %v468_v38 = vld [vmem:[%s2189_s15 + $0xb0] sm:$0xff]  ;;  %v1764_v39 = vpack.c.bf16 %v469_v33, %v466_v30 }
  0x56   : > { %v465_v37 = vld [vmem:[%s2189_s15 + $0x98] sm:$0xff]  ;;  %v1730_v40 = vpack.c.bf16 %v461_v36, %v458_v35  ;;  %v472_v41 = vld [vmem:[%s2189_s15 + $0xd0] sm:$0xff]  ;;  %v475_v42 = vld [vmem:[%s2189_s15 + $0xe8] sm:$0xff]  ;;  %v497_v27 = vshrl.u32 %v496_v26, 7 }
  0x57   : > { %1759 = vmatpush3.bf16.msra.mxu1 %v1756_v16  ;;  %v1732_v43 = vpack.c.bf16 %v468_v38, %v465_v37  ;;  %v464_v44 = vld [vmem:[%s2189_s15 + $0x90] sm:$0xff]  ;;  %v467_v45 = vld [vmem:[%s2189_s15 + $0xa8] sm:$0xff]  ;;  %v474_v47 = vld [vmem:[%s2189_s15 + $0xe0] sm:$0xff]  ;;  %v1768_v48 = vpack.c.bf16 %v475_v42, %v472_v41 }
  0x58   : > { %1761 = vmatprep.subr.bf16.mxu1 %v1760_v28  ;;  %1727 = vmatpush1.bf16.msra.mxu0 %v1726_v29  ;;  %v471_v46 = vld [vmem:[%s2189_s15 + $0xc8] sm:$0xff]  ;;  %v1734_v49 = vpack.c.bf16 %v467_v45, %v464_v44  ;;  %v478_v50 = vld [vmem:[%s2189_s15 + $0x100] sm:$0xff]  ;;  %v481_v51 = vld [vmem:[%s2189_s15 + $0x118] sm:$0xff]  ;;  %v502_v30 = vsub.s32 1, %v497_v27  ;;  %v498_v31 = vsub.s32 0, %v497_v27 }
  0x59   : > { %1729 = vmatprep.subr.bf16.mxu0 %v1728_v34  ;;  %v1736_v52 = vpack.c.bf16 %v474_v47, %v471_v46  ;;  %v470_v53 = vld [vmem:[%s2189_s15 + $0xc0] sm:$0xff]  ;;  %v473_v54 = vld [vmem:[%s2189_s15 + $0xd8] sm:$0xff]  ;;  %v480_v57 = vld [vmem:[%s2189_s15 + $0x110] sm:$0xff]  ;;  %v1772_v58 = vpack.c.bf16 %v481_v51, %v478_v50 }
  0x5a   : > { %v2275_v55 = vld [vmem:[%s2230_s28] sm:$0xff]  ;;  %v477_v56 = vld [vmem:[%s2189_s15 + $0xf8] sm:$0xff]  ;;  %v1738_v59 = vpack.c.bf16 %v473_v54, %v470_v53  ;;  %v484_v60 = vld [vmem:[%s2189_s15 + $0x130] sm:$0xff] }
  0x5b   : > { %1763 = vmatpush3.bf16.msra.mxu1 %v1760_v28  ;;  %1608 = vmatprep.mubr.f32.mxu1 %v2275_v55  ;;  %v487_v61 = vld [vmem:[%s2189_s15 + $0x148] sm:$0xff]  ;;  %v1740_v62 = vpack.c.bf16 %v480_v57, %v477_v56  ;;  %v476_v63 = vld [vmem:[%s2189_s15 + $0xf0] sm:$0xff]  ;;  %v486_v2 = vld [vmem:[%s2189_s15 + $0x140] sm:$0xff]  ;;  %v506_v28 = vsub.s32 2, %v497_v27 }
  0x5c   : > { %1765 = vmatprep.subr.bf16.mxu1 %v1764_v39  ;;  %1731 = vmatpush1.bf16.msra.mxu0 %v1730_v40  ;;  %v479_v0 = vld [vmem:[%s2189_s15 + $0x108] sm:$0xff]  ;;  %v1776_v3 = vpack.c.bf16 %v487_v61, %v484_v60  ;;  %v490_v5 = vld [vmem:[%s2189_s15 + $0x160] sm:$0xff]  ;;  %v493_v6 = vld [vmem:[%s2189_s15 + $0x178] sm:$0xff] }
  0x5d   : > { %1733 = vmatprep.subr.bf16.mxu0 %v1732_v43  ;;  %v483_v1 = vld [vmem:[%s2189_s15 + $0x128] sm:$0xff]  ;;  %v1742_v4 = vpack.c.bf16 %v479_v0, %v476_v63  ;;  %v482_v8 = vld [vmem:[%s2189_s15 + $0x120] sm:$0xff]  ;;  %v485_v9 = vld [vmem:[%s2189_s15 + $0x138] sm:$0xff]  ;;  %v1780_v12 = vpack.c.bf16 %v493_v6, %v490_v5 }
  0x5e   : > { %v1744_v7 = vpack.c.bf16 %v486_v2, %v483_v1  ;;  %v489_v10 = vld [vmem:[%s2189_s15 + $0x158] sm:$0xff]  ;;  %v492_v11 = vld [vmem:[%s2189_s15 + $0x170] sm:$0xff]  ;;  %v1746_v13 = vpack.c.bf16 %v485_v9, %v482_v8  ;;  %v491_v17 = vld [vmem:[%s2189_s15 + $0x168] sm:$0xff] }
  0x5f   : > { %1767 = vmatpush3.bf16.msra.mxu1 %v1764_v39  ;;  %v1748_v14 = vpack.c.bf16 %v492_v11, %v489_v10  ;;  %v488_v16 = vld [vmem:[%s2189_s15 + $0x150] sm:$0xff]  ;;  %v2295_v19 = vld [vmem:[%s2230_s28 + $0x8] sm:$0xff]  ;;  %v2304_v21 = vld [vmem:[%s2230_s28 + $0x18] sm:$0xff] }
  0x60   : > { %1769 = vmatprep.subr.bf16.mxu1 %v1768_v48  ;;  %1735 = vmatpush1.bf16.msra.mxu0 %v1734_v49  ;;  %v1750_v18 = vpack.c.bf16 %v491_v17, %v488_v16  ;;  %v2298_v20 = vld [vmem:[%s2230_s28 + $0x10] sm:$0xff]  ;;  %v2308_v22 = vld [vmem:[%s2230_s28 + $0x20] sm:$0xff]  ;;  %v2314_v23 = vld [vmem:[%s2230_s28 + $0x28] sm:$0xff] }
  0x61   : > { %1737 = vmatprep.subr.bf16.mxu0 %v1736_v52  ;;  %v2318_v24 = vld [vmem:[%s2230_s28 + $0x30] sm:$0xff]  ;;  %v2324_v25 = vld [vmem:[%s2230_s28 + $0x38] sm:$0xff]  ;;  %v494_v29 = vld [vmem:[%s2213_s21] sm:$0x7] }
  0x62   : > { %v507_v32 = vrot.slane %v494_v29, %v506_v28  ;;  %v2338_v33 = vrot.slane %v494_v29, %v502_v30  ;;  %v499_v35 = vrot.slane %v494_v29, %v498_v31 }
  0x63   : > { %1771 = vmatpush3.bf16.msra.mxu1 %v1768_v48 }
  0x64   : > { %1773 = vmatprep.subr.bf16.mxu1 %v1772_v58  ;;  %1739 = vmatpush1.bf16.msra.mxu0 %v1738_v59 }
  0x65   : > { %1741 = vmatprep.subr.bf16.mxu0 %v1740_v62 }
  0x67   : > { %1775 = vmatpush3.bf16.msra.mxu1 %v1772_v58 }
  0x68   : > { %1777 = vmatprep.subr.bf16.mxu1 %v1776_v3  ;;  %1743 = vmatpush1.bf16.msra.mxu0 %v1742_v4 }
  0x69   : > { %1745 = vmatprep.subr.bf16.mxu0 %v1744_v7 }
  0x6b   : > { %1779 = vmatpush3.bf16.msra.mxu1 %v1776_v3 }
  0x6c   : > { %1781 = vmatprep.subr.bf16.mxu1 %v1780_v12  ;;  %1747 = vmatpush1.bf16.msra.mxu0 %v1746_v13 }
  0x6d   : > { %1749 = vmatprep.subr.bf16.mxu0 %v1748_v14 }
  0x6f   : > { %1783 = vmatpush3.bf16.msra.mxu1 %v1780_v12 }
  0x70   : > { %1751 = vmatpush1.bf16.msra.mxu0 %v1750_v18 }
  0x72   : > { %1609 = vmatmul.mubr.f32.vlgmr.msra.gmra.mrb[0].mxu1 %v2295_v19 }
  0x73   : > { %576 = vmatmul.mubr.f32.vlgmr.msra.gmra.mrb[0].mxu0 %v2275_v55  ;;  %1611 = vmatprep.mubr.f32.mxu1 %v2298_v20 }
  0x74   : > { %581 = vmatprep.mubr.f32.mxu0 %v2043_v15 }
  0x76   : > { %1612 = vmatmul.mubr.f32.gmra.mrb[2].mxu1 %v2304_v21 }
  0x77   : > { %582 = vmatmul.mubr.f32.gmra.mrb[2].mxu0 %v2295_v19  ;;  %1614 = vmatprep.mubr.f32.mxu1 %v2308_v22 }
  0x78   : > { %587 = vmatprep.mubr.f32.mxu0 %v2043_v15 }
  0x7a   : > { %1615 = vmatmul.mubr.f32.gmra.mrb[4].mxu1 %v2314_v23 }
  0x7b   : > { %588 = vmatmul.mubr.f32.gmra.mrb[4].mxu0 %v2298_v20  ;;  %1617 = vmatprep.mubr.f32.mxu1 %v2318_v24 }
  0x7c   : > { %593 = vmatprep.mubr.f32.mxu0 %v2043_v15 }
  0x7e   : > { %1618 = vmatmul.mubr.f32.gmra.mrb[6].mxu1 %v2324_v25 }
  0x7f   : > { %594 = vmatmul.mubr.f32.gmra.mrb[6].mxu0 %v2304_v21 }
  0x80   : > { %599 = vmatprep.mubr.f32.mxu0 %v2043_v15 }
  0x83   : > { %600 = vmatmul.mubr.f32.gmra.mrb[8].mxu0 %v2308_v22 }
  0x84   : > { %605 = vmatprep.mubr.f32.mxu0 %v2043_v15 }
  0x87   : > { %606 = vmatmul.mubr.f32.gmra.mrb[10].mxu0 %v2314_v23 }
  0x88   : > { %611 = vmatprep.mubr.f32.mxu0 %v2043_v15 }
  0x8b   : > { %612 = vmatmul.mubr.f32.gmra.mrb[12].mxu0 %v2318_v24 }
  0x8c   : > { %617 = vmatprep.mubr.f32.mxu0 %v2043_v15 }
  0x8f   : > { %618 = vmatmul.mubr.f32.gmra.mrb[14].mxu0 %v2324_v25 }
 0x145   : > { %v1610_v34 = vpop.f32.mrb[0].mxu1 }
 0x146   : > { %v696_v36 = vadd.f32 %v1610_v34, %v507_v32  ;;  %v690_v37 = vpop.f32.mrb[1].mxu1  ;;  %v577_v38 = vpop.f32.mrb[0].mxu0 }
 0x147   : > { %v691_v39 = vadd.f32 %v690_v37, %v507_v32  ;;  %v579_v40 = vpop.f32.mrb[1].mxu0  ;;  %v578_v43 = vadd.f32 %v577_v38, %v499_v35  ;;  %v1095_v37 = vld [vmem:[%s2205_s11 + $0x8] sm:$0xff]  ;;  %v1096_v38 = vld [vmem:[%s2205_s11 + $0x10] sm:$0xff] }
 0x148   : > { %v580_v15 = vadd.f32 %v579_v40, %v2338_v33  ;;  %v1097_v40 = vld [vmem:[%s2205_s11 + $0x18] sm:$0xff] }
 0x149   : > { %v1784_v41 = vpack.c.bf16 %v696_v36, %v691_v39  ;;  %v1613_v42 = vpop.f32.mrb[2].mxu1 }
 0x14a   : > { %v706_v44 = vadd.f32 %v1613_v42, %v507_v32  ;;  %v700_v45 = vpop.f32.mrb[3].mxu1  ;;  %v583_v46 = vpop.f32.mrb[2].mxu0  ;;  %1628 = vmatprep.mubr.f32.mxu1 %v580_v15  ;;  %v1820_v15 = vpack.c.bf16 %v1097_v40, %v1096_v38 }
 0x14b   : > { %1785 = vmatprep.subr.bf16.mxu1 %v1784_v41  ;;  %v701_v47 = vadd.f32 %v700_v45, %v507_v32  ;;  %v584_v48 = vadd.f32 %v583_v46, %v499_v35  ;;  %v585_v49 = vpop.f32.mrb[3].mxu0  ;;  %v1102_v46 = vld [vmem:[%s2205_s11 + $0x40] sm:$0xff] }
 0x14c   : > { %1787 = vmatpush3.bf16.xpose.msra.mxu1 %v1784_v41  ;;  %v586_v8 = vadd.f32 %v585_v49, %v2338_v33  ;;  %v1098_v41 = vld [vmem:[%s2205_s11 + $0x20] sm:$0xff]  ;;  %v1104_v49 = vld [vmem:[%s2205_s11 + $0x50] sm:$0xff] }
 0x14d   : > { %v1788_v50 = vpack.c.bf16 %v706_v44, %v701_v47  ;;  %v1800_v51 = vpack.c.bf16 %v584_v48, %v578_v43  ;;  %v1616_v52 = vpop.f32.mrb[4].mxu1  ;;  %v1100_v43 = vld [vmem:[%s2205_s11 + $0x30] sm:$0xff]  ;;  %v1101_v44 = vld [vmem:[%s2205_s11 + $0x38] sm:$0xff]  ;;  %v1103_v47 = vld [vmem:[%s2205_s11 + $0x48] sm:$0xff] }
 0x14e   : > { %v716_v53 = vadd.f32 %v1616_v52, %v507_v32  ;;  %v589_v54 = vpop.f32.mrb[4].mxu0  ;;  %v710_v56 = vpop.f32.mrb[5].mxu1  ;;  %v1828_v45 = vpack.c.bf16 %v1101_v44, %v1100_v43  ;;  %v1832_v48 = vpack.c.bf16 %v1103_v47, %v1102_v46  ;;  %v1106_v52 = vld [vmem:[%s2205_s11 + $0x60] sm:$0xff] }
 0x14f   : > { %1789 = vmatprep.subr.bf16.mxu1 %v1788_v50  ;;  %v711_v57 = vadd.f32 %v710_v56, %v507_v32  ;;  %v591_v58 = vpop.f32.mrb[5].mxu0  ;;  %v590_v59 = vadd.f32 %v589_v54, %v499_v35  ;;  %v1108_v56 = vld [vmem:[%s2205_s11 + $0x70] sm:$0xff] }
 0x150   : > { %v592_v10 = vadd.f32 %v591_v58, %v2338_v33 }
 0x151   : > { %v1792_v60 = vpack.c.bf16 %v716_v53, %v711_v57  ;;  %v1619_v61 = vpop.f32.mrb[6].mxu1  ;;  %v1107_v53 = vld [vmem:[%s2205_s11 + $0x68] sm:$0xff]  ;;  %v1109_v57 = vld [vmem:[%s2205_s11 + $0x78] sm:$0xff] }
 0x152   : > { %v595_v62 = vpop.f32.mrb[6].mxu0  ;;  %v726_v63 = vadd.f32 %v1619_v61, %v507_v32  ;;  %v720_v0 = vpop.f32.mrb[7].mxu1  ;;  %v1840_v54 = vpack.c.bf16 %v1107_v53, %v1106_v52  ;;  %v1844_v58 = vpack.c.bf16 %v1109_v57, %v1108_v56 }
 0x153   : > { %v596_v1 = vadd.f32 %v595_v62, %v499_v35  ;;  %v597_v2 = vpop.f32.mrb[7].mxu0  ;;  %v721_v3 = vadd.f32 %v720_v0, %v507_v32 }
 0x154   : > { %1791 = vmatpush3.bf16.xpose.msra.mxu1 %v1788_v50  ;;  %v598_v12 = vadd.f32 %v597_v2, %v2338_v33  ;;  %v1105_v50 = vld [vmem:[%s2205_s11 + $0x58] sm:$0xff] }
 0x155   : > { %v1804_v4 = vpack.c.bf16 %v596_v1, %v590_v59  ;;  %1793 = vmatprep.subr.bf16.mxu1 %v1792_v60  ;;  %v1796_v5 = vpack.c.bf16 %v726_v63, %v721_v3 }
 0x156   : > { %v601_v6 = vpop.f32.mrb[8].mxu0 }
 0x157   : > { %v603_v7 = vpop.f32.mrb[9].mxu0  ;;  %v602_v9 = vadd.f32 %v601_v6, %v499_v35 }
 0x158   : > { %v604_v16 = vadd.f32 %v603_v7, %v2338_v33 }
 0x15a   : > { %v607_v11 = vpop.f32.mrb[10].mxu0 }
 0x15b   : > { %1629 = vmatmul.mubr.f32.vlgmr.msra.gmra.mrb[8].mxu1 %v586_v8  ;;  %v608_v13 = vadd.f32 %v607_v11, %v499_v35  ;;  %v609_v14 = vpop.f32.mrb[11].mxu0  ;;  %v1487_v11 = vld [vmem:[%s404_s30] ss:$0 sm:$0xff] }
 0x15c   : > { %1631 = vmatprep.mubr.f32.mxu1 %v592_v10  ;;  %1795 = vmatpush3.bf16.xpose.msra.mxu1 %v1792_v60  ;;  %v610_v32 = vadd.f32 %v609_v14, %v2338_v33 }
 0x15d   : > { %v2345_v17 = vpack.c.bf16 %v608_v13, %v602_v9  ;;  %1797 = vmatprep.subr.bf16.mxu1 %v1796_v5  ;;  %v1488_v13 = vld [vmem:[%s407_s14] ss:$0 sm:$0xff] }
 0x15e   : > { %v613_v18 = vpop.f32.mrb[12].mxu0 }
 0x15f   : > { %1632 = vmatmul.mubr.f32.gmra.mrb[10].mxu1 %v598_v12  ;;  %v614_v26 = vadd.f32 %v613_v18, %v499_v35  ;;  %v615_v27 = vpop.f32.mrb[13].mxu0 }
 0x160   : > { %1642 = vmatprep.mubr.f32.mxu1 %v604_v16  ;;  %v616_v34 = vadd.f32 %v615_v27, %v2338_v33 }
 0x162   : > { %v619_v28 = vpop.f32.mrb[14].mxu0 }
 0x163   : > { %v620_v29 = vadd.f32 %v619_v28, %v499_v35  ;;  %v621_v30 = vpop.f32.mrb[15].mxu0  ;;  %v1094_v35 = vld [vmem:[%s2205_s11] sm:$0xff] }
 0x164   : > { %1799 = vmatpush3.bf16.xpose.msra.mxu1 %v1796_v5  ;;  %v622_v36 = vadd.f32 %v621_v30, %v2338_v33  ;;  %v1816_v39 = vpack.c.bf16 %v1095_v37, %v1094_v35  ;;  %v1099_v33 = vld [vmem:[%s2205_s11 + $0x28] sm:$0xff] }
 0x165   : > { %1801 = vmatprep.subr.bf16.mxu1 %v1800_v51  ;;  %v1812_v31 = vpack.c.bf16 %v620_v29, %v614_v26  ;;  %v1824_v42 = vpack.c.bf16 %v1099_v33, %v1098_v41 }
 0x166   : > { %1817 = vmatprep.subr.bf16.mxu0 %v1816_v39 }
 0x167   : > { %1819 = vmatpush3.bf16.msra.mxu0 %v1816_v39 }
 0x168   : > { %1821 = vmatprep.subr.bf16.mxu0 %v1820_v15 }
 0x16b   : > { %1643 = vmatmul.mubr.f32.vlgmr.msra.gmra.mrb[12].mxu1 %v610_v32  ;;  %1823 = vmatpush3.bf16.msra.mxu0 %v1820_v15 }
 0x16c   : > { %1645 = vmatprep.mubr.f32.mxu1 %v616_v34  ;;  %1803 = vmatpush3.bf16.msra.mxu1 %v1800_v51  ;;  %v1836_v51 = vpack.c.bf16 %v1105_v50, %v1104_v49 }
 0x16d   : > { %1805 = vmatprep.subr.bf16.mxu1 %v1804_v4  ;;  %1825 = vmatprep.subr.bf16.mxu0 %v1824_v42 }
 0x16f   : > { %1646 = vmatmul.mubr.f32.gmra.mrb[14].mxu1 %v622_v36  ;;  %1827 = vmatpush3.bf16.msra.mxu0 %v1824_v42 }
 0x170   : > { %1807 = vmatpush3.bf16.msra.mxu1 %v1804_v4  ;;  %1829 = vmatprep.subr.bf16.mxu0 %v1828_v45 }
 0x171   : > { %1809 = vmatprep.subr.bf16.mxu1 %v2345_v17 }
 0x173   : > { %1831 = vmatpush3.bf16.msra.mxu0 %v1828_v45 }
 0x174   : > { %1833 = vmatprep.subr.bf16.mxu0 %v1832_v48 }
 0x177   : > { %1835 = vmatpush3.bf16.msra.mxu0 %v1832_v48 }
 0x178   : > { %1837 = vmatprep.subr.bf16.mxu0 %v1836_v51 }
 0x17b   : > { %1839 = vmatpush3.bf16.msra.mxu0 %v1836_v51 }
 0x17c   : > { %1841 = vmatprep.subr.bf16.mxu0 %v1840_v54 }
 0x17f   : > { %1843 = vmatpush3.bf16.msra.mxu0 %v1840_v54 }
 0x180   : > { %1845 = vmatprep.subr.bf16.mxu0 %v1844_v58 }
 0x183   : > { %1847 = vmatpush3.bf16.msra.mxu0 %v1844_v58 }
 0x22e   : > { %v1630_v59 = vpop.f32.mrb[8].mxu1 }
 0x22f   : > { %v795_v60 = vpop.f32.mrb[9].mxu1 }
 0x230   : > { %1656 = vmatprep.mubr.msk.f32.mxu1 %vm899_vm0, %v795_v60 }
 0x231   : > { %1657 = vmatmul.mubr.msk.f32.vlgmr.msra.gmra.mrb[16].mxu1 %vm899_vm0, %v1630_v59 }
 0x232   : > { %1811 = vmatpush3.bf16.msra.mxu1 %v2345_v17  ;;  %v1633_v61 = vpop.f32.mrb[10].mxu1  ;;  %v1489_v17 = vld [vmem:[%s410_s16] ss:$0 sm:$0xff] }
 0x233   : > { %1813 = vmatprep.subr.bf16.mxu1 %v1812_v31  ;;  %v805_v62 = vpop.f32.mrb[11].mxu1 }
 0x234   : > { %1659 = vmatprep.mubr.msk.f32.mxu1 %vm899_vm0, %v805_v62 }
 0x235   : > { %1660 = vmatmul.mubr.msk.f32.gmra.mrb[18].mxu1 %vm899_vm0, %v1633_v61 }
 0x236   : > { %1815 = vmatpush3.bf16.msra.mxu1 %v1812_v31 }
 0x23e   : > { %v1644_v63 = vpop.f32.mrb[12].mxu1 }
 0x23f   : > { %v880_v0 = vpop.f32.mrb[13].mxu1 }
 0x240   : > { %1670 = vmatprep.mubr.msk.f32.mxu1 %vm899_vm0, %v880_v0 }
 0x241   : > { %1671 = vmatmul.mubr.msk.f32.vlgmr.msra.gmra.mrb[20].mxu1 %vm899_vm0, %v1644_v63 }
 0x242   : > { %v1647_v1 = vpop.f32.mrb[14].mxu1 }
 0x243   : > { %v890_v2 = vpop.f32.mrb[15].mxu1 }
 0x244   : > { %1673 = vmatprep.mubr.msk.f32.mxu1 %vm899_vm0, %v890_v2 }
 0x245   : > { %1674 = vmatmul.mubr.msk.f32.gmra.mrb[22].mxu1 %vm899_vm0, %v1647_v1 }
 0x304   : > { %v1658_v3 = vpop.f32.mrb[16].mxu1 }
 0x305   : > { %v978_v4 = vpop.f32.mrb[17].mxu1 }
 0x306   : > { %1708 = vmatprep.mubr.f32.mxu0 %v978_v4 }
 0x307   : > { %1709 = vmatmul.mubr.f32.vlgmr.msra.gmra.mrb[16].mxu0 %v1658_v3 }
 0x308   : > { %v1661_v5 = vpop.f32.mrb[18].mxu1 }
 0x309   : > { %v988_v6 = vpop.f32.mrb[19].mxu1 }
 0x30a   : > { %1711 = vmatprep.mubr.f32.mxu0 %v988_v6 }
 0x30b   : > { %1712 = vmatmul.mubr.f32.gmra.mrb[18].mxu0 %v1661_v5 }
 0x314   : > { %v1672_v7 = vpop.f32.mrb[20].mxu1 }
 0x315   : > { %v1075_v8 = vpop.f32.mrb[21].mxu1 }
 0x316   : > { %1714 = vmatprep.mubr.f32.mxu0 %v1075_v8 }
 0x317   : > { %1715 = vmatmul.mubr.f32.gmra.mrb[20].mxu0 %v1672_v7 }
 0x318   : > { %v1675_v9 = vpop.f32.mrb[22].mxu1 }
 0x319   : > { %v1085_v10 = vpop.f32.mrb[23].mxu1 }
 0x31a   : > { %1717 = vmatprep.mubr.f32.mxu0 %v1085_v10 }
 0x31b   : > { %1718 = vmatmul.mubr.f32.gmra.mrb[22].mxu0 %v1675_v9 }
 0x3da   : > { %v1710_v12 = vpop.f32.mrb[16].mxu0 }
 0x3db   : > { %v1189_v14 = vadd.f32 %v1710_v12, %v1487_v11  ;;  %v1183_v16 = vpop.f32.mrb[17].mxu0 }
 0x3dc   : > { %v1184_v18 = vadd.f32 %v1487_v11, %v1183_v16 }
 0x3dd   : > { %v1230_v26 = vmul.f32 %v1488_v13, %v1189_v14 }
 0x3de   : > { %v1229_v27 = vmul.f32 %v1488_v13, %v1184_v18  ;;  %v1713_v28 = vpop.f32.mrb[18].mxu0 }
 0x3df   : > { %v1245_v29 = vadd.f32 %v1489_v17, %v1230_v26  ;;  %v1199_v30 = vadd.f32 %v1713_v28, %v1487_v11  ;;  %v1193_v31 = vpop.f32.mrb[19].mxu0 }
 0x3e0   : > { %v1244_v32 = vadd.f32 %v1489_v17, %v1229_v27  ;;  %v1194_v34 = vadd.f32 %v1487_v11, %v1193_v31 }
 0x3e1   : > { %v2392_v36 = vadd.f32 %v1245_v29, %v2295_v19  ;;  %v1232_v35 = vmul.f32 %v1488_v13, %v1199_v30 }
 0x3e2   : > { %v2395_v37 = vadd.f32 %v1244_v32, %v2275_v55  ;;  %v1231_v38 = vmul.f32 %v1488_v13, %v1194_v34 }
 0x3e3   : > { %1261 = vst [vmem:[%s2230_s28 + $0x8] sm:$0xff] %v2392_v36  ;;  %v1247_v39 = vadd.f32 %v1489_v17, %v1232_v35  ;;  %v1273_v59 = vmul.f32 (!%p1490_p6), %v2392_v36, %v2392_v36 }
 0x3e4   : > { %1260 = vst [vmem:[%s2230_s28] sm:$0xff] %v2395_v37  ;;  %v1246_v40 = vadd.f32 %v1489_v17, %v1231_v38 }
 0x3e5   : > { %v2402_v15 = vadd.f32 %v1247_v39, %v2304_v21 }
 0x3e6   : > { %v1254_v41 = vadd.f32 %v1246_v40, %v2298_v20 }
 0x3e7   : > { %1263 = vst [vmem:[%s2230_s28 + $0x18] sm:$0xff] %v2402_v15 }
 0x3e8   : > { %1262 = vst [vmem:[%s2230_s28 + $0x10] sm:$0xff] %v1254_v41  ;;  %v1274_v58 = vmul.f32 (!%p1490_p6), %v1254_v41, %v1254_v41 }
 0x3ea   : > { %v1716_v19 = vpop.f32.mrb[20].mxu0  ;;  %1284 = vadd.xlane.f32.xlu1 (!%p1490_p6), %v1274_v58 }
 0x3eb   : > { %v1209_v33 = vadd.f32 %v1716_v19, %v1487_v11  ;;  %v1203_v55 = vpop.f32.mrb[21].mxu0 }
 0x3ec   : > { %v1204_v42 = vadd.f32 %v1487_v11, %v1203_v55 }
 0x3ed   : > { %v1234_v43 = vmul.f32 %v1488_v13, %v1209_v33 }
 0x3ee   : > { %v1233_v44 = vmul.f32 %v1488_v13, %v1204_v42  ;;  %v1719_v45 = vpop.f32.mrb[22].mxu0 }
 0x3ef   : > { %v1249_v46 = vadd.f32 %v1489_v17, %v1234_v43  ;;  %v1219_v47 = vadd.f32 %v1719_v45, %v1487_v11  ;;  %v1213_v21 = vpop.f32.mrb[23].mxu0 }
 0x3f0   : > { %v1248_v48 = vadd.f32 %v1489_v17, %v1233_v44  ;;  %v1214_v49 = vadd.f32 %v1487_v11, %v1213_v21 }
 0x3f1   : > { %v1257_v20 = vadd.f32 %v1249_v46, %v2314_v23  ;;  %v1236_v50 = vmul.f32 %v1488_v13, %v1219_v47  ;;  %v1272_v23 = vmul.f32 (!%p1490_p6), %v2395_v37, %v2395_v37 }
 0x3f2   : > { %v1256_v51 = vadd.f32 %v1248_v48, %v2308_v22  ;;  %v1235_v52 = vmul.f32 %v1488_v13, %v1214_v49  ;;  %1271 = sbr.rel (%p1490_p6) target bundleno = 1179 (0x49b), region = 60  ;;  %v1275_v22 = vmul.f32 (!%p1490_p6), %v2402_v15, %v2402_v15 }
 0x3f3   : > { %1265 = vst [vmem:[%s2230_s28 + $0x28] sm:$0xff] %v1257_v20  ;;  %v1251_v53 = vadd.f32 %v1489_v17, %v1236_v50  ;;  %1280 = vadd.xlane.f32.xlu0 (!%p1490_p6), %v1272_v23 }
 0x3f4   : > { %1264 = vst [vmem:[%s2230_s28 + $0x20] sm:$0xff] %v1256_v51  ;;  %v1250_v54 = vadd.f32 %v1489_v17, %v1235_v52  ;;  %1286 = vadd.xlane.f32.xlu1 (!%p1490_p6), %v1275_v22 }
 0x3f5   : > { %v1259_v56 = vadd.f32 %v1251_v53, %v2324_v25  ;;  %v1276_v25 = vmul.f32 (!%p1490_p6), %v1256_v51, %v1256_v51 }
 0x3f6   : > { %v1258_v57 = vadd.f32 %v1250_v54, %v2318_v24  ;;  %v1277_v24 = vmul.f32 (!%p1490_p6), %v1257_v20, %v1257_v20 }
 0x3f7   : > { %1267 = vst [vmem:[%s2230_s28 + $0x38] sm:$0xff] %v1259_v56  ;;  %1282 = vadd.xlane.f32.xlu0 (!%p1490_p6), %v1273_v59  ;;  %v1279_v60 = vmul.f32 (!%p1490_p6), %v1259_v56, %v1259_v56 }
 0x3f8   : > { %1266 = vst [vmem:[%s2230_s28 + $0x30] sm:$0xff] %v1258_v57  ;;  %1290 = vadd.xlane.f32.xlu1 (!%p1490_p6), %v1277_v24  ;;  %v1278_v61 = vmul.f32 (!%p1490_p6), %v1258_v57, %v1258_v57 }
 0x3fb   : > { %1288 = vadd.xlane.f32.xlu0 %v1276_v25 }
 0x3fc   : > { %1294 = vadd.xlane.f32.xlu1 %v1279_v60 }
 0x3ff   : > { %1292 = vadd.xlane.f32.xlu0 %v1278_v61 }
 0x477   : > { %v1285_v62 = vpop.xlane.xlu1 %1284 }
 0x478   : > { %1926 = vrsqrt.f32 %v1285_v62 }
 0x480   : > { %v1281_v63 = vpop.xlane.xlu0 %1280 }
 0x481   : > { %1928 = vrsqrt.f32 %v1281_v63  ;;  %v1287_v0 = vpop.xlane.xlu1 %1286 }
 0x482   : > { %1930 = vrsqrt.f32 %v1287_v0  ;;  %v1927_v4 = vpop.eup %1926 }
 0x483   : > { %v1306_v6 = vmul.f32 %v1927_v4, %v1254_v41 }
 0x484   : > { %v1283_v1 = vpop.xlane.xlu0 %1282 }
 0x485   : > { %1932 = vrsqrt.f32 %v1283_v1  ;;  %v1291_v2 = vpop.xlane.xlu1 %1290  ;;  %1314 = vst [vmem:[%s2230_s28 + $0x10] sm:$0xff] %v1306_v6 }
 0x486   : > { %1934 = vrsqrt.f32 %v1291_v2 }
 0x488   : > { %v1289_v3 = vpop.xlane.xlu0 %1288 }
 0x489   : > { %1936 = vrsqrt.f32 %v1289_v3  ;;  %v1295_v7 = vpop.xlane.xlu1 %1294 }
 0x48a   : > { %1938 = vrsqrt.f32 %v1295_v7 }
 0x48b   : > { %v1929_v5 = vpop.eup %1928 }
 0x48c   : > { %v1293_v8 = vpop.xlane.xlu0 %1292  ;;  %v1304_v9 = vmul.f32 %v1929_v5, %v2395_v37  ;;  %v1931_v10 = vpop.eup %1930 }
 0x48d   : > { %1940 = vrsqrt.f32 %v1293_v8  ;;  %v1307_v12 = vmul.f32 %v1931_v10, %v2402_v15 }
 0x48e   : > { %1312 = vst [vmem:[%s2230_s28] sm:$0xff] %v1304_v9 }
 0x48f   : > { %v1933_v11 = vpop.eup %1932  ;;  %1315 = vst [vmem:[%s2230_s28 + $0x18] sm:$0xff] %v1307_v12 }
 0x490   : > { %v1305_v13 = vmul.f32 %v1933_v11, %v2392_v36  ;;  %v1935_v14 = vpop.eup %1934 }
 0x491   : > { %v1309_v17 = vmul.f32 %v1935_v14, %v1257_v20 }
 0x492   : > { %1313 = vst [vmem:[%s2230_s28 + $0x8] sm:$0xff] %v1305_v13 }
 0x493   : > { %v1937_v16 = vpop.eup %1936  ;;  %1317 = vst [vmem:[%s2230_s28 + $0x28] sm:$0xff] %v1309_v17 }
 0x494   : > { %v1308_v18 = vmul.f32 %v1937_v16, %v1256_v51  ;;  %v1939_v26 = vpop.eup %1938 }
 0x495   : > { %v1311_v28 = vmul.f32 %v1939_v26, %v1259_v56 }
 0x496   : > { %1316 = vst [vmem:[%s2230_s28 + $0x20] sm:$0xff] %v1308_v18 }
 0x497   : > { %v1941_v27 = vpop.eup %1940  ;;  %1319 = vst [vmem:[%s2230_s28 + $0x38] sm:$0xff] %v1311_v28 }
 0x498   : > { %v1310_v29 = vmul.f32 %v1941_v27, %v1258_v57 }
 0x49a   : > { %1318 = vst [vmem:[%s2230_s28 + $0x30] sm:$0xff] %v1310_v29 }
 0x49b PF: > { %s20_s8 = sadd.s32 1, %s2038_s8   ;;  %s2480_s27 = sld [smem:[#allocation9_spill]] }
 0x49c   : > { %p17_p7 = scmp.ge.s32.totalorder %s20_s8, 10   ;;  %s2481_s30 = sld [smem:[#allocation5_spill]] }
 0x49d   : > { %s2482_s28 = sld [smem:[#allocation6_spill]]  ;;  %s2483_s29 = sld [smem:[#allocation7_spill]] }
 0x49e   : > { %s2484_s14 = sld [smem:[#allocation8_spill]]  ;;  %s2485_s24 = smov %s2014_s25 }
 0x49f   : > { %s2486_s25 = smov %s2018_s26  ;;  %19 = sbr.rel (!%p17_p7) target bundleno = 8 (0x8), region = 114 }
 0x4a1   : > { %s2487_s26 = smov %s2480_s27 }
 0x4a2   : > { %s2488_s27 = smov %s2481_s30 }
 0x4a4   : > { %s2489_s30 = smov %s2484_s14 }
 0x4a6   :  { %1344 = vsyncpa [#allocation3], 1 }
 0x4a7   :  { %1346 = vsyncpa [#allocation3 + $0x1], 1 }

// kernel: _lambda_.7
= control target key start
LH: loop header
LB: loop body
LE: loop exit
PB: predicated region body
PF: predicated region fallthrough
CT: control target
= control target key end

     0   :  { %8 = vsyncpa [#allocation5], 0  ;;  %s4884_s12 = smov 0   ;;  %s4886_s13 = smov 0   ;;  %s5916_s0 = inlined_call_operand.vmem [shape: f32[4,32,384], index: 0, kind: input, shape index: {}]   ;;  %s5917_s1 = inlined_call_operand.vmem [shape: f32[128,384], index: 1, kind: input, shape index: {}]   ;;  %s5918_s2 = inlined_call_operand.vmem [shape: f32[1,384], index: 2, kind: input, shape index: {}]   ;;  %s5919_s3 = inlined_call_operand.hbm [shape: f32[4,128], index: 3, kind: output, shape index: {}]  }
   0x1   :  { %s4888_s14 = smov 0   ;;  %s4890_s15 = smov 0  }
   0x2   :  { %s4892_s16 = smov 0  }
   0x3 LB: > { %s3439_s17 = sadd.s32 4294967295, %s4856_s16   ;;  %s23_s18 = sadd.s32 1, %s4852_s15  ;;  %s4856_s16 = sphi %s4892_s16, %s14_s16   ;;  %s4852_s15 = sphi %s4890_s15, %s5946_s15   ;;  %s4848_s14 = sphi %s4888_s14, %s5945_s14   ;;  %s4844_s13 = sphi %s4886_s13, %s5944_s13   ;;  %s4840_s12 = sphi %s4884_s12, %s5943_s12  }
   0x4   : > { %p24_p0 = scmp.ge.s32.totalorder %s23_s18, 4  ;;  %p42_p1 = scmp.ne.s32.totalorder %s4844_s13, %s4840_s12 }
   0x5   : > { %p43_p2 = scmp.eq.s32.totalorder %s4856_s16, 0  ;;  %s35_s20 = sadd.s32 1, %s4844_s13 }
   0x6   : > { %s5948_s18 = smov (%p24_p0, %s23_s18), 0  ;;  %p3441_p5 = scmp.ge.s32.totalorder %s4856_s16, 4 }
   0x7   : > { %p44_p3 = por %p43_p2, %p42_p1  ;;  %s31_s19 = ssub.s32 %s4852_s15, %s5948_s18 }
   0x8   : > { %p33_p4 = scmp.eq.s32.totalorder %s31_s19, 0  ;;  %142 = sbr.rel (%p3441_p5) target bundleno = 26 (0x1a), region = 24 }
   0xa   : > { %s4920_s21 = scalar_select %p33_p4, %s4844_s13, %s35_s20  }
   0xf   : > { %145 = sbr.rel (!%p44_p3) target bundleno = 26 (0x1a), region = 28  ;;  %s147_s22 = sand.u32 (%p44_p3), 1, %s4844_s13  }
  0x10   : > { %s4412_s23 = smul.u32 (%p44_p3), 24, %s4852_s15 }
  0x11   : > { %s4411_s24 = smul.u32 (%p44_p3), 96, %s147_s22 }
  0x12   : > { %s155_s27 = scalar_lea.vmem (%p44_p3), %s5916_s0, %s4412_s23 }
  0x13   : > { %v168_v0 = vld [vmem:[%s155_s27] sm:$0xff] (%p44_p3)  ;;  %v170_v1 = vld [vmem:[%s155_s27 + $0x8] sm:$0xff] (%p44_p3)  ;;  %v172_v2 = vld [vmem:[%s155_s27 + $0x10] sm:$0xff] (%p44_p3)  ;;  %s149_s28 = scalar_lea.vmem (%p44_p3), [#allocation3], %s4411_s24 }
  0x14   : > { %169 = vst [vmem:[%s149_s28] sm:$0xff] (%p44_p3), %v168_v0  ;;  %171 = vst [vmem:[%s149_s28 + $0x8] sm:$0xff] (%p44_p3), %v170_v1  ;;  %v174_v3 = vld [vmem:[%s155_s27 + $0x60] sm:$0xff] (%p44_p3)  ;;  %v176_v4 = vld [vmem:[%s155_s27 + $0x68] sm:$0xff] (%p44_p3) }
  0x15   : > { %173 = vst [vmem:[%s149_s28 + $0x10] sm:$0xff] (%p44_p3), %v172_v2  ;;  %v178_v5 = vld [vmem:[%s155_s27 + $0x70] sm:$0xff] (%p44_p3)  ;;  %175 = vst [vmem:[%s149_s28 + $0x18] sm:$0xff] (%p44_p3), %v174_v3  ;;  %v180_v6 = vld [vmem:[%s155_s27 + $0xc0] sm:$0xff] (%p44_p3) }
  0x16   : > { %177 = vst [vmem:[%s149_s28 + $0x20] sm:$0xff] %v176_v4  ;;  %179 = vst [vmem:[%s149_s28 + $0x28] sm:$0xff] %v178_v5  ;;  %v182_v7 = vld [vmem:[%s155_s27 + $0xc8] sm:$0xff]  ;;  %v184_v8 = vld [vmem:[%s155_s27 + $0xd0] sm:$0xff] }
  0x17   : > { %181 = vst [vmem:[%s149_s28 + $0x30] sm:$0xff] %v180_v6  ;;  %183 = vst [vmem:[%s149_s28 + $0x38] sm:$0xff] %v182_v7  ;;  %v186_v9 = vld [vmem:[%s155_s27 + $0x120] sm:$0xff]  ;;  %v188_v10 = vld [vmem:[%s155_s27 + $0x128] sm:$0xff] }
  0x18   : > { %185 = vst [vmem:[%s149_s28 + $0x40] sm:$0xff] %v184_v8  ;;  %v190_v11 = vld [vmem:[%s155_s27 + $0x130] sm:$0xff]  ;;  %187 = vst [vmem:[%s149_s28 + $0x48] sm:$0xff] %v186_v9 }
  0x19   : > { %189 = vst [vmem:[%s149_s28 + $0x50] sm:$0xff] %v188_v10  ;;  %191 = vst [vmem:[%s149_s28 + $0x58] sm:$0xff] %v190_v11 }
  0x1a PF: > { %p3443_p6 = scmp.ge.s32.totalorder %s4856_s16, 1  ;;  %p196_p7 = scmp.lt.s32.totalorder %s4856_s16, 5 }
  0x1c   : > { %p197_p8 = pnand %p3443_p6, %p196_p7 }
  0x1e   : > { %200 = sbr.rel (%p197_p8) target bundleno = 2489 (0x9b9), region = 51 }
  0x25   : > { %s203_s29 = sand.u32 1, %s4840_s12   ;;  %p3444_p9 = scmp.ne.s32.totalorder %s4848_s14, 0 }
  0x26   : > { %s4413_s30 = smul.u32 96, %s203_s29  ;;  %v4858_v12 = vmov (!%p3444_p9), 0.0  }
  0x27   : > { %225 = sbr.rel (%p3444_p9) target bundleno = 46 (0x2e), region = 59  ;;  %226 = vst [vmem:[#allocation2] sm:$0xf] (!%p3444_p9), %v4858_v12 }
  0x28   : > { %s4931_s4 = scalar_lea.vmem [#allocation3], %s4413_s30 }
  0x2e PF: > { %v236_v13 = vld [vmem:[%s5917_s1 + $0x8] sm:$0xff]  ;;  %v239_v14 = vld [vmem:[%s5917_s1 + $0x20] sm:$0xff]  ;;  %v238_v17 = vld [vmem:[%s5917_s1 + $0x18] sm:$0xff]  ;;  %v5925_v20 = vmov 0.0|0.0   ;;  %v5923_v21 = vmov 0.0   ;;  %vm4861_vm0 = vmmov 0  }
  0x2f   : > { %v235_v15 = vld [vmem:[%s5917_s1] sm:$0xff]  ;;  %v4943_v16 = vpack.c.bf16 %v239_v14, %v236_v13  ;;  %v242_v18 = vld [vmem:[%s5917_s1 + $0x38] sm:$0xff]  ;;  %v245_v19 = vld [vmem:[%s5917_s1 + $0x50] sm:$0xff]  ;;  %3995 = vmatprep.subr.bf16.mxu1 %v5925_v20  ;;  %364 = vmatprep.mubr.f32.mxu0 %v5923_v21  ;;  %p3541_p10 = scmp.ne.s32.totalorder %s4848_s14, 3 }
  0x30   : > { %v4956_v22 = vpack.c.bf16 %v238_v17, %v235_v15  ;;  %v4958_v23 = vpack.c.bf16 %v245_v19, %v242_v18  ;;  %v241_v24 = vld [vmem:[%s5917_s1 + $0x30] sm:$0xff]  ;;  %v244_v25 = vld [vmem:[%s5917_s1 + $0x48] sm:$0xff]  ;;  %3715 = vmatprep.mubr.msk.f32.mxu1 %vm4861_vm0, %v5923_v21  ;;  %v251_v27 = vld [vmem:[%s5917_s1 + $0x80] sm:$0xff]  ;;  %vm3311_vm1 = vcmask (!%p3541_p10), 1043456  }
  0x31   : > { %v248_v26 = vld [vmem:[%s5917_s1 + $0x68] sm:$0xff]  ;;  %3964 = vmatprep.subr.bf16.mxu0 %v4943_v16  ;;  %v4976_v28 = vpack.c.bf16 %v244_v25, %v241_v24  ;;  %v247_v30 = vld [vmem:[%s5917_s1 + $0x60] sm:$0xff]  ;;  %v250_v31 = vld [vmem:[%s5917_s1 + $0x78] sm:$0xff] }
  0x32   : > { %3966 = vmatpush1.bf16.msra.mxu0 %v4956_v22  ;;  %v4979_v29 = vpack.c.bf16 %v251_v27, %v248_v26  ;;  %v254_v32 = vld [vmem:[%s5917_s1 + $0x98] sm:$0xff]  ;;  %v257_v33 = vld [vmem:[%s5917_s1 + $0xb0] sm:$0xff]  ;;  %v4994_v34 = vpack.c.bf16 %v250_v31, %v247_v30  ;;  %v256_v37 = vld [vmem:[%s5917_s1 + $0xa8] sm:$0xff]  ;;  %v285_v31 = vlaneseq }
  0x33   : > { %3968 = vmatprep.subr.bf16.mxu0 %v4958_v23  ;;  %v4997_v35 = vpack.c.bf16 %v257_v33, %v254_v32  ;;  %v253_v36 = vld [vmem:[%s5917_s1 + $0x90] sm:$0xff]  ;;  %v260_v38 = vld [vmem:[%s5917_s1 + $0xc8] sm:$0xff]  ;;  %v263_v39 = vld [vmem:[%s5917_s1 + $0xe0] sm:$0xff]  ;;  %v4862_v33 = vmov 1966171168  }
  0x34   : > { %v237_v40 = vld [vmem:[%s5917_s1 + $0x10] sm:$0xff]  ;;  %v240_v41 = vld [vmem:[%s5917_s1 + $0x28] sm:$0xff]  ;;  %v243_v43 = vld [vmem:[%s5917_s1 + $0x40] sm:$0xff]  ;;  %v5023_v44 = vpack.c.bf16 %v256_v37, %v253_v36  ;;  %v5029_v46 = vpack.c.bf16 %v263_v39, %v260_v38  ;;  %v5202_v32 = vshrl.u32 %v285_v31, 7  ;;  %v443_v36 = vunpack.c.l.s4 %v4862_v33 }
  0x35   : > { %v5017_v42 = vpack.c.bf16 %v240_v41, %v237_v40  ;;  %v246_v45 = vld [vmem:[%s5917_s1 + $0x58] sm:$0xff]  ;;  %v259_v47 = vld [vmem:[%s5917_s1 + $0xc0] sm:$0xff]  ;;  %v269_v51 = vld [vmem:[%s5917_s1 + $0x110] sm:$0xff] }
  0x36   : > { %3970 = vmatpush1.bf16.msra.mxu0 %v4976_v28  ;;  %v262_v48 = vld [vmem:[%s5917_s1 + $0xd8] sm:$0xff]  ;;  %v5041_v50 = vpack.c.bf16 %v246_v45, %v243_v43  ;;  %v249_v52 = vld [vmem:[%s5917_s1 + $0x70] sm:$0xff]  ;;  %v252_v53 = vld [vmem:[%s5917_s1 + $0x88] sm:$0xff]  ;;  %5931 = vst [vmem:[#allocation7_spill] sm:$0xff] %v5202_v32  ;;  %v5922_v37 = vsub.s32 0, %v5202_v32  ;;  %v5921_v39 = vsub.s32 1, %v5202_v32  ;;  %v444_v40 = vunpack.c.0.s8 %v443_v36 }
  0x37   : > { %3972 = vmatprep.subr.bf16.mxu0 %v4979_v29  ;;  %v266_v49 = vld [vmem:[%s5917_s1 + $0xf8] sm:$0xff]  ;;  %3997 = vmatpush3.bf16.msra.mxu1 %v5017_v42  ;;  %v5054_v54 = vpack.c.bf16 %v262_v48, %v259_v47  ;;  %v265_v56 = vld [vmem:[%s5917_s1 + $0xf0] sm:$0xff]  ;;  %v268_v57 = vld [vmem:[%s5917_s1 + $0x108] sm:$0xff]  ;;  %v5069_v59 = vpack.c.bf16 %v252_v53, %v249_v52 }
  0x38   : > { %3998 = vmatprep.subr.bf16.mxu1 %v5925_v20  ;;  %v5057_v55 = vpack.c.bf16 %v269_v51, %v266_v49  ;;  %v272_v58 = vld [vmem:[%s5917_s1 + $0x128] sm:$0xff]  ;;  %v275_v60 = vld [vmem:[%s5917_s1 + $0x140] sm:$0xff]  ;;  %v258_v62 = vld [vmem:[%s5917_s1 + $0xb8] sm:$0xff]  ;;  %v5082_v63 = vpack.c.bf16 %v268_v57, %v265_v56  ;;  %v5218_v45 = vsub.s32 %v444_v40, %v5202_v32 }
  0x39   : > { %v255_v61 = vld [vmem:[%s5917_s1 + $0xa0] sm:$0xff]  ;;  %v5085_v0 = vpack.c.bf16 %v275_v60, %v272_v58  ;;  %v274_v2 = vld [vmem:[%s5917_s1 + $0x138] sm:$0xff]  ;;  %v281_v5 = vld [vmem:[%s5917_s1 + $0x170] sm:$0xff] }
  0x3a   : > { %3974 = vmatpush1.bf16.msra.mxu0 %v4994_v34  ;;  %v271_v1 = vld [vmem:[%s5917_s1 + $0x120] sm:$0xff]  ;;  %v278_v3 = vld [vmem:[%s5917_s1 + $0x158] sm:$0xff]  ;;  %v5097_v4 = vpack.c.bf16 %v258_v62, %v255_v61  ;;  %v261_v6 = vld [vmem:[%s5917_s1 + $0xd0] sm:$0xff] }
  0x3b   : > { %3976 = vmatprep.subr.bf16.mxu0 %v4997_v35  ;;  %4000 = vmatpush3.bf16.msra.mxu1 %v5041_v50  ;;  %v264_v7 = vld [vmem:[%s5917_s1 + $0xe8] sm:$0xff]  ;;  %v5110_v8 = vpack.c.bf16 %v274_v2, %v271_v1  ;;  %v5113_v9 = vpack.c.bf16 %v281_v5, %v278_v3  ;;  %v277_v10 = vld [vmem:[%s5917_s1 + $0x150] sm:$0xff]  ;;  %v267_v13 = vld [vmem:[%s5917_s1 + $0x100] sm:$0xff] }
  0x3c   : > { %4001 = vmatprep.subr.bf16.mxu1 %v5925_v20  ;;  %v280_v11 = vld [vmem:[%s5917_s1 + $0x168] sm:$0xff]  ;;  %v5122_v12 = vpack.c.bf16 %v264_v7, %v261_v6  ;;  %v270_v14 = vld [vmem:[%s5917_s1 + $0x118] sm:$0xff]  ;;  %v273_v18 = vld [vmem:[%s5917_s1 + $0x130] sm:$0xff] }
  0x3d   : > { %v5132_v15 = vpack.c.bf16 %v280_v11, %v277_v10  ;;  %v5136_v17 = vpack.c.bf16 %v270_v14, %v267_v13  ;;  %v276_v19 = vld [vmem:[%s5917_s1 + $0x148] sm:$0xff]  ;;  %v5146_v24 = vld [vmem:[#allocation2] sm:$0xf]  ;;  %v282_v27 = vld [vmem:[%s5917_s1 + $0x178] sm:$0xff] }
  0x3e   : > { %3978 = vmatpush1.bf16.msra.mxu0 %v5023_v44  ;;  %v5149_v25 = vpack.c.bf16 %v276_v19, %v273_v18  ;;  %v279_v26 = vld [vmem:[%s5917_s1 + $0x160] sm:$0xff]  ;;  %v5234_v60 = vld [vmem:[%s4931_s4 + $0x48] ss:$8 sm:$0x7] }
  0x3f   : > { %3980 = vmatprep.subr.bf16.mxu0 %v5029_v46  ;;  %4003 = vmatpush3.bf16.msra.mxu1 %v5069_v59  ;;  %v5163_v30 = vpack.c.bf16 %v282_v27, %v279_v26  ;;  %v283_v38 = vld [vmem:[%s5918_s2] sm:$0x7]  ;;  %v5223_v52 = vld [vmem:[%s4931_s4] ss:$8 sm:$0x7]  ;;  %v505_v13 = vrot.slane %v5234_v60, 1 }
  0x40   : > { %4004 = vmatprep.subr.bf16.mxu1 %v5925_v20  ;;  %v5211_v41 = vrot.slane %v283_v38, %v5922_v37  ;;  %v5215_v43 = vrot.slane %v283_v38, %v5921_v39  ;;  %v5226_v53 = vld [vmem:[%s4931_s4 + $0x18] ss:$8 sm:$0x7]  ;;  %v502_v1 = vrot.slane %v5223_v52, 1 }
  0x41   : > { %v5231_v58 = vld [vmem:[%s4931_s4 + $0x30] ss:$8 sm:$0x7]  ;;  %v503_v2 = vrot.slane %v5226_v53, 1 }
  0x42   : > { %3982 = vmatpush1.bf16.msra.mxu0 %v5054_v54  ;;  %5932 = vst [vmem:[#allocation8_spill] sm:$0xff] %v5215_v43  ;;  %v504_v11 = vrot.slane %v5231_v58, 1 }
  0x43   : > { %3984 = vmatprep.subr.bf16.mxu0 %v5057_v55  ;;  %4006 = vmatpush3.bf16.msra.mxu1 %v5097_v4 }
  0x44   : > { %4007 = vmatprep.subr.bf16.mxu1 %v5925_v20 }
  0x46   : > { %3986 = vmatpush1.bf16.msra.mxu0 %v5082_v63 }
  0x47   : > { %3988 = vmatprep.subr.bf16.mxu0 %v5085_v0  ;;  %4009 = vmatpush3.bf16.msra.mxu1 %v5122_v12 }
  0x48   : > { %4010 = vmatprep.subr.bf16.mxu1 %v5925_v20 }
  0x4a   : > { %3990 = vmatpush1.bf16.msra.mxu0 %v5110_v8 }
  0x4b   : > { %3992 = vmatprep.subr.bf16.mxu0 %v5113_v9  ;;  %4012 = vmatpush3.bf16.msra.mxu1 %v5136_v17 }
  0x4c   : > { %4013 = vmatprep.subr.bf16.mxu1 %v5925_v20 }
  0x4e   : > { %3994 = vmatpush1.bf16.msra.mxu0 %v5132_v15 }
  0x4f   : > { %4020 = vmatprep.subr.bf16.mxu0 %v4943_v16  ;;  %4015 = vmatpush3.bf16.msra.mxu1 %v5149_v25 }
  0x50   : > { %4016 = vmatprep.subr.bf16.mxu1 %v5925_v20 }
  0x51   : > { %365 = vmatmul.mubr.f32.vlgmr.msra.gmra.mrb[0].mxu0 %v5146_v24 }
  0x52   : > { %4022 = vmatpush1.bf16.msra.mxu0 %v4956_v22  ;;  %762 = vmatprep.mubr.f32.mxu0 %v5923_v21 }
  0x53   : > { %4024 = vmatprep.subr.bf16.mxu0 %v4958_v23  ;;  %4018 = vmatpush3.bf16.msra.mxu1 %v5163_v30 }
  0x54   : > { %4051 = vmatprep.subr.bf16.mxu1 %v5925_v20 }
  0x56   : > { %4026 = vmatpush1.bf16.msra.mxu0 %v4976_v28  ;;  %3716 = vmatmul.mubr.f32.vlgmr.msra.gmra.mrb[0].mxu1 %v5146_v24 }
  0x57   : > { %4028 = vmatprep.subr.bf16.mxu0 %v4979_v29  ;;  %4053 = vmatpush3.bf16.msra.mxu1 %v5017_v42 }
  0x58   : > { %4054 = vmatprep.subr.bf16.mxu1 %v5925_v20  ;;  %3750 = vmatprep.mubr.msk.f32.mxu1 %vm4861_vm0, %v5923_v21 }
  0x5a   : > { %4030 = vmatpush1.bf16.msra.mxu0 %v4994_v34 }
  0x5b   : > { %4032 = vmatprep.subr.bf16.mxu0 %v4997_v35  ;;  %4056 = vmatpush3.bf16.msra.mxu1 %v5041_v50 }
  0x5c   : > { %4057 = vmatprep.subr.bf16.mxu1 %v5925_v20 }
  0x5e   : > { %4034 = vmatpush1.bf16.msra.mxu0 %v5023_v44 }
  0x5f   : > { %4036 = vmatprep.subr.bf16.mxu0 %v5029_v46  ;;  %4059 = vmatpush3.bf16.msra.mxu1 %v5069_v59 }
  0x60   : > { %4060 = vmatprep.subr.bf16.mxu1 %v5925_v20 }
  0x62   : > { %4038 = vmatpush1.bf16.msra.mxu0 %v5054_v54 }
  0x63   : > { %4040 = vmatprep.subr.bf16.mxu0 %v5057_v55  ;;  %4062 = vmatpush3.bf16.msra.mxu1 %v5097_v4 }
  0x64   : > { %4063 = vmatprep.subr.bf16.mxu1 %v5925_v20 }
  0x66   : > { %4042 = vmatpush1.bf16.msra.mxu0 %v5082_v63 }
  0x67   : > { %4044 = vmatprep.subr.bf16.mxu0 %v5085_v0  ;;  %4065 = vmatpush3.bf16.msra.mxu1 %v5122_v12 }
  0x68   : > { %4066 = vmatprep.subr.bf16.mxu1 %v5925_v20 }
  0x6a   : > { %4046 = vmatpush1.bf16.msra.mxu0 %v5110_v8 }
  0x6b   : > { %4048 = vmatprep.subr.bf16.mxu0 %v5113_v9  ;;  %4068 = vmatpush3.bf16.msra.mxu1 %v5136_v17 }
  0x6c   : > { %4069 = vmatprep.subr.bf16.mxu1 %v5925_v20 }
  0x6e   : > { %4050 = vmatpush1.bf16.msra.mxu0 %v5132_v15 }
  0x6f   : > { %4076 = vmatprep.subr.bf16.mxu0 %v4943_v16  ;;  %4071 = vmatpush3.bf16.msra.mxu1 %v5149_v25 }
  0x70   : > { %4072 = vmatprep.subr.bf16.mxu1 %v5925_v20 }
  0x73   : > { %4074 = vmatpush3.bf16.msra.mxu1 %v5163_v30 }
  0x74   : > { %4107 = vmatprep.subr.bf16.mxu1 %v5925_v20 }
 0x124   : > { %v366_v47 = vpop.f32.mrb[0].mxu0 }
 0x125   : > { %v367_v48 = vadd.f32 %v366_v47, %v5211_v41  ;;  %v368_v49 = vpop.f32.mrb[1].mxu0 }
 0x126   : > { %v369_v51 = vadd.f32 %v368_v49, %v5215_v43 }
 0x127   : > { %v448_v56 = vrot.slane %v367_v48, %v5218_v45  ;;  %v5920_v48 = vsub.s32 2, %v5202_v32 }
 0x128   : > { %v517_v57 = vrot.slane %v369_v51, %v5218_v45 }
 0x129   : > { %v449_v61 = vcombine.high %v448_v56, %v448_v56  ;;  %v456_v62 = vrot.slane %v448_v56, %v5218_v45  ;;  %v437_v33 = vpop.f32.mrb[0].mxu1 }
 0x12a   : > { %v518_v3 = vcombine.high %v517_v57, %v517_v57  ;;  %v525_v5 = vrot.slane %v517_v57, %v5218_v45  ;;  %v3717_v49 = vpop.f32.mrb[1].mxu1 }
 0x12b   : > { %v463_v6 = vrot.slane %v449_v61, %v5218_v45  ;;  %v464_v7 = vcombine.high %v456_v62, %v456_v62  ;;  %v470_v10 = vadd.f32 %v456_v62, %v5223_v52 }
 0x12c   : > { %v532_v14 = vrot.slane %v518_v3, %v5218_v45  ;;  %v533_v18 = vcombine.high %v525_v5, %v525_v5  ;;  %v539_v40 = vadd.f32 %v525_v5, %v502_v1  ;;  %v5251_v1 = vrot.slane %v283_v38, %v5920_v48 }
 0x12d   : > { %v465_v19 = vcombine.high %v463_v6, %v463_v6  ;;  %v471_v26 = vadd.f32 %v5226_v53, %v463_v6  ;;  %v472_v27 = vadd.f32 %v5231_v58, %v464_v7  ;;  %v3448_v31 = vmul.f32 -1.442695, %v470_v10 }
 0x12e   : > { %v534_v36 = vcombine.high %v532_v14, %v532_v14  ;;  %v540_v47 = vadd.f32 %v532_v14, %v503_v2  ;;  %v541_v61 = vadd.f32 %v533_v18, %v504_v11  ;;  %v3452_v6 = vmul.f32 -1.442695, %v539_v40 }
 0x12f   : > { %v473_v51 = vadd.f32 %v5234_v60, %v465_v19  ;;  %4466 = vpow2.f32 %v3448_v31  ;;  %v3449_v56 = vmul.f32 -1.442695, %v471_v26  ;;  %v3450_v57 = vmul.f32 -1.442695, %v472_v27 }
 0x130   : > { %v542_v3 = vadd.f32 %v534_v36, %v505_v13  ;;  %v3453_v7 = vmul.f32 -1.442695, %v540_v47  ;;  %v3454_v2 = vmul.f32 -1.442695, %v541_v61  ;;  %v438_v10 = vadd.f32 %v437_v33, %v5251_v1 }
 0x131   : > { %4468 = vpow2.f32 %v3449_v56  ;;  %v3451_v62 = vmul.f32 -1.442695, %v473_v51 }
 0x132   : > { %4470 = vpow2.f32 %v3450_v57  ;;  %v3455_v5 = vmul.f32 -1.442695, %v542_v3  ;;  %v574_v13 = vrot.slane %v438_v10, %v5218_v45  ;;  %v600_v3 = vrot.slane %v5223_v52, 2 }
 0x133   : > { %4472 = vpow2.f32 %v3451_v62  ;;  %v631_v52 = vrot.slane %v5146_v24, %v5218_v45 }
 0x134   : > { %4474 = vpow2.f32 %v3452_v6  ;;  %v575_v36 = vcombine.high %v574_v13, %v574_v13  ;;  %v582_v49 = vrot.slane %v574_v13, %v5218_v45 }
 0x135   : > { %4476 = vpow2.f32 %v3453_v7 }
 0x136   : > { %4478 = vpow2.f32 %v3454_v2  ;;  %v589_v57 = vrot.slane %v575_v36, %v5218_v45  ;;  %v590_v2 = vcombine.high %v582_v49, %v582_v49 }
 0x137   : > { %4480 = vpow2.f32 %v3455_v5 }
 0x138   : > { %v591_v5 = vcombine.high %v589_v57, %v589_v57 }
 0x139   : > { %v4467_v14 = vpop.eup %4466 }
 0x13a   : > { %v486_v11 = vadd.f32 1.0, %v4467_v14  ;;  %v601_v14 = vrot.slane %v5226_v53, 2 }
 0x13b   : > { %v4469_v18 = vpop.eup %4468 }
 0x13c   : > { %v4471_v19 = vpop.eup %4470  ;;  %v487_v26 = vadd.f32 1.0, %v4469_v18  ;;  %4482 = vrcp.f32 %v486_v11  ;;  %v602_v18 = vrot.slane %v5231_v58, 2 }
 0x13d   : > { %v4473_v27 = vpop.eup %4472  ;;  %v488_v31 = vadd.f32 1.0, %v4471_v19 }
 0x13e   : > { %v489_v38 = vadd.f32 1.0, %v4473_v27  ;;  %4484 = vrcp.f32 %v487_v26  ;;  %v4475_v40 = vpop.eup %4474  ;;  %v603_v26 = vrot.slane %v5234_v60, 2 }
 0x13f   : > { %4486 = vrcp.f32 %v488_v31  ;;  %v4477_v47 = vpop.eup %4476  ;;  %v555_v56 = vadd.f32 1.0, %v4475_v40 }
 0x140   : > { %4488 = vrcp.f32 %v489_v38  ;;  %v4479_v33 = vpop.eup %4478  ;;  %v556_v61 = vadd.f32 1.0, %v4477_v47 }
 0x141   : > { %v4481_v51 = vpop.eup %4480  ;;  %v557_v62 = vadd.f32 1.0, %v4479_v33  ;;  %4490 = vrcp.f32 %v555_v56  ;;  %v632_v33 = vcombine.high %v631_v52, %v631_v52 }
 0x142   : > { %v558_v7 = vadd.f32 1.0, %v4481_v51  ;;  %4492 = vrcp.f32 %v556_v61 }
 0x143   : > { %4494 = vrcp.f32 %v557_v62  ;;  %v646_v51 = vrot.slane %v632_v33, %v5218_v45 }
 0x144   : > { %4496 = vrcp.f32 %v558_v7 }
 0x146   : > { %v4483_v6 = vpop.eup %4482 }
 0x147   : > { %v596_v10 = vmul.f32 %v4483_v6, %v582_v49  ;;  %v639_v49 = vrot.slane %v631_v52, %v5218_v45 }
 0x148   : > { %v4485_v11 = vpop.eup %4484 }
 0x149   : > { %v4487_v13 = vpop.eup %4486  ;;  %v597_v19 = vmul.f32 %v4485_v11, %v589_v57  ;;  %v608_v27 = vadd.f32 %v600_v3, %v596_v10  ;;  %v647_v62 = vcombine.high %v639_v49, %v639_v49  ;;  %v648_v3 = vcombine.high %v646_v51, %v646_v51 }
 0x14a   : > { %v4489_v31 = vpop.eup %4488  ;;  %v598_v38 = vmul.f32 %v4487_v13, %v590_v2 }
 0x14b   : > { %v599_v36 = vmul.f32 %v4489_v31, %v591_v5  ;;  %v609_v40 = vadd.f32 %v601_v14, %v597_v19  ;;  %4498 = vtanh.f32 %v608_v27  ;;  %v4491_v58 = vpop.eup %4490 }
 0x14c   : > { %v610_v53 = vadd.f32 %v602_v18, %v598_v38  ;;  %v4493_v60 = vpop.eup %4492  ;;  %v616_v24 = vsub.f32 1.0, %v4491_v58  ;;  %v653_v2 = vmul.f32 %v4491_v58, %v639_v49 }
 0x14d   : > { %v611_v47 = vadd.f32 %v603_v26, %v599_v36  ;;  %4500 = vtanh.f32 %v609_v40  ;;  %v4495_v56 = vpop.eup %4494  ;;  %v617_v6 = vsub.f32 1.0, %v4493_v60  ;;  %v654_v13 = vmul.f32 %v4493_v60, %v646_v51 }
 0x14e   : > { %4502 = vtanh.f32 %v610_v53  ;;  %v4497_v57 = vpop.eup %4496  ;;  %v618_v10 = vsub.f32 1.0, %v4495_v56  ;;  %v655_v31 = vmul.f32 %v4495_v56, %v647_v62 }
 0x14f   : > { %4504 = vtanh.f32 %v611_v47  ;;  %v619_v11 = vsub.f32 1.0, %v4497_v57  ;;  %v656_v38 = vmul.f32 %v4497_v57, %v648_v3 }
 0x155   : > { %v4499_v61 = vpop.eup %4498 }
 0x156   : > { %v620_v7 = vmul.f32 %v4499_v61, %v616_v24 }
 0x157   : > { %v4501_v5 = vpop.eup %4500 }
 0x158   : > { %v4503_v14 = vpop.eup %4502  ;;  %v621_v18 = vmul.f32 %v4501_v5, %v617_v6  ;;  %v5265_v19 = vadd.f32 %v653_v2, %v620_v7  ;;  %v5318_v6 = vld [vmem:[%s4931_s4 + $0x1] ss:$8 sm:$0x7] }
 0x159   : > { %v4505_v26 = vpop.eup %4504  ;;  %v622_v27 = vmul.f32 %v4503_v14, %v618_v10  ;;  %v5321_v7 = vld [vmem:[%s4931_s4 + $0x19] ss:$8 sm:$0x7] }
 0x15a   : > { %v623_v52 = vmul.f32 %v4505_v26, %v619_v11  ;;  %v5267_v36 = vadd.f32 %v654_v13, %v621_v18  ;;  %v5326_v10 = vld [vmem:[%s4931_s4 + $0x31] ss:$8 sm:$0x7]  ;;  %v900_v13 = vrot.slane %v5318_v6, 1  ;;  %v901_v26 = vrot.slane %v5321_v7, 1 }
 0x15b   : > { %v5269_v40 = vadd.f32 %v655_v31, %v622_v27  ;;  %v5329_v14 = vld [vmem:[%s4931_s4 + $0x49] ss:$8 sm:$0x7] }
 0x15c   : > { %v5271_v53 = vadd.f32 %v656_v38, %v623_v52  ;;  %v673_v47 = vcombine.low %v5265_v19, %v5267_v36 }
 0x15e   : > { %v674_v33 = vcombine.low %v5269_v40, %v5271_v53  ;;  %v681_v58 = vrot.slane %v673_v47, %v5218_v45 }
 0x160   : > { %v688_v49 = vrot.slane %v674_v33, %v5218_v45  ;;  %v902_v33 = vrot.slane %v5326_v10, 1 }
 0x162   : > { %v689_v60 = vcombine.low %v681_v58, %v688_v49  ;;  %v903_v58 = vrot.slane %v5329_v14, 1 }
 0x164   : > { %v696_v51 = vrot.slane %v689_v60, %v5218_v45 }
 0x166   : > { %763 = vmatmul.mubr.f32.vlgmr.msra.gmra.mrb[2].mxu0 %v696_v51  ;;  %3751 = vmatmul.mubr.f32.vlgmr.msra.gmra.mrb[2].mxu1 %v696_v51 }
 0x167   : > { %4078 = vmatpush1.bf16.msra.mxu0 %v4956_v22  ;;  %4109 = vmatpush3.bf16.msra.mxu1 %v5017_v42 }
 0x168   : > { %4080 = vmatprep.subr.bf16.mxu0 %v4958_v23  ;;  %4110 = vmatprep.subr.bf16.mxu1 %v5925_v20 }
 0x169   : > { %1131 = vmatprep.mubr.f32.mxu0 %v5923_v21  ;;  %3785 = vmatprep.mubr.msk.f32.mxu1 %vm4861_vm0, %v5923_v21 }
 0x16b   : > { %4082 = vmatpush1.bf16.msra.mxu0 %v4976_v28  ;;  %4112 = vmatpush3.bf16.msra.mxu1 %v5041_v50 }
 0x16c   : > { %4084 = vmatprep.subr.bf16.mxu0 %v4979_v29  ;;  %4113 = vmatprep.subr.bf16.mxu1 %v5925_v20 }
 0x16f   : > { %4086 = vmatpush1.bf16.msra.mxu0 %v4994_v34  ;;  %4115 = vmatpush3.bf16.msra.mxu1 %v5069_v59 }
 0x170   : > { %4088 = vmatprep.subr.bf16.mxu0 %v4997_v35  ;;  %4116 = vmatprep.subr.bf16.mxu1 %v5925_v20 }
 0x173   : > { %4090 = vmatpush1.bf16.msra.mxu0 %v5023_v44  ;;  %4118 = vmatpush3.bf16.msra.mxu1 %v5097_v4 }
 0x174   : > { %4092 = vmatprep.subr.bf16.mxu0 %v5029_v46  ;;  %4119 = vmatprep.subr.bf16.mxu1 %v5925_v20 }
 0x177   : > { %4094 = vmatpush1.bf16.msra.mxu0 %v5054_v54  ;;  %4121 = vmatpush3.bf16.msra.mxu1 %v5122_v12 }
 0x178   : > { %4096 = vmatprep.subr.bf16.mxu0 %v5057_v55  ;;  %4122 = vmatprep.subr.bf16.mxu1 %v5925_v20 }
 0x17b   : > { %4098 = vmatpush1.bf16.msra.mxu0 %v5082_v63  ;;  %4124 = vmatpush3.bf16.msra.mxu1 %v5136_v17 }
 0x17c   : > { %4100 = vmatprep.subr.bf16.mxu0 %v5085_v0  ;;  %4125 = vmatprep.subr.bf16.mxu1 %v5925_v20 }
 0x17f   : > { %4102 = vmatpush1.bf16.msra.mxu0 %v5110_v8  ;;  %4127 = vmatpush3.bf16.msra.mxu1 %v5149_v25 }
 0x180   : > { %4104 = vmatprep.subr.bf16.mxu0 %v5113_v9  ;;  %4128 = vmatprep.subr.bf16.mxu1 %v5925_v20 }
 0x183   : > { %4106 = vmatpush1.bf16.msra.mxu0 %v5132_v15  ;;  %4130 = vmatpush3.bf16.msra.mxu1 %v5163_v30 }
 0x184   : > { %4132 = vmatprep.subr.bf16.mxu0 %v4943_v16  ;;  %4163 = vmatprep.subr.bf16.mxu1 %v5925_v20 }
 0x239   : > { %v764_v56 = vpop.f32.mrb[2].mxu0  ;;  %v835_v57 = vpop.f32.mrb[2].mxu1 }
 0x23a   : > { %v765_v24 = vadd.f32 %v764_v56, %v5211_v41  ;;  %v766_v61 = vpop.f32.mrb[3].mxu0  ;;  %v3752_v62 = vpop.f32.mrb[3].mxu1 }
 0x23b   : > { %v767_v3 = vadd.f32 %v766_v61, %v5215_v43 }
 0x23c   : > { %v846_v2 = vrot.slane %v765_v24, %v5218_v45 }
 0x23d   : > { %v915_v5 = vrot.slane %v767_v3, %v5218_v45 }
 0x23e   : > { %v847_v11 = vcombine.high %v846_v2, %v846_v2  ;;  %v854_v18 = vrot.slane %v846_v2, %v5218_v45 }
 0x23f   : > { %v916_v27 = vcombine.high %v915_v5, %v915_v5  ;;  %v923_v31 = vrot.slane %v915_v5, %v5218_v45 }
 0x240   : > { %v861_v52 = vrot.slane %v847_v11, %v5218_v45  ;;  %v862_v38 = vcombine.high %v854_v18, %v854_v18  ;;  %v868_v47 = vadd.f32 %v5318_v6, %v854_v18 }
 0x241   : > { %v930_v49 = vrot.slane %v916_v27, %v5218_v45  ;;  %v931_v60 = vcombine.high %v923_v31, %v923_v31  ;;  %v937_v3 = vadd.f32 %v923_v31, %v900_v13 }
 0x242   : > { %v863_v51 = vcombine.high %v861_v52, %v861_v52  ;;  %v869_v56 = vadd.f32 %v5321_v7, %v861_v52  ;;  %v870_v24 = vadd.f32 %v5326_v10, %v862_v38  ;;  %v3460_v61 = vmul.f32 -1.442695, %v868_v47 }
 0x243   : > { %v932_v62 = vcombine.high %v930_v49, %v930_v49  ;;  %v938_v2 = vadd.f32 %v930_v49, %v901_v26  ;;  %v939_v48 = vadd.f32 %v931_v60, %v902_v33  ;;  %v3464_v27 = vmul.f32 -1.442695, %v937_v3 }
 0x244   : > { %v871_v5 = vadd.f32 %v5329_v14, %v863_v51  ;;  %4506 = vpow2.f32 %v3460_v61  ;;  %v3461_v11 = vmul.f32 -1.442695, %v869_v56  ;;  %v3462_v18 = vmul.f32 -1.442695, %v870_v24 }
 0x245   : > { %v940_v37 = vadd.f32 %v932_v62, %v903_v58  ;;  %v3465_v21 = vmul.f32 -1.442695, %v938_v2  ;;  %v3466_v52 = vmul.f32 -1.442695, %v939_v48  ;;  %v836_v26 = vadd.f32 %v835_v57, %v5251_v1 }
 0x246   : > { %4508 = vpow2.f32 %v3461_v11  ;;  %v3463_v39 = vmul.f32 -1.442695, %v871_v5  ;;  %v998_v62 = vrot.slane %v5318_v6, 2 }
 0x247   : > { %4510 = vpow2.f32 %v3462_v18  ;;  %v3467_v20 = vmul.f32 -1.442695, %v940_v37  ;;  %v972_v60 = vrot.slane %v836_v26, %v5218_v45  ;;  %v999_v18 = vrot.slane %v5321_v7, 2 }
 0x248   : > { %4512 = vpow2.f32 %v3463_v39  ;;  %v1001_v26 = vrot.slane %v5329_v14, 2 }
 0x249   : > { %4514 = vpow2.f32 %v3464_v27  ;;  %v973_v48 = vcombine.high %v972_v60, %v972_v60 }
 0x24a   : > { %4516 = vpow2.f32 %v3465_v21 }
 0x24b   : > { %4518 = vpow2.f32 %v3466_v52  ;;  %v987_v61 = vrot.slane %v973_v48, %v5218_v45 }
 0x24c   : > { %4520 = vpow2.f32 %v3467_v20  ;;  %v980_v20 = vrot.slane %v972_v60, %v5218_v45 }
 0x24e   : > { %v4507_v13 = vpop.eup %4506  ;;  %v988_v52 = vcombine.high %v980_v20, %v980_v20 }
 0x24f   : > { %v884_v31 = vadd.f32 1.0, %v4507_v13  ;;  %v1000_v13 = vrot.slane %v5326_v10, 2 }
 0x250   : > { %v4509_v38 = vpop.eup %4508 }
 0x251   : > { %v4511_v47 = vpop.eup %4510  ;;  %v885_v33 = vadd.f32 1.0, %v4509_v38  ;;  %4522 = vrcp.f32 %v884_v31  ;;  %v989_v38 = vcombine.high %v987_v61, %v987_v61 }
 0x252   : > { %v4513_v49 = vpop.eup %4512  ;;  %v886_v58 = vadd.f32 1.0, %v4511_v47 }
 0x253   : > { %v887_v39 = vadd.f32 1.0, %v4513_v49  ;;  %4524 = vrcp.f32 %v885_v33  ;;  %v4515_v37 = vpop.eup %4514 }
 0x254   : > { %4526 = vrcp.f32 %v886_v58  ;;  %v4517_v21 = vpop.eup %4516  ;;  %v953_v57 = vadd.f32 1.0, %v4515_v37 }
 0x255   : > { %4528 = vrcp.f32 %v887_v39  ;;  %v4519_v51 = vpop.eup %4518  ;;  %v954_v24 = vadd.f32 1.0, %v4517_v21 }
 0x256   : > { %v4521_v56 = vpop.eup %4520  ;;  %v955_v3 = vadd.f32 1.0, %v4519_v51  ;;  %4530 = vrcp.f32 %v953_v57 }
 0x257   : > { %v956_v5 = vadd.f32 1.0, %v4521_v56  ;;  %4532 = vrcp.f32 %v954_v24 }
 0x258   : > { %4534 = vrcp.f32 %v955_v3 }
 0x259   : > { %4536 = vrcp.f32 %v956_v5 }
 0x25b   : > { %v4523_v2 = vpop.eup %4522 }
 0x25c   : > { %v994_v11 = vmul.f32 %v4523_v2, %v980_v20 }
 0x25d   : > { %v4525_v27 = vpop.eup %4524 }
 0x25e   : > { %v4527_v31 = vpop.eup %4526  ;;  %v995_v47 = vmul.f32 %v4525_v27, %v987_v61  ;;  %v1006_v33 = vadd.f32 %v998_v62, %v994_v11 }
 0x25f   : > { %v4529_v6 = vpop.eup %4528  ;;  %v996_v49 = vmul.f32 %v4527_v31, %v988_v52 }
 0x260   : > { %v997_v58 = vmul.f32 %v4529_v6, %v989_v38  ;;  %v1007_v60 = vadd.f32 %v999_v18, %v995_v47  ;;  %4538 = vtanh.f32 %v1006_v33  ;;  %v4531_v10 = vpop.eup %4530 }
 0x261   : > { %v1008_v7 = vadd.f32 %v1000_v13, %v996_v49  ;;  %v4533_v37 = vpop.eup %4532  ;;  %v1014_v48 = vsub.f32 1.0, %v4531_v10  ;;  %v1022_v20 = vmul.f32 %v4531_v10, %v5265_v19 }
 0x262   : > { %v1009_v39 = vadd.f32 %v1001_v26, %v997_v58  ;;  %4540 = vtanh.f32 %v1007_v60  ;;  %v4535_v14 = vpop.eup %4534  ;;  %v1015_v56 = vsub.f32 1.0, %v4533_v37  ;;  %v1023_v5 = vmul.f32 %v4533_v37, %v5267_v36 }
 0x263   : > { %4542 = vtanh.f32 %v1008_v7  ;;  %v4537_v21 = vpop.eup %4536  ;;  %v1016_v61 = vsub.f32 1.0, %v4535_v14  ;;  %v1024_v52 = vmul.f32 %v4535_v14, %v5269_v40  ;;  %v5934_v58 = vmov 0.0  }
 0x264   : > { %4544 = vtanh.f32 %v1009_v39  ;;  %v1017_v3 = vsub.f32 1.0, %v4537_v21  ;;  %v1025_v26 = vmul.f32 %v4537_v21, %v5271_v53  ;;  %v5933_v53 = vmov 0.0|0.0   ;;  %v5408_v21 = vld [vmem:[%s4931_s4 + $0x2] ss:$8 sm:$0x7] }
 0x26a   : > { %v4539_v51 = vpop.eup %4538 }
 0x26b   : > { %v1018_v57 = vmul.f32 %v4539_v51, %v1014_v48  ;;  %v5411_v48 = vld [vmem:[%s4931_s4 + $0x1a] ss:$8 sm:$0x7] }
 0x26c   : > { %v4541_v24 = vpop.eup %4540 }
 0x26d   : > { %v4543_v62 = vpop.eup %4542  ;;  %v1019_v2 = vmul.f32 %v4541_v24, %v1015_v56  ;;  %v5353_v11 = vadd.f32 %v1022_v20, %v1018_v57  ;;  %v5416_v57 = vld [vmem:[%s4931_s4 + $0x32] ss:$8 sm:$0x7] }
 0x26e   : > { %v4545_v18 = vpop.eup %4544  ;;  %v1020_v27 = vmul.f32 %v4543_v62, %v1016_v61  ;;  %v5419_v20 = vld [vmem:[%s4931_s4 + $0x4a] ss:$8 sm:$0x7]  ;;  %v1269_v62 = vrot.slane %v5408_v21, 1 }
 0x26f   : > { %v1021_v13 = vmul.f32 %v4545_v18, %v1017_v3  ;;  %v5357_v31 = vadd.f32 %v1023_v5, %v1019_v2  ;;  %v1270_v3 = vrot.slane %v5411_v48, 1 }
 0x270   : > { %v5359_v38 = vadd.f32 %v1024_v52, %v1020_v27 }
 0x271   : > { %v5361_v19 = vadd.f32 %v1025_v26, %v1021_v13  ;;  %v1042_v47 = vcombine.low %v5353_v11, %v5357_v31  ;;  %v1271_v13 = vrot.slane %v5416_v57, 1  ;;  %v1272_v26 = vrot.slane %v5419_v20, 1 }
 0x273   : > { %v1043_v36 = vcombine.low %v5359_v38, %v5361_v19  ;;  %v1050_v33 = vrot.slane %v1042_v47, %v5218_v45 }
 0x275   : > { %v1057_v6 = vrot.slane %v1043_v36, %v5218_v45 }
 0x277   : > { %v1058_v40 = vcombine.low %v1050_v33, %v1057_v6 }
 0x279   : > { %v1065_v49 = vrot.slane %v1058_v40, %v5218_v45 }
 0x27b   : > { %1132 = vmatmul.mubr.f32.vlgmr.msra.gmra.mrb[4].mxu0 %v1065_v49  ;;  %3786 = vmatmul.mubr.f32.vlgmr.msra.gmra.mrb[4].mxu1 %v1065_v49 }
 0x27c   : > { %4134 = vmatpush1.bf16.msra.mxu0 %v4956_v22  ;;  %4165 = vmatpush3.bf16.msra.mxu1 %v5017_v42 }
 0x27d   : > { %4136 = vmatprep.subr.bf16.mxu0 %v4958_v23  ;;  %4166 = vmatprep.subr.bf16.mxu1 %v5933_v53 }
 0x27e   : > { %1500 = vmatprep.mubr.f32.mxu0 %v5934_v58  ;;  %3820 = vmatprep.mubr.msk.f32.mxu1 %vm4861_vm0, %v5934_v58 }
 0x280   : > { %4138 = vmatpush1.bf16.msra.mxu0 %v4976_v28  ;;  %4168 = vmatpush3.bf16.msra.mxu1 %v5041_v50 }
 0x281   : > { %4140 = vmatprep.subr.bf16.mxu0 %v4979_v29  ;;  %4169 = vmatprep.subr.bf16.mxu1 %v5933_v53 }
 0x284   : > { %4142 = vmatpush1.bf16.msra.mxu0 %v4994_v34  ;;  %4171 = vmatpush3.bf16.msra.mxu1 %v5069_v59 }
 0x285   : > { %4144 = vmatprep.subr.bf16.mxu0 %v4997_v35  ;;  %4172 = vmatprep.subr.bf16.mxu1 %v5933_v53 }
 0x288   : > { %4146 = vmatpush1.bf16.msra.mxu0 %v5023_v44  ;;  %4174 = vmatpush3.bf16.msra.mxu1 %v5097_v4 }
 0x289   : > { %4148 = vmatprep.subr.bf16.mxu0 %v5029_v46  ;;  %4175 = vmatprep.subr.bf16.mxu1 %v5933_v53 }
 0x28c   : > { %4150 = vmatpush1.bf16.msra.mxu0 %v5054_v54  ;;  %4177 = vmatpush3.bf16.msra.mxu1 %v5122_v12 }
 0x28d   : > { %4152 = vmatprep.subr.bf16.mxu0 %v5057_v55  ;;  %4178 = vmatprep.subr.bf16.mxu1 %v5933_v53 }
 0x290   : > { %4154 = vmatpush1.bf16.msra.mxu0 %v5082_v63  ;;  %4180 = vmatpush3.bf16.msra.mxu1 %v5136_v17 }
 0x291   : > { %4156 = vmatprep.subr.bf16.mxu0 %v5085_v0  ;;  %4181 = vmatprep.subr.bf16.mxu1 %v5933_v53 }
 0x294   : > { %4158 = vmatpush1.bf16.msra.mxu0 %v5110_v8  ;;  %4183 = vmatpush3.bf16.msra.mxu1 %v5149_v25 }
 0x295   : > { %4160 = vmatprep.subr.bf16.mxu0 %v5113_v9  ;;  %4184 = vmatprep.subr.bf16.mxu1 %v5933_v53 }
 0x298   : > { %4162 = vmatpush1.bf16.msra.mxu0 %v5132_v15  ;;  %4186 = vmatpush3.bf16.msra.mxu1 %v5163_v30 }
 0x299   : > { %4188 = vmatprep.subr.bf16.mxu0 %v4943_v16  ;;  %4219 = vmatprep.subr.bf16.mxu1 %v5933_v53 }
 0x34e   : > { %v1133_v60 = vpop.f32.mrb[4].mxu0  ;;  %v1204_v7 = vpop.f32.mrb[4].mxu1 }
 0x34f   : > { %v1134_v39 = vadd.f32 %v1133_v60, %v5211_v41  ;;  %v1135_v10 = vpop.f32.mrb[5].mxu0  ;;  %v3787_v37 = vpop.f32.mrb[5].mxu1 }
 0x350   : > { %v1136_v14 = vadd.f32 %v1135_v10, %v5215_v43 }
 0x351   : > { %v1215_v51 = vrot.slane %v1134_v39, %v5218_v45 }
 0x352   : > { %v1284_v56 = vrot.slane %v1136_v14, %v5218_v45 }
 0x353   : > { %v1216_v24 = vcombine.high %v1215_v51, %v1215_v51  ;;  %v1223_v61 = vrot.slane %v1215_v51, %v5218_v45 }
 0x354   : > { %v1285_v2 = vcombine.high %v1284_v56, %v1284_v56  ;;  %v1292_v5 = vrot.slane %v1284_v56, %v5218_v45 }
 0x355   : > { %v1230_v18 = vrot.slane %v1216_v24, %v5218_v45  ;;  %v1231_v27 = vcombine.high %v1223_v61, %v1223_v61  ;;  %v1237_v52 = vadd.f32 %v5408_v21, %v1223_v61 }
 0x356   : > { %v1299_v47 = vrot.slane %v1285_v2, %v5218_v45  ;;  %v1300_v36 = vcombine.high %v1292_v5, %v1292_v5  ;;  %v1306_v39 = vadd.f32 %v1292_v5, %v1269_v62 }
 0x357   : > { %v1232_v33 = vcombine.high %v1230_v18, %v1230_v18  ;;  %v1238_v6 = vadd.f32 %v5411_v48, %v1230_v18  ;;  %v1239_v40 = vadd.f32 %v5416_v57, %v1231_v27  ;;  %v3472_v49 = vmul.f32 -1.442695, %v1237_v52 }
 0x358   : > { %v1301_v60 = vcombine.high %v1299_v47, %v1299_v47  ;;  %v1307_v10 = vadd.f32 %v1299_v47, %v1270_v3  ;;  %v1308_v56 = vadd.f32 %v1300_v36, %v1271_v13  ;;  %v3476_v2 = vmul.f32 -1.442695, %v1306_v39 }
 0x359   : > { %v1240_v37 = vadd.f32 %v5419_v20, %v1232_v33  ;;  %4546 = vpow2.f32 %v3472_v49  ;;  %v3473_v14 = vmul.f32 -1.442695, %v1238_v6  ;;  %v3474_v51 = vmul.f32 -1.442695, %v1239_v40 }
 0x35a   : > { %v1309_v61 = vadd.f32 %v1301_v60, %v1272_v26  ;;  %v3477_v32 = vmul.f32 -1.442695, %v1307_v10  ;;  %v3478_v18 = vmul.f32 -1.442695, %v1308_v56  ;;  %v1205_v3 = vadd.f32 %v1204_v7, %v5251_v1 }
 0x35b   : > { %4548 = vpow2.f32 %v3473_v14  ;;  %v3475_v24 = vmul.f32 -1.442695, %v1240_v37  ;;  %v1367_v37 = vrot.slane %v5408_v21, 2 }
 0x35c   : > { %4550 = vpow2.f32 %v3474_v51  ;;  %v3479_v43 = vmul.f32 -1.442695, %v1309_v61  ;;  %v1341_v36 = vrot.slane %v1205_v3, %v5218_v45  ;;  %v1368_v61 = vrot.slane %v5411_v48, 2 }
 0x35d   : > { %4552 = vpow2.f32 %v3475_v24  ;;  %v1370_v3 = vrot.slane %v5419_v20, 2 }
 0x35e   : > { %4554 = vpow2.f32 %v3476_v2  ;;  %v1342_v40 = vcombine.high %v1341_v36, %v1341_v36 }
 0x35f   : > { %4556 = vpow2.f32 %v3477_v32 }
 0x360   : > { %4558 = vpow2.f32 %v3478_v18  ;;  %v1356_v10 = vrot.slane %v1342_v40, %v5218_v45 }
 0x361   : > { %4560 = vpow2.f32 %v3479_v43  ;;  %v1349_v43 = vrot.slane %v1341_v36, %v5218_v45 }
 0x363   : > { %v4547_v62 = vpop.eup %4546  ;;  %v1357_v18 = vcombine.high %v1349_v43, %v1349_v43 }
 0x364   : > { %v1253_v5 = vadd.f32 1.0, %v4547_v62  ;;  %v1369_v62 = vrot.slane %v5416_v57, 2 }
 0x365   : > { %v4549_v27 = vpop.eup %4548 }
 0x366   : > { %v4551_v52 = vpop.eup %4550  ;;  %v1254_v13 = vadd.f32 1.0, %v4549_v27  ;;  %4562 = vrcp.f32 %v1253_v5  ;;  %v1358_v27 = vcombine.high %v1356_v10, %v1356_v10 }
 0x367   : > { %v4553_v47 = vpop.eup %4552  ;;  %v1255_v26 = vadd.f32 1.0, %v4551_v52 }
 0x368   : > { %v1256_v33 = vadd.f32 1.0, %v4553_v47  ;;  %4564 = vrcp.f32 %v1254_v13  ;;  %v4555_v6 = vpop.eup %4554 }
 0x369   : > { %4566 = vrcp.f32 %v1255_v26  ;;  %v4557_v32 = vpop.eup %4556  ;;  %v1322_v7 = vadd.f32 1.0, %v4555_v6 }
 0x36a   : > { %4568 = vrcp.f32 %v1256_v33  ;;  %v4559_v49 = vpop.eup %4558  ;;  %v1323_v39 = vadd.f32 1.0, %v4557_v32 }
 0x36b   : > { %v4561_v60 = vpop.eup %4560  ;;  %v1324_v14 = vadd.f32 1.0, %v4559_v49  ;;  %4570 = vrcp.f32 %v1322_v7 }
 0x36c   : > { %v1325_v56 = vadd.f32 1.0, %v4561_v60  ;;  %4572 = vrcp.f32 %v1323_v39 }
 0x36d   : > { %4574 = vrcp.f32 %v1324_v14 }
 0x36e   : > { %4576 = vrcp.f32 %v1325_v56 }
 0x370   : > { %v4563_v51 = vpop.eup %4562 }
 0x371   : > { %v1363_v24 = vmul.f32 %v4563_v51, %v1349_v43 }
 0x372   : > { %v4565_v2 = vpop.eup %4564 }
 0x373   : > { %v4567_v5 = vpop.eup %4566  ;;  %v1364_v52 = vmul.f32 %v4565_v2, %v1356_v10  ;;  %v1375_v13 = vadd.f32 %v1367_v37, %v1363_v24 }
 0x374   : > { %v4569_v21 = vpop.eup %4568  ;;  %v1365_v47 = vmul.f32 %v4567_v5, %v1357_v18 }
 0x375   : > { %v1366_v26 = vmul.f32 %v4569_v21, %v1358_v27  ;;  %v1376_v36 = vadd.f32 %v1368_v61, %v1364_v52  ;;  %4578 = vtanh.f32 %v1375_v13  ;;  %v4571_v57 = vpop.eup %4570 }
 0x376   : > { %v1377_v48 = vadd.f32 %v1369_v62, %v1365_v47  ;;  %v4573_v6 = vpop.eup %4572  ;;  %v1383_v40 = vsub.f32 1.0, %v4571_v57  ;;  %v1391_v43 = vmul.f32 %v4571_v57, %v5353_v11  ;;  %v5935_v57 = vld [vmem:[#allocation8_spill] sm:$0xff] }
 0x377   : > { %v1378_v33 = vadd.f32 %v1370_v3, %v1366_v26  ;;  %4580 = vtanh.f32 %v1376_v36  ;;  %v4575_v20 = vpop.eup %4574  ;;  %v1384_v60 = vsub.f32 1.0, %v4573_v6  ;;  %v1392_v56 = vmul.f32 %v4573_v6, %v5357_v31 }
 0x378   : > { %4582 = vtanh.f32 %v1377_v48  ;;  %v4577_v32 = vpop.eup %4576  ;;  %v1385_v10 = vsub.f32 1.0, %v4575_v20  ;;  %v1393_v18 = vmul.f32 %v4575_v20, %v5359_v38  ;;  %v5498_v20 = vld [vmem:[%s4931_s4 + $0x3] ss:$8 sm:$0x7] }
 0x379   : > { %4584 = vtanh.f32 %v1378_v33  ;;  %v1386_v14 = vsub.f32 1.0, %v4577_v32  ;;  %v1394_v3 = vmul.f32 %v4577_v32, %v5361_v19  ;;  %v5501_v32 = vld [vmem:[%s4931_s4 + $0x1b] ss:$8 sm:$0x7] }
 0x37f   : > { %v4579_v49 = vpop.eup %4578 }
 0x380   : > { %v1387_v7 = vmul.f32 %v4579_v49, %v1383_v40 }
 0x381   : > { %v4581_v39 = vpop.eup %4580 }
 0x382   : > { %v4583_v37 = vpop.eup %4582  ;;  %v1388_v51 = vmul.f32 %v4581_v39, %v1384_v60  ;;  %v5443_v24 = vadd.f32 %v1391_v43, %v1387_v7  ;;  %v5506_v60 = vld [vmem:[%s4931_s4 + $0x33] ss:$8 sm:$0x7] }
 0x383   : > { %v4585_v61 = vpop.eup %4584  ;;  %v1389_v2 = vmul.f32 %v4583_v37, %v1385_v10  ;;  %v5509_v7 = vld [vmem:[%s4931_s4 + $0x4b] ss:$8 sm:$0x7]  ;;  %v1638_v10 = vrot.slane %v5498_v20, 1  ;;  %v1639_v37 = vrot.slane %v5501_v32, 1 }
 0x384   : > { %v1390_v62 = vmul.f32 %v4585_v61, %v1386_v14  ;;  %v5447_v5 = vadd.f32 %v1392_v56, %v1388_v51 }
 0x385   : > { %v5449_v27 = vadd.f32 %v1393_v18, %v1389_v2  ;;  %v1640_v18 = vrot.slane %v5506_v60, 1 }
 0x386   : > { %v5451_v11 = vadd.f32 %v1394_v3, %v1390_v62  ;;  %v1411_v52 = vcombine.low %v5443_v24, %v5447_v5  ;;  %v1641_v62 = vrot.slane %v5509_v7, 1 }
 0x388   : > { %v1412_v31 = vcombine.low %v5449_v27, %v5451_v11  ;;  %v1419_v13 = vrot.slane %v1411_v52, %v5218_v45 }
 0x38a   : > { %v1426_v21 = vrot.slane %v1412_v31, %v5218_v45 }
 0x38c   : > { %v1427_v38 = vcombine.low %v1419_v13, %v1426_v21 }
 0x38e   : > { %v1434_v47 = vrot.slane %v1427_v38, %v5218_v45 }
 0x390   : > { %1501 = vmatmul.mubr.f32.vlgmr.msra.gmra.mrb[6].mxu0 %v1434_v47  ;;  %3821 = vmatmul.mubr.f32.vlgmr.msra.gmra.mrb[6].mxu1 %v1434_v47 }
 0x391   : > { %4190 = vmatpush1.bf16.msra.mxu0 %v4956_v22  ;;  %4221 = vmatpush3.bf16.msra.mxu1 %v5017_v42 }
 0x392   : > { %4192 = vmatprep.subr.bf16.mxu0 %v4958_v23  ;;  %4222 = vmatprep.subr.bf16.mxu1 %v5933_v53 }
 0x393   : > { %1869 = vmatprep.mubr.f32.mxu0 %v5934_v58  ;;  %3855 = vmatprep.mubr.msk.f32.mxu1 %vm4861_vm0, %v5934_v58 }
 0x395   : > { %4194 = vmatpush1.bf16.msra.mxu0 %v4976_v28  ;;  %4224 = vmatpush3.bf16.msra.mxu1 %v5041_v50 }
 0x396   : > { %4196 = vmatprep.subr.bf16.mxu0 %v4979_v29  ;;  %4225 = vmatprep.subr.bf16.mxu1 %v5933_v53 }
 0x399   : > { %4198 = vmatpush1.bf16.msra.mxu0 %v4994_v34  ;;  %4227 = vmatpush3.bf16.msra.mxu1 %v5069_v59 }
 0x39a   : > { %4200 = vmatprep.subr.bf16.mxu0 %v4997_v35  ;;  %4228 = vmatprep.subr.bf16.mxu1 %v5933_v53 }
 0x39d   : > { %4202 = vmatpush1.bf16.msra.mxu0 %v5023_v44  ;;  %4230 = vmatpush3.bf16.msra.mxu1 %v5097_v4 }
 0x39e   : > { %4204 = vmatprep.subr.bf16.mxu0 %v5029_v46  ;;  %4231 = vmatprep.subr.bf16.mxu1 %v5933_v53 }
 0x3a1   : > { %4206 = vmatpush1.bf16.msra.mxu0 %v5054_v54  ;;  %4233 = vmatpush3.bf16.msra.mxu1 %v5122_v12 }
 0x3a2   : > { %4208 = vmatprep.subr.bf16.mxu0 %v5057_v55  ;;  %4234 = vmatprep.subr.bf16.mxu1 %v5933_v53 }
 0x3a5   : > { %4210 = vmatpush1.bf16.msra.mxu0 %v5082_v63  ;;  %4236 = vmatpush3.bf16.msra.mxu1 %v5136_v17 }
 0x3a6   : > { %4212 = vmatprep.subr.bf16.mxu0 %v5085_v0  ;;  %4237 = vmatprep.subr.bf16.mxu1 %v5933_v53 }
 0x3a9   : > { %4214 = vmatpush1.bf16.msra.mxu0 %v5110_v8  ;;  %4239 = vmatpush3.bf16.msra.mxu1 %v5149_v25 }
 0x3aa   : > { %4216 = vmatprep.subr.bf16.mxu0 %v5113_v9  ;;  %4240 = vmatprep.subr.bf16.mxu1 %v5933_v53 }
 0x3ad   : > { %4218 = vmatpush1.bf16.msra.mxu0 %v5132_v15  ;;  %4242 = vmatpush3.bf16.msra.mxu1 %v5163_v30 }
 0x3ae   : > { %4244 = vmatprep.subr.bf16.mxu0 %v4943_v16  ;;  %4275 = vmatprep.subr.bf16.mxu1 %v5933_v53 }
 0x463   : > { %v1502_v19 = vpop.f32.mrb[6].mxu0  ;;  %v1573_v26 = vpop.f32.mrb[6].mxu1 }
 0x464   : > { %v1503_v36 = vadd.f32 %v1502_v19, %v5211_v41  ;;  %v1504_v48 = vpop.f32.mrb[7].mxu0  ;;  %v3822_v33 = vpop.f32.mrb[7].mxu1 }
 0x465   : > { %v1505_v6 = vadd.f32 %v1504_v48, %v5935_v57 }
 0x466   : > { %v1584_v40 = vrot.slane %v1503_v36, %v5218_v45 }
 0x467   : > { %v1653_v49 = vrot.slane %v1505_v6, %v5218_v45 }
 0x468   : > { %v1585_v43 = vcombine.high %v1584_v40, %v1584_v40  ;;  %v1592_v39 = vrot.slane %v1584_v40, %v5218_v45 }
 0x469   : > { %v1654_v14 = vcombine.high %v1653_v49, %v1653_v49  ;;  %v1661_v51 = vrot.slane %v1653_v49, %v5218_v45 }
 0x46a   : > { %v1599_v56 = vrot.slane %v1585_v43, %v5218_v45  ;;  %v1600_v61 = vcombine.high %v1592_v39, %v1592_v39  ;;  %v1606_v2 = vadd.f32 %v5498_v20, %v1592_v39 }
 0x46b   : > { %v1668_v3 = vrot.slane %v1654_v14, %v5218_v45  ;;  %v1669_v52 = vcombine.high %v1661_v51, %v1661_v51  ;;  %v1675_v19 = vadd.f32 %v1661_v51, %v1638_v10 }
 0x46c   : > { %v1601_v31 = vcombine.high %v1599_v56, %v1599_v56  ;;  %v1607_v13 = vadd.f32 %v5501_v32, %v1599_v56  ;;  %v1608_v21 = vadd.f32 %v5506_v60, %v1600_v61  ;;  %v3484_v38 = vmul.f32 -1.442695, %v1606_v2 }
 0x46d   : > { %v1670_v47 = vcombine.high %v1668_v3, %v1668_v3  ;;  %v1676_v36 = vadd.f32 %v1668_v3, %v1639_v37  ;;  %v1677_v40 = vadd.f32 %v1669_v52, %v1640_v18  ;;  %v3488_v39 = vmul.f32 -1.442695, %v1675_v19 }
 0x46e   : > { %v1609_v48 = vadd.f32 %v5509_v7, %v1601_v31  ;;  %4586 = vpow2.f32 %v3484_v38  ;;  %v3485_v33 = vmul.f32 -1.442695, %v1607_v13  ;;  %v3486_v6 = vmul.f32 -1.442695, %v1608_v21 }
 0x46f   : > { %v1678_v43 = vadd.f32 %v1670_v47, %v1641_v62  ;;  %v3489_v14 = vmul.f32 -1.442695, %v1676_v36  ;;  %v3490_v56 = vmul.f32 -1.442695, %v1677_v40  ;;  %v1574_v37 = vadd.f32 %v1573_v26, %v5251_v1 }
 0x470   : > { %4588 = vpow2.f32 %v3485_v33  ;;  %v3487_v49 = vmul.f32 -1.442695, %v1609_v48  ;;  %v1736_v33 = vrot.slane %v5498_v20, 2 }
 0x471   : > { %4590 = vpow2.f32 %v3486_v6  ;;  %v3491_v57 = vmul.f32 -1.442695, %v1678_v43  ;;  %v1710_v52 = vrot.slane %v1574_v37, %v5218_v45  ;;  %v1739_v37 = vrot.slane %v5509_v7, 2 }
 0x472   : > { %4592 = vpow2.f32 %v3487_v49 }
 0x473   : > { %4594 = vpow2.f32 %v3488_v39  ;;  %v1711_v38 = vcombine.high %v1710_v52, %v1710_v52  ;;  %v1737_v39 = vrot.slane %v5501_v32, 2 }
 0x474   : > { %4596 = vpow2.f32 %v3489_v14 }
 0x475   : > { %4598 = vpow2.f32 %v3490_v56  ;;  %v1725_v48 = vrot.slane %v1711_v38, %v5218_v45 }
 0x476   : > { %4600 = vpow2.f32 %v3491_v57  ;;  %v1718_v57 = vrot.slane %v1710_v52, %v5218_v45 }
 0x478   : > { %v4587_v10 = vpop.eup %4586  ;;  %v1726_v56 = vcombine.high %v1718_v57, %v1718_v57 }
 0x479   : > { %v1622_v51 = vadd.f32 1.0, %v4587_v10  ;;  %v1738_v10 = vrot.slane %v5506_v60, 2 }
 0x47a   : > { %v4589_v61 = vpop.eup %4588 }
 0x47b   : > { %v4591_v2 = vpop.eup %4590  ;;  %v1623_v18 = vadd.f32 1.0, %v4589_v61  ;;  %4602 = vrcp.f32 %v1622_v51  ;;  %v1727_v61 = vcombine.high %v1725_v48, %v1725_v48 }
 0x47c   : > { %v4593_v3 = vpop.eup %4592  ;;  %v1624_v62 = vadd.f32 1.0, %v4591_v2 }
 0x47d   : > { %v1625_v31 = vadd.f32 1.0, %v4593_v3  ;;  %4604 = vrcp.f32 %v1623_v18  ;;  %v4595_v13 = vpop.eup %4594 }
 0x47e   : > { %4606 = vrcp.f32 %v1624_v62  ;;  %v4597_v21 = vpop.eup %4596  ;;  %v1691_v26 = vadd.f32 1.0, %v4595_v13 }
 0x47f   : > { %4608 = vrcp.f32 %v1625_v31  ;;  %v4599_v47 = vpop.eup %4598  ;;  %v1692_v36 = vadd.f32 1.0, %v4597_v21 }
 0x480   : > { %v4601_v19 = vpop.eup %4600  ;;  %v1693_v6 = vadd.f32 1.0, %v4599_v47  ;;  %4610 = vrcp.f32 %v1691_v26 }
 0x481   : > { %v1694_v49 = vadd.f32 1.0, %v4601_v19  ;;  %4612 = vrcp.f32 %v1692_v36 }
 0x482   : > { %4614 = vrcp.f32 %v1693_v6 }
 0x483   : > { %4616 = vrcp.f32 %v1694_v49 }
 0x485   : > { %v4603_v40 = vpop.eup %4602 }
 0x486   : > { %v1732_v43 = vmul.f32 %v4603_v40, %v1718_v57 }
 0x487   : > { %v4605_v14 = vpop.eup %4604 }
 0x488   : > { %v4607_v51 = vpop.eup %4606  ;;  %v1733_v2 = vmul.f32 %v4605_v14, %v1725_v48  ;;  %v1744_v18 = vadd.f32 %v1736_v33, %v1732_v43 }
 0x489   : > { %v4609_v20 = vpop.eup %4608  ;;  %v1734_v3 = vmul.f32 %v4607_v51, %v1726_v56 }
 0x48a   : > { %v1735_v62 = vmul.f32 %v4609_v20, %v1727_v61  ;;  %v1745_v52 = vadd.f32 %v1737_v39, %v1733_v2  ;;  %4618 = vtanh.f32 %v1744_v18  ;;  %v4611_v60 = vpop.eup %4610 }
 0x48b   : > { %v1746_v32 = vadd.f32 %v1738_v10, %v1734_v3  ;;  %v4613_v13 = vpop.eup %4612  ;;  %v1752_v38 = vsub.f32 1.0, %v4611_v60  ;;  %v1760_v57 = vmul.f32 %v4611_v60, %v5443_v24  ;;  %v5936_v60 = vld [vmem:[#allocation8_spill] sm:$0xff] }
 0x48c   : > { %v1747_v31 = vadd.f32 %v1739_v37, %v1735_v62  ;;  %4620 = vtanh.f32 %v1745_v52  ;;  %v4615_v7 = vpop.eup %4614  ;;  %v1753_v19 = vsub.f32 1.0, %v4613_v13  ;;  %v1761_v49 = vmul.f32 %v4613_v13, %v5447_v5 }
 0x48d   : > { %4622 = vtanh.f32 %v1746_v32  ;;  %v4617_v21 = vpop.eup %4616  ;;  %v1754_v48 = vsub.f32 1.0, %v4615_v7  ;;  %v1762_v56 = vmul.f32 %v4615_v7, %v5449_v27  ;;  %v5588_v7 = vld [vmem:[%s4931_s4 + $0x4] ss:$8 sm:$0x7] }
 0x48e   : > { %4624 = vtanh.f32 %v1747_v31  ;;  %v1755_v6 = vsub.f32 1.0, %v4617_v21  ;;  %v1763_v37 = vmul.f32 %v4617_v21, %v5451_v11  ;;  %v5591_v21 = vld [vmem:[%s4931_s4 + $0x1c] ss:$8 sm:$0x7] }
 0x494   : > { %v4619_v47 = vpop.eup %4618 }
 0x495   : > { %v1756_v26 = vmul.f32 %v4619_v47, %v1752_v38 }
 0x496   : > { %v4621_v36 = vpop.eup %4620 }
 0x497   : > { %v4623_v33 = vpop.eup %4622  ;;  %v1757_v40 = vmul.f32 %v4621_v36, %v1753_v19  ;;  %v5533_v43 = vadd.f32 %v1760_v57, %v1756_v26  ;;  %v5596_v19 = vld [vmem:[%s4931_s4 + $0x34] ss:$8 sm:$0x7] }
 0x498   : > { %v4625_v39 = vpop.eup %4624  ;;  %v1758_v14 = vmul.f32 %v4623_v33, %v1754_v48  ;;  %v5599_v26 = vld [vmem:[%s4931_s4 + $0x4c] ss:$8 sm:$0x7]  ;;  %v2007_v48 = vrot.slane %v5588_v7, 1  ;;  %v2008_v33 = vrot.slane %v5591_v21, 1 }
 0x499   : > { %v1759_v10 = vmul.f32 %v4625_v39, %v1755_v6  ;;  %v5537_v51 = vadd.f32 %v1761_v49, %v1757_v40 }
 0x49a   : > { %v5539_v61 = vadd.f32 %v1762_v56, %v1758_v14  ;;  %v2009_v56 = vrot.slane %v5596_v19, 1 }
 0x49b   : > { %v5541_v24 = vadd.f32 %v1763_v37, %v1759_v10  ;;  %v1780_v2 = vcombine.low %v5533_v43, %v5537_v51  ;;  %v2010_v10 = vrot.slane %v5599_v26, 1 }
 0x49d   : > { %v1781_v5 = vcombine.low %v5539_v61, %v5541_v24  ;;  %v1788_v18 = vrot.slane %v1780_v2, %v5218_v45 }
 0x49f   : > { %v1795_v20 = vrot.slane %v1781_v5, %v5218_v45 }
 0x4a1   : > { %v1796_v27 = vcombine.low %v1788_v18, %v1795_v20 }
 0x4a3   : > { %v1803_v3 = vrot.slane %v1796_v27, %v5218_v45 }
 0x4a5   : > { %1870 = vmatmul.mubr.f32.vlgmr.msra.gmra.mrb[8].mxu0 %v1803_v3  ;;  %3856 = vmatmul.mubr.f32.vlgmr.msra.gmra.mrb[8].mxu1 %v1803_v3 }
 0x4a6   : > { %4246 = vmatpush1.bf16.msra.mxu0 %v4956_v22  ;;  %4277 = vmatpush3.bf16.msra.mxu1 %v5017_v42 }
 0x4a7   : > { %4248 = vmatprep.subr.bf16.mxu0 %v4958_v23  ;;  %4278 = vmatprep.subr.bf16.mxu1 %v5933_v53 }
 0x4a8   : > { %2238 = vmatprep.mubr.f32.mxu0 %v5934_v58  ;;  %3890 = vmatprep.mubr.msk.f32.mxu1 %vm4861_vm0, %v5934_v58 }
 0x4aa   : > { %4250 = vmatpush1.bf16.msra.mxu0 %v4976_v28  ;;  %4280 = vmatpush3.bf16.msra.mxu1 %v5041_v50 }
 0x4ab   : > { %4252 = vmatprep.subr.bf16.mxu0 %v4979_v29  ;;  %4281 = vmatprep.subr.bf16.mxu1 %v5933_v53 }
 0x4ae   : > { %4254 = vmatpush1.bf16.msra.mxu0 %v4994_v34  ;;  %4283 = vmatpush3.bf16.msra.mxu1 %v5069_v59 }
 0x4af   : > { %4256 = vmatprep.subr.bf16.mxu0 %v4997_v35  ;;  %4284 = vmatprep.subr.bf16.mxu1 %v5933_v53 }
 0x4b2   : > { %4258 = vmatpush1.bf16.msra.mxu0 %v5023_v44  ;;  %4286 = vmatpush3.bf16.msra.mxu1 %v5097_v4 }
 0x4b3   : > { %4260 = vmatprep.subr.bf16.mxu0 %v5029_v46  ;;  %4287 = vmatprep.subr.bf16.mxu1 %v5933_v53 }
 0x4b6   : > { %4262 = vmatpush1.bf16.msra.mxu0 %v5054_v54  ;;  %4289 = vmatpush3.bf16.msra.mxu1 %v5122_v12 }
 0x4b7   : > { %4264 = vmatprep.subr.bf16.mxu0 %v5057_v55  ;;  %4290 = vmatprep.subr.bf16.mxu1 %v5933_v53 }
 0x4ba   : > { %4266 = vmatpush1.bf16.msra.mxu0 %v5082_v63  ;;  %4292 = vmatpush3.bf16.msra.mxu1 %v5136_v17 }
 0x4bb   : > { %4268 = vmatprep.subr.bf16.mxu0 %v5085_v0  ;;  %4293 = vmatprep.subr.bf16.mxu1 %v5933_v53 }
 0x4be   : > { %4270 = vmatpush1.bf16.msra.mxu0 %v5110_v8  ;;  %4295 = vmatpush3.bf16.msra.mxu1 %v5149_v25 }
 0x4bf   : > { %4272 = vmatprep.subr.bf16.mxu0 %v5113_v9  ;;  %4296 = vmatprep.subr.bf16.mxu1 %v5933_v53 }
 0x4c2   : > { %4274 = vmatpush1.bf16.msra.mxu0 %v5132_v15  ;;  %4298 = vmatpush3.bf16.msra.mxu1 %v5163_v30 }
 0x4c3   : > { %4300 = vmatprep.subr.bf16.mxu0 %v4943_v16  ;;  %4331 = vmatprep.subr.bf16.mxu1 %v5933_v53 }
 0x578   : > { %v1871_v11 = vpop.f32.mrb[8].mxu0  ;;  %v1942_v62 = vpop.f32.mrb[8].mxu1 }
 0x579   : > { %v1872_v52 = vadd.f32 %v1871_v11, %v5211_v41  ;;  %v1873_v32 = vpop.f32.mrb[9].mxu0  ;;  %v3857_v31 = vpop.f32.mrb[9].mxu1 }
 0x57a   : > { %v1874_v13 = vadd.f32 %v1873_v32, %v5936_v60 }
 0x57b   : > { %v1953_v38 = vrot.slane %v1872_v52, %v5218_v45 }
 0x57c   : > { %v2022_v47 = vrot.slane %v1874_v13, %v5218_v45 }
 0x57d   : > { %v1954_v57 = vcombine.high %v1953_v38, %v1953_v38  ;;  %v1961_v36 = vrot.slane %v1953_v38, %v5218_v45 }
 0x57e   : > { %v2023_v6 = vcombine.high %v2022_v47, %v2022_v47  ;;  %v2030_v40 = vrot.slane %v2022_v47, %v5218_v45 }
 0x57f   : > { %v1968_v49 = vrot.slane %v1954_v57, %v5218_v45  ;;  %v1969_v39 = vcombine.high %v1961_v36, %v1961_v36  ;;  %v1975_v14 = vadd.f32 %v5588_v7, %v1961_v36 }
 0x580   : > { %v2037_v37 = vrot.slane %v2023_v6, %v5218_v45  ;;  %v2038_v2 = vcombine.high %v2030_v40, %v2030_v40  ;;  %v2044_v11 = vadd.f32 %v2030_v40, %v2007_v48 }
 0x581   : > { %v1970_v5 = vcombine.high %v1968_v49, %v1968_v49  ;;  %v1976_v18 = vadd.f32 %v5591_v21, %v1968_v49  ;;  %v1977_v20 = vadd.f32 %v5596_v19, %v1969_v39  ;;  %v3496_v27 = vmul.f32 -1.442695, %v1975_v14 }
 0x582   : > { %v2039_v3 = vcombine.high %v2037_v37, %v2037_v37  ;;  %v2045_v52 = vadd.f32 %v2037_v37, %v2008_v33  ;;  %v2046_v38 = vadd.f32 %v2038_v2, %v2009_v56  ;;  %v3500_v36 = vmul.f32 -1.442695, %v2044_v11 }
 0x583   : > { %v1978_v32 = vadd.f32 %v5599_v26, %v1970_v5  ;;  %4626 = vpow2.f32 %v3496_v27  ;;  %v3497_v31 = vmul.f32 -1.442695, %v1976_v18  ;;  %v3498_v13 = vmul.f32 -1.442695, %v1977_v20 }
 0x584   : > { %v2047_v57 = vadd.f32 %v2039_v3, %v2010_v10  ;;  %v3501_v6 = vmul.f32 -1.442695, %v2045_v52  ;;  %v3502_v49 = vmul.f32 -1.442695, %v2046_v38  ;;  %v1943_v33 = vadd.f32 %v1942_v62, %v5251_v1 }
 0x585   : > { %4628 = vpow2.f32 %v3497_v31  ;;  %v3499_v47 = vmul.f32 -1.442695, %v1978_v32  ;;  %v2105_v31 = vrot.slane %v5588_v7, 2 }
 0x586   : > { %4630 = vpow2.f32 %v3498_v13  ;;  %v3503_v60 = vmul.f32 -1.442695, %v2047_v57  ;;  %v2079_v2 = vrot.slane %v1943_v33, %v5218_v45  ;;  %v2108_v33 = vrot.slane %v5599_v26, 2 }
 0x587   : > { %4632 = vpow2.f32 %v3499_v47 }
 0x588   : > { %4634 = vpow2.f32 %v3500_v36  ;;  %v2080_v27 = vcombine.high %v2079_v2, %v2079_v2  ;;  %v2106_v36 = vrot.slane %v5591_v21, 2 }
 0x589   : > { %4636 = vpow2.f32 %v3501_v6 }
 0x58a   : > { %4638 = vpow2.f32 %v3502_v49  ;;  %v2094_v32 = vrot.slane %v2080_v27, %v5218_v45 }
 0x58b   : > { %4640 = vpow2.f32 %v3503_v60  ;;  %v2087_v60 = vrot.slane %v2079_v2, %v5218_v45 }
 0x58d   : > { %v4627_v48 = vpop.eup %4626  ;;  %v2095_v49 = vcombine.high %v2087_v60, %v2087_v60 }
 0x58e   : > { %v1991_v40 = vadd.f32 1.0, %v4627_v48  ;;  %v2107_v48 = vrot.slane %v5596_v19, 2 }
 0x58f   : > { %v4629_v39 = vpop.eup %4628 }
 0x590   : > { %v4631_v14 = vpop.eup %4630  ;;  %v1992_v56 = vadd.f32 1.0, %v4629_v39  ;;  %4642 = vrcp.f32 %v1991_v40  ;;  %v2096_v39 = vcombine.high %v2094_v32, %v2094_v32 }
 0x591   : > { %v4633_v37 = vpop.eup %4632  ;;  %v1993_v10 = vadd.f32 1.0, %v4631_v14 }
 0x592   : > { %v1994_v5 = vadd.f32 1.0, %v4633_v37  ;;  %4644 = vrcp.f32 %v1992_v56  ;;  %v4635_v18 = vpop.eup %4634 }
 0x593   : > { %4646 = vrcp.f32 %v1993_v10  ;;  %v4637_v20 = vpop.eup %4636  ;;  %v2060_v62 = vadd.f32 1.0, %v4635_v18 }
 0x594   : > { %4648 = vrcp.f32 %v1994_v5  ;;  %v4639_v3 = vpop.eup %4638  ;;  %v2061_v52 = vadd.f32 1.0, %v4637_v20 }
 0x595   : > { %v4641_v11 = vpop.eup %4640  ;;  %v2062_v13 = vadd.f32 1.0, %v4639_v3  ;;  %4650 = vrcp.f32 %v2060_v62 }
 0x596   : > { %v2063_v47 = vadd.f32 1.0, %v4641_v11  ;;  %4652 = vrcp.f32 %v2061_v52 }
 0x597   : > { %4654 = vrcp.f32 %v2062_v13 }
 0x598   : > { %4656 = vrcp.f32 %v2063_v47 }
 0x59a   : > { %v4643_v38 = vpop.eup %4642 }
 0x59b   : > { %v2101_v57 = vmul.f32 %v4643_v38, %v2087_v60 }
 0x59c   : > { %v4645_v6 = vpop.eup %4644 }
 0x59d   : > { %v4647_v40 = vpop.eup %4646  ;;  %v2102_v14 = vmul.f32 %v4645_v6, %v2094_v32  ;;  %v2113_v56 = vadd.f32 %v2105_v31, %v2101_v57 }
 0x59e   : > { %v4649_v7 = vpop.eup %4648  ;;  %v2103_v37 = vmul.f32 %v4647_v40, %v2095_v49 }
 0x59f   : > { %v2104_v10 = vmul.f32 %v4649_v7, %v2096_v39  ;;  %v2114_v2 = vadd.f32 %v2106_v36, %v2102_v14  ;;  %4658 = vtanh.f32 %v2113_v56  ;;  %v4651_v19 = vpop.eup %4650 }
 0x5a0   : > { %v2115_v21 = vadd.f32 %v2107_v48, %v2103_v37  ;;  %v4653_v18 = vpop.eup %4652  ;;  %v2121_v27 = vsub.f32 1.0, %v4651_v19  ;;  %v2129_v60 = vmul.f32 %v4651_v19, %v5533_v43  ;;  %v5937_v19 = vld [vmem:[#allocation8_spill] sm:$0xff] }
 0x5a1   : > { %v2116_v5 = vadd.f32 %v2108_v33, %v2104_v10  ;;  %4660 = vtanh.f32 %v2114_v2  ;;  %v4655_v26 = vpop.eup %4654  ;;  %v2122_v11 = vsub.f32 1.0, %v4653_v18  ;;  %v2130_v47 = vmul.f32 %v4653_v18, %v5537_v51 }
 0x5a2   : > { %4662 = vtanh.f32 %v2115_v21  ;;  %v4657_v20 = vpop.eup %4656  ;;  %v2123_v32 = vsub.f32 1.0, %v4655_v26  ;;  %v2131_v49 = vmul.f32 %v4655_v26, %v5539_v61  ;;  %v5678_v26 = vld [vmem:[%s4931_s4 + $0x5] ss:$8 sm:$0x7] }
 0x5a3   : > { %4664 = vtanh.f32 %v2116_v5  ;;  %v2124_v13 = vsub.f32 1.0, %v4657_v20  ;;  %v2132_v33 = vmul.f32 %v4657_v20, %v5541_v24  ;;  %v5681_v20 = vld [vmem:[%s4931_s4 + $0x1d] ss:$8 sm:$0x7] }
 0x5a9   : > { %v4659_v3 = vpop.eup %4658 }
 0x5aa   : > { %v2125_v62 = vmul.f32 %v4659_v3, %v2121_v27 }
 0x5ab   : > { %v4661_v52 = vpop.eup %4660 }
 0x5ac   : > { %v4663_v31 = vpop.eup %4662  ;;  %v2126_v38 = vmul.f32 %v4661_v52, %v2122_v11  ;;  %v5623_v57 = vadd.f32 %v2129_v60, %v2125_v62  ;;  %v5686_v11 = vld [vmem:[%s4931_s4 + $0x35] ss:$8 sm:$0x7]  ;;  %v2376_v52 = vrot.slane %v5678_v26, 1 }
 0x5ad   : > { %v4665_v36 = vpop.eup %4664  ;;  %v2127_v6 = vmul.f32 %v4663_v31, %v2123_v32  ;;  %v2377_v32 = vrot.slane %v5681_v20, 1 }
 0x5ae   : > { %v2128_v48 = vmul.f32 %v4665_v36, %v2124_v13  ;;  %v5627_v40 = vadd.f32 %v2130_v47, %v2126_v38 }
 0x5af   : > { %v5629_v39 = vadd.f32 %v2131_v49, %v2127_v6  ;;  %v2378_v6 = vrot.slane %v5686_v11, 1 }
 0x5b0   : > { %v5631_v43 = vadd.f32 %v2132_v33, %v2128_v48  ;;  %v2149_v14 = vcombine.low %v5623_v57, %v5627_v40 }
 0x5b2   : > { %v2150_v51 = vcombine.low %v5629_v39, %v5631_v43  ;;  %v2157_v56 = vrot.slane %v2149_v14, %v5218_v45 }
 0x5b4   : > { %v2164_v7 = vrot.slane %v2150_v51, %v5218_v45 }
 0x5b6   : > { %v2165_v61 = vcombine.low %v2157_v56, %v2164_v7 }
 0x5b8   : > { %v2172_v37 = vrot.slane %v2165_v61, %v5218_v45 }
 0x5ba   : > { %2239 = vmatmul.mubr.f32.vlgmr.msra.gmra.mrb[10].mxu0 %v2172_v37  ;;  %3891 = vmatmul.mubr.f32.vlgmr.msra.gmra.mrb[10].mxu1 %v2172_v37 }
 0x5bb   : > { %4302 = vmatpush1.bf16.msra.mxu0 %v4956_v22  ;;  %4333 = vmatpush3.bf16.msra.mxu1 %v5017_v42 }
 0x5bc   : > { %4304 = vmatprep.subr.bf16.mxu0 %v4958_v23  ;;  %4334 = vmatprep.subr.bf16.mxu1 %v5933_v53 }
 0x5bd   : > { %2607 = vmatprep.mubr.f32.mxu0 %v5934_v58  ;;  %3925 = vmatprep.mubr.msk.f32.mxu1 %vm4861_vm0, %v5934_v58 }
 0x5bf   : > { %4306 = vmatpush1.bf16.msra.mxu0 %v4976_v28  ;;  %4336 = vmatpush3.bf16.msra.mxu1 %v5041_v50 }
 0x5c0   : > { %4308 = vmatprep.subr.bf16.mxu0 %v4979_v29  ;;  %4337 = vmatprep.subr.bf16.mxu1 %v5933_v53 }
 0x5c3   : > { %4310 = vmatpush1.bf16.msra.mxu0 %v4994_v34  ;;  %4339 = vmatpush3.bf16.msra.mxu1 %v5069_v59 }
 0x5c4   : > { %4312 = vmatprep.subr.bf16.mxu0 %v4997_v35  ;;  %4340 = vmatprep.subr.bf16.mxu1 %v5933_v53 }
 0x5c7   : > { %4314 = vmatpush1.bf16.msra.mxu0 %v5023_v44  ;;  %4342 = vmatpush3.bf16.msra.mxu1 %v5097_v4 }
 0x5c8   : > { %4316 = vmatprep.subr.bf16.mxu0 %v5029_v46  ;;  %4343 = vmatprep.subr.bf16.mxu1 %v5933_v53 }
 0x5cb   : > { %4318 = vmatpush1.bf16.msra.mxu0 %v5054_v54  ;;  %4345 = vmatpush3.bf16.msra.mxu1 %v5122_v12 }
 0x5cc   : > { %4320 = vmatprep.subr.bf16.mxu0 %v5057_v55  ;;  %4346 = vmatprep.subr.bf16.mxu1 %v5933_v53 }
 0x5cf   : > { %4322 = vmatpush1.bf16.msra.mxu0 %v5082_v63  ;;  %4348 = vmatpush3.bf16.msra.mxu1 %v5136_v17 }
 0x5d0   : > { %4324 = vmatprep.subr.bf16.mxu0 %v5085_v0  ;;  %4349 = vmatprep.subr.bf16.mxu1 %v5933_v53 }
 0x5d3   : > { %4326 = vmatpush1.bf16.msra.mxu0 %v5110_v8  ;;  %4351 = vmatpush3.bf16.msra.mxu1 %v5149_v25 }
 0x5d4   : > { %4328 = vmatprep.subr.bf16.mxu0 %v5113_v9  ;;  %4352 = vmatprep.subr.bf16.mxu1 %v5933_v53 }
 0x5d7   : > { %4330 = vmatpush1.bf16.msra.mxu0 %v5132_v15  ;;  %4354 = vmatpush3.bf16.msra.mxu1 %v5163_v30 }
 0x5d8   : > { %4356 = vmatprep.subr.bf16.mxu0 %v4943_v16  ;;  %4387 = vmatprep.subr.bf16.mxu1 %v5933_v53  ;;  %v5689_v16 = vld [vmem:[%s4931_s4 + $0x4d] ss:$8 sm:$0x7] }
 0x5d9   : > { %v2379_v49 = vrot.slane %v5689_v16, 1 }
 0x68d   : > { %v2240_v24 = vpop.f32.mrb[10].mxu0  ;;  %v2311_v10 = vpop.f32.mrb[10].mxu1 }
 0x68e   : > { %v2241_v2 = vadd.f32 %v2240_v24, %v5211_v41  ;;  %v2242_v21 = vpop.f32.mrb[11].mxu0  ;;  %v3892_v5 = vpop.f32.mrb[11].mxu1 }
 0x68f   : > { %v2243_v18 = vadd.f32 %v2242_v21, %v5937_v19 }
 0x690   : > { %v2322_v27 = vrot.slane %v2241_v2, %v5218_v45 }
 0x691   : > { %v2391_v3 = vrot.slane %v2243_v18, %v5218_v45 }
 0x692   : > { %v2323_v62 = vcombine.high %v2322_v27, %v2322_v27  ;;  %v2330_v60 = vrot.slane %v2322_v27, %v5218_v45 }
 0x693   : > { %v2392_v31 = vcombine.high %v2391_v3, %v2391_v3  ;;  %v2399_v13 = vrot.slane %v2391_v3, %v5218_v45 }
 0x694   : > { %v2337_v38 = vrot.slane %v2323_v62, %v5218_v45  ;;  %v2338_v47 = vcombine.high %v2330_v60, %v2330_v60  ;;  %v2344_v36 = vadd.f32 %v5678_v26, %v2330_v60 }
 0x695   : > { %v2406_v48 = vrot.slane %v2392_v31, %v5218_v45  ;;  %v2407_v33 = vcombine.high %v2399_v13, %v2399_v13  ;;  %v2413_v37 = vadd.f32 %v2399_v13, %v2376_v52 }
 0x696   : > { %v2339_v14 = vcombine.high %v2337_v38, %v2337_v38  ;;  %v2345_v51 = vadd.f32 %v5681_v20, %v2337_v38  ;;  %v2346_v56 = vadd.f32 %v5686_v11, %v2338_v47  ;;  %v3508_v7 = vmul.f32 -1.442695, %v2344_v36 }
 0x697   : > { %v2408_v61 = vcombine.high %v2406_v48, %v2406_v48  ;;  %v2414_v24 = vadd.f32 %v2406_v48, %v2377_v32  ;;  %v2415_v18 = vadd.f32 %v2407_v33, %v2378_v6  ;;  %v3512_v62 = vmul.f32 -1.442695, %v2413_v37 }
 0x698   : > { %v2347_v2 = vadd.f32 %v5689_v16, %v2339_v14  ;;  %4666 = vpow2.f32 %v3508_v7  ;;  %v3509_v21 = vmul.f32 -1.442695, %v2345_v51  ;;  %v3510_v5 = vmul.f32 -1.442695, %v2346_v56 }
 0x699   : > { %v2416_v3 = vadd.f32 %v2408_v61, %v2379_v49  ;;  %v3513_v60 = vmul.f32 -1.442695, %v2414_v24  ;;  %v3514_v31 = vmul.f32 -1.442695, %v2415_v18  ;;  %v2312_v32 = vadd.f32 %v2311_v10, %v5251_v1 }
 0x69a   : > { %4668 = vpow2.f32 %v3509_v21  ;;  %v3511_v27 = vmul.f32 -1.442695, %v2347_v2 }
 0x69b   : > { %4670 = vpow2.f32 %v3510_v5  ;;  %v3515_v38 = vmul.f32 -1.442695, %v2416_v3  ;;  %v2448_v33 = vrot.slane %v2312_v32, %v5218_v45  ;;  %v2474_v5 = vrot.slane %v5678_v26, 2 }
 0x69c   : > { %4672 = vpow2.f32 %v3511_v27  ;;  %v2477_v32 = vrot.slane %v5689_v16, 2 }
 0x69d   : > { %4674 = vpow2.f32 %v3512_v62  ;;  %v2449_v7 = vcombine.high %v2448_v33, %v2448_v33  ;;  %v2456_v24 = vrot.slane %v2448_v33, %v5218_v45 }
 0x69e   : > { %4676 = vpow2.f32 %v3513_v60  ;;  %v2475_v60 = vrot.slane %v5681_v20, 2 }
 0x69f   : > { %4678 = vpow2.f32 %v3514_v31  ;;  %v2463_v21 = vrot.slane %v2449_v7, %v5218_v45 }
 0x6a0   : > { %4680 = vpow2.f32 %v3515_v38  ;;  %v2464_v38 = vcombine.high %v2456_v24, %v2456_v24 }
 0x6a2   : > { %v4667_v52 = vpop.eup %4666 }
 0x6a3   : > { %v2360_v13 = vadd.f32 1.0, %v4667_v52  ;;  %v2476_v52 = vrot.slane %v5686_v11, 2 }
 0x6a4   : > { %v4669_v47 = vpop.eup %4668 }
 0x6a5   : > { %v4671_v36 = vpop.eup %4670  ;;  %v2361_v6 = vadd.f32 1.0, %v4669_v47  ;;  %4682 = vrcp.f32 %v2360_v13  ;;  %v2465_v47 = vcombine.high %v2463_v21, %v2463_v21 }
 0x6a6   : > { %v4673_v48 = vpop.eup %4672  ;;  %v2362_v49 = vadd.f32 1.0, %v4671_v36 }
 0x6a7   : > { %v2363_v14 = vadd.f32 1.0, %v4673_v48  ;;  %4684 = vrcp.f32 %v2361_v6  ;;  %v4675_v51 = vpop.eup %4674 }
 0x6a8   : > { %4686 = vrcp.f32 %v2362_v49  ;;  %v4677_v56 = vpop.eup %4676  ;;  %v2429_v10 = vadd.f32 1.0, %v4675_v51 }
 0x6a9   : > { %4688 = vrcp.f32 %v2363_v14  ;;  %v4679_v61 = vpop.eup %4678  ;;  %v2430_v2 = vadd.f32 1.0, %v4677_v56 }
 0x6aa   : > { %v4681_v37 = vpop.eup %4680  ;;  %v2431_v18 = vadd.f32 1.0, %v4679_v61  ;;  %4690 = vrcp.f32 %v2429_v10 }
 0x6ab   : > { %v2432_v3 = vadd.f32 1.0, %v4681_v37  ;;  %4692 = vrcp.f32 %v2430_v2 }
 0x6ac   : > { %4694 = vrcp.f32 %v2431_v18 }
 0x6ad   : > { %4696 = vrcp.f32 %v2432_v3 }
 0x6af   : > { %v4683_v27 = vpop.eup %4682 }
 0x6b0   : > { %v2470_v62 = vmul.f32 %v4683_v27, %v2456_v24 }
 0x6b1   : > { %v4685_v31 = vpop.eup %4684 }
 0x6b2   : > { %v4687_v13 = vpop.eup %4686  ;;  %v2471_v36 = vmul.f32 %v4685_v31, %v2463_v21  ;;  %v2482_v6 = vadd.f32 %v2474_v5, %v2470_v62 }
 0x6b3   : > { %v4689_v26 = vpop.eup %4688  ;;  %v2472_v48 = vmul.f32 %v4687_v13, %v2464_v38 }
 0x6b4   : > { %v2473_v49 = vmul.f32 %v4689_v26, %v2465_v47  ;;  %v2483_v33 = vadd.f32 %v2475_v60, %v2471_v36  ;;  %4698 = vtanh.f32 %v2482_v6  ;;  %v4691_v11 = vpop.eup %4690 }
 0x6b5   : > { %v2484_v20 = vadd.f32 %v2476_v52, %v2472_v48  ;;  %v4693_v51 = vpop.eup %4692  ;;  %v2490_v7 = vsub.f32 1.0, %v4691_v11  ;;  %v2498_v24 = vmul.f32 %v4691_v11, %v5623_v57 }
 0x6b6   : > { %v2485_v14 = vadd.f32 %v2477_v32, %v2473_v49  ;;  %4700 = vtanh.f32 %v2483_v33  ;;  %v4695_v16 = vpop.eup %4694  ;;  %v2491_v37 = vsub.f32 1.0, %v4693_v51  ;;  %v2499_v3 = vmul.f32 %v4693_v51, %v5627_v40 }
 0x6b7   : > { %4702 = vtanh.f32 %v2484_v20  ;;  %v4697_v56 = vpop.eup %4696  ;;  %v2492_v21 = vsub.f32 1.0, %v4695_v16  ;;  %v2500_v38 = vmul.f32 %v4695_v16, %v5629_v39 }
 0x6b8   : > { %4704 = vtanh.f32 %v2485_v14  ;;  %v2493_v18 = vsub.f32 1.0, %v4697_v56  ;;  %v2501_v32 = vmul.f32 %v4697_v56, %v5631_v43 }
 0x6be   : > { %v4699_v61 = vpop.eup %4698 }
 0x6bf   : > { %v2494_v10 = vmul.f32 %v4699_v61, %v2490_v7 }
 0x6c0   : > { %v4701_v2 = vpop.eup %4700 }
 0x6c1   : > { %v4703_v5 = vpop.eup %4702  ;;  %v2495_v27 = vmul.f32 %v4701_v2, %v2491_v37  ;;  %v5713_v62 = vadd.f32 %v2498_v24, %v2494_v10 }
 0x6c2   : > { %v4705_v60 = vpop.eup %4704  ;;  %v2496_v31 = vmul.f32 %v4703_v5, %v2492_v21 }
 0x6c3   : > { %v2497_v52 = vmul.f32 %v4705_v60, %v2493_v18  ;;  %v5717_v13 = vadd.f32 %v2499_v3, %v2495_v27 }
 0x6c4   : > { %v5719_v47 = vadd.f32 %v2500_v38, %v2496_v31 }
 0x6c5   : > { %v5721_v57 = vadd.f32 %v2501_v32, %v2497_v52  ;;  %v2518_v36 = vcombine.low %v5713_v62, %v5717_v13 }
 0x6c7   : > { %v2519_v40 = vcombine.low %v5719_v47, %v5721_v57  ;;  %v2526_v6 = vrot.slane %v2518_v36, %v5218_v45 }
 0x6c9   : > { %v2533_v26 = vrot.slane %v2519_v40, %v5218_v45 }
 0x6cb   : > { %v2534_v39 = vcombine.low %v2526_v6, %v2533_v26 }
 0x6cd   : > { %v2541_v48 = vrot.slane %v2534_v39, %v5218_v45 }
 0x6cf   : > { %2608 = vmatmul.mubr.f32.vlgmr.msra.gmra.mrb[12].mxu0 %v2541_v48  ;;  %3926 = vmatmul.mubr.f32.vlgmr.msra.gmra.mrb[12].mxu1 %v2541_v48 }
 0x6d0   : > { %4358 = vmatpush1.bf16.msra.mxu0 %v4956_v22  ;;  %4389 = vmatpush3.bf16.msra.mxu1 %v5017_v42  ;;  %v5766_v42 = vld [vmem:[%s4931_s4 + $0x6] ss:$8 sm:$0x7] }
 0x6d1   : > { %4360 = vmatprep.subr.bf16.mxu0 %v4958_v23  ;;  %4390 = vmatprep.subr.bf16.mxu1 %v5933_v53 }
 0x6d2   : > { %2976 = vmatprep.mubr.f32.mxu0 %v5934_v58  ;;  %3960 = vmatprep.mubr.msk.f32.mxu1 %vm4861_vm0, %v5934_v58 }
 0x6d4   : > { %4362 = vmatpush1.bf16.msra.mxu0 %v4976_v28  ;;  %4392 = vmatpush3.bf16.msra.mxu1 %v5041_v50 }
 0x6d5   : > { %4364 = vmatprep.subr.bf16.mxu0 %v4979_v29  ;;  %4393 = vmatprep.subr.bf16.mxu1 %v5933_v53 }
 0x6d8   : > { %4366 = vmatpush1.bf16.msra.mxu0 %v4994_v34  ;;  %4395 = vmatpush3.bf16.msra.mxu1 %v5069_v59 }
 0x6d9   : > { %4368 = vmatprep.subr.bf16.mxu0 %v4997_v35  ;;  %4396 = vmatprep.subr.bf16.mxu1 %v5933_v53 }
 0x6dc   : > { %4370 = vmatpush1.bf16.msra.mxu0 %v5023_v44  ;;  %4398 = vmatpush3.bf16.msra.mxu1 %v5097_v4  ;;  %v5769_v44 = vld [vmem:[%s4931_s4 + $0x1e] ss:$8 sm:$0x7] }
 0x6dd   : > { %4372 = vmatprep.subr.bf16.mxu0 %v5029_v46  ;;  %4399 = vmatprep.subr.bf16.mxu1 %v5933_v53  ;;  %v2746_v4 = vrot.slane %v5769_v44, 1 }
 0x6e0   : > { %4374 = vmatpush1.bf16.msra.mxu0 %v5054_v54  ;;  %4401 = vmatpush3.bf16.msra.mxu1 %v5122_v12  ;;  %v5774_v54 = vld [vmem:[%s4931_s4 + $0x36] ss:$8 sm:$0x7] }
 0x6e1   : > { %4376 = vmatprep.subr.bf16.mxu0 %v5057_v55  ;;  %4402 = vmatprep.subr.bf16.mxu1 %v5933_v53  ;;  %v5777_v55 = vld [vmem:[%s4931_s4 + $0x4e] ss:$8 sm:$0x7] }
 0x6e4   : > { %4378 = vmatpush1.bf16.msra.mxu0 %v5082_v63  ;;  %4404 = vmatpush3.bf16.msra.mxu1 %v5136_v17 }
 0x6e5   : > { %4380 = vmatprep.subr.bf16.mxu0 %v5085_v0  ;;  %4405 = vmatprep.subr.bf16.mxu1 %v5933_v53  ;;  %v2745_v0 = vrot.slane %v5766_v42, 1 }
 0x6e8   : > { %4382 = vmatpush1.bf16.msra.mxu0 %v5110_v8  ;;  %4407 = vmatpush3.bf16.msra.mxu1 %v5149_v25  ;;  %v2747_v25 = vrot.slane %v5774_v54, 1 }
 0x6e9   : > { %4384 = vmatprep.subr.bf16.mxu0 %v5113_v9  ;;  %4408 = vmatprep.subr.bf16.mxu1 %v5933_v53 }
 0x6ec   : > { %4386 = vmatpush1.bf16.msra.mxu0 %v5132_v15  ;;  %4410 = vmatpush3.bf16.msra.mxu1 %v5163_v30  ;;  %v2748_v30 = vrot.slane %v5777_v55, 1 }
 0x7a2   : > { %v2609_v22 = vpop.f32.mrb[12].mxu0  ;;  %v2680_v23 = vpop.f32.mrb[12].mxu1 }
 0x7a3   : > { %v2610_v28 = vadd.f32 %v2609_v22, %v5211_v41  ;;  %v2611_v29 = vpop.f32.mrb[13].mxu0  ;;  %v3927_v34 = vpop.f32.mrb[13].mxu1  ;;  %v2681_v27 = vadd.f32 %v2680_v23, %v5251_v1 }
 0x7a4   : > { %v2612_v35 = vadd.f32 %v2611_v29, %v5937_v19 }
 0x7a5   : > { %v2691_v46 = vrot.slane %v2610_v28, %v5218_v45  ;;  %v2817_v36 = vrot.slane %v2681_v27, %v5218_v45 }
 0x7a6   : > { %v2760_v50 = vrot.slane %v2612_v35, %v5218_v45  ;;  %v2843_v35 = vrot.slane %v5766_v42, 2 }
 0x7a7   : > { %v2692_v59 = vcombine.high %v2691_v46, %v2691_v46  ;;  %v2699_v63 = vrot.slane %v2691_v46, %v5218_v45  ;;  %v2818_v39 = vcombine.high %v2817_v36, %v2817_v36  ;;  %v2825_v28 = vrot.slane %v2817_v36, %v5218_v45 }
 0x7a8   : > { %v2761_v8 = vcombine.high %v2760_v50, %v2760_v50  ;;  %v2768_v9 = vrot.slane %v2760_v50, %v5218_v45 }
 0x7a9   : > { %v2706_v12 = vrot.slane %v2692_v59, %v5218_v45  ;;  %v2707_v15 = vcombine.high %v2699_v63, %v2699_v63  ;;  %v2713_v17 = vadd.f32 %v5766_v42, %v2699_v63  ;;  %v2832_v34 = vrot.slane %v2818_v39, %v5218_v45 }
 0x7aa   : > { %v2775_v53 = vrot.slane %v2761_v8, %v5218_v45  ;;  %v2776_v58 = vcombine.high %v2768_v9, %v2768_v9  ;;  %v2782_v11 = vadd.f32 %v2768_v9, %v2745_v0  ;;  %v2844_v0 = vrot.slane %v5769_v44, 2 }
 0x7ab   : > { %v2708_v43 = vcombine.high %v2706_v12, %v2706_v12  ;;  %v2714_v49 = vadd.f32 %v5769_v44, %v2706_v12  ;;  %v2715_v33 = vadd.f32 %v5774_v54, %v2707_v15  ;;  %v3520_v20 = vmul.f32 -1.442695, %v2713_v17 }
 0x7ac   : > { %v2777_v14 = vcombine.high %v2775_v53, %v2775_v53  ;;  %v2783_v51 = vadd.f32 %v2775_v53, %v2746_v4  ;;  %v2784_v61 = vadd.f32 %v2776_v58, %v2747_v25  ;;  %v3524_v24 = vmul.f32 -1.442695, %v2782_v11 }
 0x7ad   : > { %v2716_v16 = vadd.f32 %v5777_v55, %v2708_v43  ;;  %4706 = vpow2.f32 %v3520_v20  ;;  %v3521_v56 = vmul.f32 -1.442695, %v2714_v49  ;;  %v3522_v7 = vmul.f32 -1.442695, %v2715_v33 }
 0x7ae   : > { %v2785_v10 = vadd.f32 %v2777_v14, %v2748_v30  ;;  %v3525_v2 = vmul.f32 -1.442695, %v2783_v51  ;;  %v3526_v21 = vmul.f32 -1.442695, %v2784_v61  ;;  %v2833_v8 = vcombine.high %v2825_v28, %v2825_v28 }
 0x7af   : > { %4708 = vpow2.f32 %v3521_v56  ;;  %v3523_v37 = vmul.f32 -1.442695, %v2716_v16  ;;  %v2845_v9 = vrot.slane %v5774_v54, 2  ;;  %v2846_v12 = vrot.slane %v5777_v55, 2 }
 0x7b0   : > { %4710 = vpow2.f32 %v3522_v7  ;;  %v3527_v5 = vmul.f32 -1.442695, %v2785_v10  ;;  %v2834_v17 = vcombine.high %v2832_v34, %v2832_v34 }
 0x7b1   : > { %4712 = vpow2.f32 %v3523_v37 }
 0x7b2   : > { %4714 = vpow2.f32 %v3524_v24 }
 0x7b3   : > { %4716 = vpow2.f32 %v3525_v2 }
 0x7b4   : > { %4718 = vpow2.f32 %v3526_v21 }
 0x7b5   : > { %4720 = vpow2.f32 %v3527_v5 }
 0x7b7   : > { %v4707_v18 = vpop.eup %4706 }
 0x7b8   : > { %v2729_v3 = vadd.f32 1.0, %v4707_v18 }
 0x7b9   : > { %v4709_v60 = vpop.eup %4708 }
 0x7ba   : > { %v4711_v31 = vpop.eup %4710  ;;  %v2730_v38 = vadd.f32 1.0, %v4709_v60  ;;  %4722 = vrcp.f32 %v2729_v3 }
 0x7bb   : > { %v4713_v52 = vpop.eup %4712  ;;  %v2731_v32 = vadd.f32 1.0, %v4711_v31 }
 0x7bc   : > { %v2732_v40 = vadd.f32 1.0, %v4713_v52  ;;  %4724 = vrcp.f32 %v2730_v38  ;;  %v4715_v6 = vpop.eup %4714 }
 0x7bd   : > { %4726 = vrcp.f32 %v2731_v32  ;;  %v4717_v26 = vpop.eup %4716  ;;  %v2798_v23 = vadd.f32 1.0, %v4715_v6 }
 0x7be   : > { %4728 = vrcp.f32 %v2732_v40  ;;  %v4719_v48 = vpop.eup %4718  ;;  %v2799_v29 = vadd.f32 1.0, %v4717_v26 }
 0x7bf   : > { %v4721_v22 = vpop.eup %4720  ;;  %v2800_v46 = vadd.f32 1.0, %v4719_v48  ;;  %4730 = vrcp.f32 %v2798_v23  ;;  %v5821_v23 = vld [vmem:[%s4931_s4 + $0x7] ss:$8 sm:$0x7] }
 0x7c0   : > { %v2801_v59 = vadd.f32 1.0, %v4721_v22  ;;  %4732 = vrcp.f32 %v2799_v29 }
 0x7c1   : > { %4734 = vrcp.f32 %v2800_v46  ;;  %v5832_v46 = vld [vmem:[%s4931_s4 + $0x4f] ss:$8 sm:$0x7] }
 0x7c2   : > { %4736 = vrcp.f32 %v2801_v59 }
 0x7c4   : > { %v4723_v50 = vpop.eup %4722 }
 0x7c5   : > { %v2839_v63 = vmul.f32 %v4723_v50, %v2825_v28  ;;  %v5824_v28 = vld [vmem:[%s4931_s4 + $0x1f] ss:$8 sm:$0x7] }
 0x7c6   : > { %v4725_v4 = vpop.eup %4724 }
 0x7c7   : > { %v4727_v15 = vpop.eup %4726  ;;  %v2840_v25 = vmul.f32 %v4725_v4, %v2832_v34  ;;  %v2851_v30 = vadd.f32 %v2843_v35, %v2839_v63  ;;  %v5829_v35 = vld [vmem:[%s4931_s4 + $0x37] ss:$8 sm:$0x7]  ;;  %v3115_v63 = vrot.slane %v5824_v28, 1 }
 0x7c8   : > { %v4729_v42 = vpop.eup %4728  ;;  %v2841_v53 = vmul.f32 %v4727_v15, %v2833_v8  ;;  %v3117_v15 = vrot.slane %v5832_v46, 1 }
 0x7c9   : > { %v2842_v58 = vmul.f32 %v4729_v42, %v2834_v17  ;;  %v2852_v43 = vadd.f32 %v2844_v0, %v2840_v25  ;;  %4738 = vtanh.f32 %v2851_v30  ;;  %v4731_v54 = vpop.eup %4730 }
 0x7ca   : > { %v2853_v44 = vadd.f32 %v2845_v9, %v2841_v53  ;;  %v4733_v33 = vpop.eup %4732  ;;  %v2859_v14 = vsub.f32 1.0, %v4731_v54  ;;  %v2867_v56 = vmul.f32 %v4731_v54, %v5713_v62 }
 0x7cb   : > { %v2854_v49 = vadd.f32 %v2846_v12, %v2842_v58  ;;  %4740 = vtanh.f32 %v2852_v43  ;;  %v4735_v55 = vpop.eup %4734  ;;  %v2860_v51 = vsub.f32 1.0, %v4733_v33  ;;  %v2868_v2 = vmul.f32 %v4733_v33, %v5717_v13 }
 0x7cc   : > { %4742 = vtanh.f32 %v2853_v44  ;;  %v4737_v20 = vpop.eup %4736  ;;  %v2861_v61 = vsub.f32 1.0, %v4735_v55  ;;  %v2869_v27 = vmul.f32 %v4735_v55, %v5719_v47  ;;  %v3116_v12 = vrot.slane %v5829_v35, 1 }
 0x7cd   : > { %4744 = vtanh.f32 %v2854_v49  ;;  %v2862_v10 = vsub.f32 1.0, %v4737_v20  ;;  %v2870_v60 = vmul.f32 %v4737_v20, %v5721_v57 }
 0x7d3   : > { %v4739_v11 = vpop.eup %4738 }
 0x7d4   : > { %v2863_v16 = vmul.f32 %v4739_v11, %v2859_v14 }
 0x7d5   : > { %v4741_v7 = vpop.eup %4740 }
 0x7d6   : > { %v4743_v37 = vpop.eup %4742  ;;  %v2864_v24 = vmul.f32 %v4741_v7, %v2860_v51  ;;  %v5801_v21 = vadd.f32 %v2867_v56, %v2863_v16 }
 0x7d7   : > { %v4745_v5 = vpop.eup %4744  ;;  %v2865_v18 = vmul.f32 %v4743_v37, %v2861_v61 }
 0x7d8   : > { %v2866_v3 = vmul.f32 %v4745_v5, %v2862_v10  ;;  %v5805_v31 = vadd.f32 %v2868_v2, %v2864_v24 }
 0x7d9   : > { %v5807_v38 = vadd.f32 %v2869_v27, %v2865_v18 }
 0x7da   : > { %v5809_v62 = vadd.f32 %v2870_v60, %v2866_v3  ;;  %v2887_v13 = vcombine.low %v5801_v21, %v5805_v31 }
 0x7dc   : > { %v2888_v52 = vcombine.low %v5807_v38, %v5809_v62  ;;  %v2895_v32 = vrot.slane %v2887_v13, %v5218_v45 }
 0x7de   : > { %v2902_v47 = vrot.slane %v2888_v52, %v5218_v45 }
 0x7e0   : > { %v2903_v57 = vcombine.low %v2895_v32, %v2902_v47 }
 0x7e2   : > { %v2910_v36 = vrot.slane %v2903_v57, %v5218_v45 }
 0x7e4   : > { %2977 = vmatmul.mubr.f32.vlgmr.msra.gmra.mrb[14].mxu0 %v2910_v36  ;;  %3961 = vmatmul.mubr.f32.vlgmr.msra.gmra.mrb[14].mxu1 %v2910_v36 }
 0x8b7   : > { %v2978_v40 = vpop.f32.mrb[14].mxu0  ;;  %v3049_v6 = vpop.f32.mrb[14].mxu1 }
 0x8b8   : > { %v2979_v26 = vadd.f32 %v2978_v40, %v5211_v41  ;;  %v2980_v39 = vpop.f32.mrb[15].mxu0  ;;  %v3962_v48 = vpop.f32.mrb[15].mxu1  ;;  %v3114_v41 = vrot.slane %v5821_v23, 1  ;;  %v3050_v37 = vadd.f32 %v3049_v6, %v5251_v1 }
 0x8b9   : > { %v2981_v22 = vadd.f32 %v2980_v39, %v5937_v19 }
 0x8ba   : > { %v3060_v29 = vrot.slane %v2979_v26, %v5218_v45  ;;  %v3186_v3 = vrot.slane %v3050_v37, %v5218_v45  ;;  %v3212_v26 = vrot.slane %v5821_v23, 2 }
 0x8bb   : > { %v3129_v34 = vrot.slane %v2981_v22, %v5218_v45 }
 0x8bc   : > { %v3061_v50 = vcombine.high %v3060_v29, %v3060_v29  ;;  %v3068_v59 = vrot.slane %v3060_v29, %v5218_v45  ;;  %v3187_v32 = vcombine.high %v3186_v3, %v3186_v3  ;;  %v3194_v36 = vrot.slane %v3186_v3, %v5218_v45 }
 0x8bd   : > { %v3130_v19 = vcombine.high %v3129_v34, %v3129_v34  ;;  %v3137_v0 = vrot.slane %v3129_v34, %v5218_v45  ;;  %v3213_v34 = vrot.slane %v5824_v28, 2 }
 0x8be   : > { %v3075_v4 = vrot.slane %v3061_v50, %v5218_v45  ;;  %v3076_v8 = vcombine.high %v3068_v59, %v3068_v59  ;;  %v3082_v9 = vadd.f32 %v5821_v23, %v3068_v59  ;;  %v3201_v6 = vrot.slane %v3187_v32, %v5218_v45 }
 0x8bf   : > { %v3144_v17 = vrot.slane %v3130_v19, %v5218_v45  ;;  %v3145_v25 = vcombine.high %v3137_v0, %v3137_v0  ;;  %v3151_v44 = vadd.f32 %v3137_v0, %v3114_v41  ;;  %v3202_v59 = vcombine.high %v3194_v36, %v3194_v36 }
 0x8c0   : > { %v3077_v30 = vcombine.high %v3075_v4, %v3075_v4  ;;  %v3083_v42 = vadd.f32 %v5824_v28, %v3075_v4  ;;  %v3084_v53 = vadd.f32 %v5829_v35, %v3076_v8  ;;  %v3532_v58 = vmul.f32 -1.442695, %v3082_v9 }
 0x8c1   : > { %v3146_v43 = vcombine.high %v3144_v17, %v3144_v17  ;;  %v3152_v49 = vadd.f32 %v3144_v17, %v3115_v63  ;;  %v3153_v20 = vadd.f32 %v3145_v25, %v3116_v12  ;;  %v3536_v51 = vmul.f32 -1.442695, %v3151_v44 }
 0x8c2   : > { %v3085_v54 = vadd.f32 %v5832_v46, %v3077_v30  ;;  %4746 = vpow2.f32 %v3532_v58  ;;  %v3533_v33 = vmul.f32 -1.442695, %v3083_v42  ;;  %v3534_v55 = vmul.f32 -1.442695, %v3084_v53 }
 0x8c3   : > { %v3154_v11 = vadd.f32 %v3146_v43, %v3117_v15  ;;  %v3537_v16 = vmul.f32 -1.442695, %v3152_v49  ;;  %v3538_v56 = vmul.f32 -1.442695, %v3153_v20  ;;  %v3214_v41 = vrot.slane %v5829_v35, 2 }
 0x8c4   : > { %4748 = vpow2.f32 %v3533_v33  ;;  %v3535_v14 = vmul.f32 -1.442695, %v3085_v54  ;;  %v3215_v63 = vrot.slane %v5832_v46, 2  ;;  %v3203_v0 = vcombine.high %v3201_v6, %v3201_v6 }
 0x8c5   : > { %4750 = vpow2.f32 %v3534_v55  ;;  %v3539_v7 = vmul.f32 -1.442695, %v3154_v11 }
 0x8c6   : > { %4752 = vpow2.f32 %v3535_v14 }
 0x8c7   : > { %4754 = vpow2.f32 %v3536_v51 }
 0x8c8   : > { %4756 = vpow2.f32 %v3537_v16 }
 0x8c9   : > { %4758 = vpow2.f32 %v3538_v56 }
 0x8ca   : > { %4760 = vpow2.f32 %v3539_v7 }
 0x8cc   : > { %v4747_v61 = vpop.eup %4746 }
 0x8cd   : > { %v3098_v10 = vadd.f32 1.0, %v4747_v61 }
 0x8ce   : > { %v4749_v24 = vpop.eup %4748 }
 0x8cf   : > { %v4751_v2 = vpop.eup %4750  ;;  %v3099_v5 = vadd.f32 1.0, %v4749_v24  ;;  %4762 = vrcp.f32 %v3098_v10 }
 0x8d0   : > { %v4753_v18 = vpop.eup %4752  ;;  %v3100_v27 = vadd.f32 1.0, %v4751_v2 }
 0x8d1   : > { %v3101_v60 = vadd.f32 1.0, %v4753_v18  ;;  %4764 = vrcp.f32 %v3099_v5  ;;  %v4755_v13 = vpop.eup %4754 }
 0x8d2   : > { %4766 = vrcp.f32 %v3100_v27  ;;  %v4757_v52 = vpop.eup %4756  ;;  %v3167_v1 = vadd.f32 1.0, %v4755_v13 }
 0x8d3   : > { %4768 = vrcp.f32 %v3101_v60  ;;  %v4759_v47 = vpop.eup %4758  ;;  %v3168_v40 = vadd.f32 1.0, %v4757_v52 }
 0x8d4   : > { %v4761_v57 = vpop.eup %4760  ;;  %v3169_v39 = vadd.f32 1.0, %v4759_v47  ;;  %4770 = vrcp.f32 %v3167_v1 }
 0x8d5   : > { %v3170_v22 = vadd.f32 1.0, %v4761_v57  ;;  %4772 = vrcp.f32 %v3168_v40  ;;  %v5938_v40 = vld [vmem:[#allocation7_spill] sm:$0xff] (!%p3541_p10) }
 0x8d6   : > { %4774 = vrcp.f32 %v3169_v39  ;;  %v5939_v39 = vsub.s32 (!%p3541_p10), 0, %v5938_v40 }
 0x8d7   : > { %4776 = vrcp.f32 %v3170_v22  ;;  %v5940_v22 = vsub.s32 (!%p3541_p10), 1, %v5938_v40 }
 0x8d9   : > { %v4763_v48 = vpop.eup %4762 }
 0x8da   : > { %v3208_v29 = vmul.f32 %v4763_v48, %v3194_v36 }
 0x8db   : > { %v4765_v50 = vpop.eup %4764 }
 0x8dc   : > { %v4767_v19 = vpop.eup %4766  ;;  %v3209_v4 = vmul.f32 %v4765_v50, %v3201_v6  ;;  %v3220_v8 = vadd.f32 %v3212_v26, %v3208_v29  ;;  %v3331_v6 = vsub.s32 (!%p3541_p10), 3, %v5938_v40 }
 0x8dd   : > { %v4769_v23 = vpop.eup %4768  ;;  %v3210_v9 = vmul.f32 %v4767_v19, %v3202_v59 }
 0x8de   : > { %v3211_v12 = vmul.f32 %v4769_v23, %v3203_v0  ;;  %v3221_v15 = vadd.f32 %v3213_v34, %v3209_v4  ;;  %4778 = vtanh.f32 %v3220_v8  ;;  %v4771_v35 = vpop.eup %4770  ;;  %v5941_v34 = vsub.s32 (!%p3541_p10), 2, %v5938_v40 }
 0x8df   : > { %v3222_v28 = vadd.f32 %v3214_v41, %v3210_v9  ;;  %v4773_v25 = vpop.eup %4772  ;;  %v3228_v42 = vsub.f32 1.0, %v4771_v35  ;;  %v3236_v44 = vmul.f32 %v4771_v35, %v5801_v21 }
 0x8e0   : > { %v3223_v17 = vadd.f32 %v3215_v63, %v3211_v12  ;;  %4780 = vtanh.f32 %v3221_v15  ;;  %v4775_v46 = vpop.eup %4774  ;;  %v3229_v58 = vsub.f32 1.0, %v4773_v25  ;;  %v3237_v14 = vmul.f32 %v4773_v25, %v5805_v31 }
 0x8e1   : > { %4782 = vtanh.f32 %v3222_v28  ;;  %v4777_v30 = vpop.eup %4776  ;;  %v3230_v54 = vsub.f32 1.0, %v4775_v46  ;;  %v3238_v56 = vmul.f32 %v4775_v46, %v5807_v38 }
 0x8e2   : > { %4784 = vtanh.f32 %v3223_v17  ;;  %v3231_v55 = vsub.f32 1.0, %v4777_v30  ;;  %v3239_v61 = vmul.f32 %v4777_v30, %v5809_v62 }
 0x8e8   : > { %v4779_v53 = vpop.eup %4778 }
 0x8e9   : > { %v3232_v43 = vmul.f32 %v4779_v53, %v3228_v42 }
 0x8ea   : > { %v4781_v49 = vpop.eup %4780 }
 0x8eb   : > { %v4783_v33 = vpop.eup %4782  ;;  %v3233_v20 = vmul.f32 %v4781_v49, %v3229_v58  ;;  %v3240_v11 = vadd.f32 %v3236_v44, %v3232_v43 }
 0x8ec   : > { %v4785_v51 = vpop.eup %4784  ;;  %v3234_v16 = vmul.f32 %v4783_v33, %v3230_v54 }
 0x8ed   : > { %v3235_v7 = vmul.f32 %v4785_v51, %v3231_v55  ;;  %v3241_v37 = vadd.f32 %v3237_v14, %v3233_v20  ;;  %v3278_v31 = vmul.f32 (!%p3541_p10), %v3240_v11, %v3240_v11 }
 0x8ee   : > { %v3242_v10 = vadd.f32 %v3238_v56, %v3234_v16 }
 0x8ef   : > { %v3243_v24 = vadd.f32 %v3239_v61, %v3235_v7  ;;  %v3248_v2 = vcombine.low %v3240_v11, %v3241_v37  ;;  %v3279_v3 = vmul.f32 (!%p3541_p10), %v3241_v37, %v3241_v37 }
 0x8f0   : > { %v3280_v38 = vmul.f32 (!%p3541_p10), %v3242_v10, %v3242_v10 }
 0x8f1   : > { %v3249_v21 = vcombine.low %v3242_v10, %v3243_v24  ;;  %v3256_v5 = vrot.slane %v3248_v2, %v5218_v45  ;;  %3277 = sbr.rel (%p3541_p10) target bundleno = 2464 (0x9a0), region = 63  ;;  %v3281_v60 = vmul.f32 (!%p3541_p10), %v3243_v24, %v3243_v24  ;;  %v3286_v13 = vcombine.low (!%p3541_p10), %v3278_v31, %v3279_v3 }
 0x8f3   : > { %v3263_v18 = vrot.slane %v3249_v21, %v5218_v45  ;;  %v3287_v62 = vcombine.low (!%p3541_p10), %v3280_v38, %v3281_v60  ;;  %v3294_v52 = vrot.slane (!%p3541_p10), %v3286_v13, %v5218_v45 }
 0x8f5   : > { %v3264_v27 = vcombine.low %v3256_v5, %v3263_v18  ;;  %v3301_v32 = vrot.slane (!%p3541_p10), %v3287_v62, %v5218_v45 }
 0x8f7   : > { %3540 = vst.sshfl [vmem:[#allocation2] sm:$0x55 pattern:$0x73625140] %v3264_v27  ;;  %v3302_v47 = vcombine.low (!%p3541_p10), %v3294_v52, %v3301_v32 }
 0x8f9   : > { %v3309_v57 = vrot.slane %v3302_v47, %v5218_v45 }
 0x8fb   : > { %v3312_v1 = vsel %vm3311_vm1, %v3309_v57, 0.0 }
 0x8fc   : > { %3313 = vadd.xlane.f32.xlu0 %v3312_v1 }
 0x989   : > { %v3314_v36 = vpop.xlane.xlu0 %3313 }
 0x98a   : > { %4786 = vrsqrt.f32 %v3314_v36 }
 0x994   : > { %v4787_v26 = vpop.eup %4786 }
 0x995   : > { %v3320_v48 = vrot.slane %v4787_v26, %v5939_v39  ;;  %v3324_v29 = vrot.slane %v4787_v26, %v5940_v22  ;;  %v3328_v50 = vrot.slane %v4787_v26, %v5941_v34  ;;  %v3332_v59 = vrot.slane %v4787_v26, %v3331_v6 }
 0x997   : > { %v3337_v41 = vmul.f32 %v3320_v48, %v3240_v11  ;;  %v3338_v63 = vmul.f32 %v3324_v29, %v3241_v37  ;;  %v3339_v19 = vmul.f32 %v3328_v50, %v3242_v10  ;;  %v3340_v0 = vmul.f32 %v3332_v59, %v3243_v24 }
 0x999   : > { %v3345_v4 = vcombine.low %v3337_v41, %v3338_v63  ;;  %v3346_v8 = vcombine.low %v3339_v19, %v3340_v0 }
 0x99b   : > { %v3353_v23 = vrot.slane %v3345_v4, %v5218_v45  ;;  %v3360_v9 = vrot.slane %v3346_v8, %v5218_v45 }
 0x99d   : > { %v3361_v12 = vcombine.low %v3353_v23, %v3360_v9 }
 0x99f   : > { %3542 = vst.sshfl [vmem:[#allocation4] sm:$0x55 pattern:$0x73625140] %v3361_v12 }
 0x9a0 PF: > { %p5875_p11 = scmp.eq.s32.totalorder %s3439_s17, 3  ;;  %s4863_s4 = smov [#allocation4]  }
 0x9a1   : > { %s3380_s8 = sshll.u32 %s4863_s4, 4  ;;  %s3381_s8 = int_to_ptr.vmem [resolvable:$true] %s3380_s8 }
 0x9a2   : > { %s4788_s9 = scalar_lea.vmem %s3381_s8, 64  ;;  %p4795_p1 = scmp.lt.s32.totalorder %s3381_s8, %s3381_s8 }
 0x9a3   : > { %p4789_p12 = scmp.ne.s32.totalorder %s3381_s8, %s4788_s9  ;;  %p4796_p2 = scmp.lt.s32.totalorder %s4788_s9, %s4788_s9 }
 0x9a5   : > { %p4790_p13 = pnand %p4789_p12, %p5875_p11  ;;  %p4797_p3 = por %p4796_p2, %p4795_p1 }
 0x9a7   : > { %p4791_p0 = pneg %p4790_p13 }
 0x9a9   : > { %p4798_p4 = pnand %p4797_p3, %p4791_p0 }
 0x9ab   : > { %4801 = shalt.err (!%p4798_p4)
}
 0x9ac   : > { %s4802_s17 = scalar_lea.hbm %s5919_s3, 64 }
 0x9ad   : > { %p4803_p5 = scmp.ne.s32.totalorder %s5919_s3, %s4802_s17  ;;  %p4808_p8 = scmp.lt.u32.totalorder %s4802_s17, %s5919_s3 }
 0x9af   : > { %p4804_p6 = pnand %p4803_p5, %p5875_p11 }
 0x9b1   : > { %p4805_p7 = pneg %p4804_p6 }
 0x9b3   : > { %p4810_p9 = pnand %p4808_p8, %p4805_p7 }
 0x9b5   : > { %4813 = shalt.err (!%p4810_p9)
}
 0x9b6   : > { %4415 = dma.vmem_to_hbm [thread:$0]  (%p5875_p11), %s3381_s8, 64, %s5919_s3, [#allocation5]  }
 0x9b7   : > { %4835 = dma.done.wait (%p5875_p11), [#allocation5], 64  }
 0x9b8   : > { %4837 = vsyncadd (%p5875_p11), [#allocation5], 4294967232 }
 0x9b9 PF: > { %s14_s16 = sadd.s32 1, %s4856_s16   ;;  %s5943_s12 = smov %s4844_s13 }
 0x9ba   : > { %p11_p10 = scmp.ge.s32.totalorder %s14_s16, 6   ;;  %s5944_s13 = smov %s4920_s21 }
 0x9bb   : > { %s5945_s14 = smov %s4852_s15  ;;  %s5946_s15 = smov %s5948_s18 }
 0x9bc   :  { %13 = sbr.rel (!%p11_p10) target bundleno = 3 (0x3), region = 127 }
 0x9c3   :  { %3393 = vsyncpa [#allocation5], 1 }
 0x9c4   :  { %3395 = vsyncpa [#allocation5 + $0x1], 1 }

</bundles_post_ra>
